<compile_context>
chip_gen: v7x
topology: tpu7x:2x2x1
jax: 0.10.0
libtpu: 0.0.40
codegen_flags: <defaults>
</compile_context>

<pallas_src>
import numpy as np
import jax
import jax.numpy as jnp
from jax.experimental import pallas as pl
from jax.experimental.pallas import tpu as pltpu


_SQRT_2_OVER_PI = 0.7978845608028654


def _gelu(x):
    # tanh-approx GELU (EUP tanh instead of a ~12-op VALU erf polynomial).
    return 0.5 * x * (1.0 + jnp.tanh(_SQRT_2_OVER_PI * (x + 0.044715 * (x * x * x))))


# ---------------------------------------------------------------------------
# The Pallas kernel: full FNO1d forward for one batch tile (bt elements).
# Every op is a 2-D MXU matmul or elementwise math; there are no reshapes,
# transposes, stacks or concatenations in the hot path.
# ---------------------------------------------------------------------------
def _fno1d_kernel(x_ref, e0_ref, c0_ref, k_ref, b_ref, k3_ref, b3_ref,
                  p2_ref, b2_ref, o_ref):
    f32, bf16 = jnp.float32, jnp.bfloat16

    def mxu(a, b):
        return jnp.dot(a, b, preferred_element_type=f32)

    # fc0 lift with the grid term folded into a constant row (stays f32: it is a
    # tiny depth-S matmul and keeps full precision on the raw input signal).
    g = mxu(x_ref[...], e0_ref[...]) + c0_ref[...]               # (bt, S*W) f32

    # Fourier layers 0..2: fused (rDFT -> complex mix -> irDFT) + 1x1 conv
    # operator, one bf16 matmul each, then GELU.
    for l in range(3):
        g = _gelu(mxu(g.astype(bf16), k_ref[l]) + b_ref[l])      # (bt, S*W) f32

    # Fourier layer 3 fused with fc1 (both linear, no activation between them),
    # then GELU on the (bt, S*128) hidden block.
    h = _gelu(mxu(g.astype(bf16), k3_ref[...]) + b3_ref[...])    # (bt, S*128) f32

    # fc2 (block-diagonal over spatial positions), kept in f32 (trivial matmul).
    # Output is (bt, S): 16-lane stores are partially masked but total bytes are
    # tiny, so this is not worth an extra transpose.
    o_ref[0] = mxu(h, p2_ref[...]) + b2_ref[...]                 # (bt, S) f32


# ---------------------------------------------------------------------------
# Host-side (float64) construction of the fused per-layer linear operators.
# ---------------------------------------------------------------------------
def _build_fused_params(params, modes, S):
    f64 = np.float64
    fc0_w = np.asarray(params['fc0_w'], f64)              # (W, 2)
    fc0_b = np.asarray(params['fc0_b'], f64)              # (W,)
    sw_r = np.asarray(params['sw_r'], f64)                # (4, W, W, M)
    sw_i = np.asarray(params['sw_i'], f64)                # (4, W, W, M)
    cw = np.asarray(params['cw'], f64)[:, :, :, 0]        # (4, W_out, W_in)
    cb = np.asarray(params['cb'], f64)                    # (4, W)
    fc1_w = np.asarray(params['fc1_w'], f64)              # (H, W)
    fc1_b = np.asarray(params['fc1_b'], f64)              # (H,)
    fc2_w = np.asarray(params['fc2_w'], f64)              # (1, H)
    fc2_b = np.asarray(params['fc2_b'], f64)              # (1,)

    W = fc0_w.shape[0]
    H = fc1_w.shape[0]
    M = modes
    m = np.arange(M)
    s = np.arange(S)
    # Exact truncated real-DFT factors: only the first M modes of out_ft are ever
    # nonzero, so this reproduces rfft -> mix -> irfft up to fp error.
    econj = np.exp(-2j * np.pi * np.outer(m, s) / S)              # (M, S) forward
    cm = np.where(m == 0, 1.0,
                  np.where((S % 2 == 0) & (m == S // 2), 1.0, 2.0))
    gi = (cm[None, :] / S) * np.exp(2j * np.pi * np.outer(s, m) / S)   # (S, M) inverse
    eye_s = np.eye(S)

    ks, bs = [], []
    for l in range(4):
        wc = sw_r[l] + 1j * sw_i[l]                               # (W_in, W_out, M)
        # K_spec[sW+w, tW+o] = sum_m Re( gi[t,m] * econj[m,s] * wc[w,o,m] )
        k_spec = np.einsum('ms,wom,tm->swto', econj, wc, gi).real
        # 1x1 Conv1d: out[o] = sum_w cw[o, w] * in[w]  (block-diagonal over s)
        k_pw = np.einsum('st,ow->swto', eye_s, cw[l])
        ks.append((k_spec + k_pw).reshape(S * W, S * W))
        bs.append(np.tile(cb[l], S))                              # (S*W,)

    # fc0 with the grid term folded into a constant row.
    grid = np.linspace(0.0, 1.0, S)
    e0 = np.einsum('st,w->stw', eye_s, fc0_w[:, 0]).reshape(S, S * W)
    c0 = (np.outer(grid, fc0_w[:, 1]) + fc0_b[None, :]).reshape(S * W)

    # Fuse fc1 into the (linear, un-activated) 4th Fourier layer.
    p1 = np.einsum('st,cw->swtc', eye_s, fc1_w).reshape(S * W, S * H)
    k3p = ks[3] @ p1                                              # (S*W, S*H)
    b3p = bs[3] @ p1 + np.tile(fc1_b, S)                          # (S*H,)

    # fc2, block-diagonal over spatial positions.
    p2 = np.einsum('tu,c->tcu', eye_s, fc2_w[0]).reshape(S * H, S)

    f32, bf16 = jnp.float32, jnp.bfloat16
    return dict(
        e0=jnp.asarray(e0, f32),
        c0=jnp.asarray(c0, f32).reshape(1, S * W),
        k=jnp.asarray(np.stack(ks[:3]), bf16),                    # (3, S*W, S*W)
        b=jnp.asarray(np.stack(bs[:3]), f32).reshape(3, 1, S * W),
        k3=jnp.asarray(k3p, bf16),                                # (S*W, S*H)
        b3=jnp.asarray(b3p, f32).reshape(1, S * H),
        p2=jnp.asarray(p2, f32),                                  # (S*H, S)
        b2=jnp.asarray(fc2_b, f32).reshape(1, 1),
    )


# ---------------------------------------------------------------------------
# Generation-aware tiling / compiler parameters.
# ---------------------------------------------------------------------------
def _tpu_generation():
    is_v7x = False
    vmem_cap = None
    try:
        is_v7x = 'v7' in jax.devices()[0].device_kind.lower()
    except Exception:
        pass
    try:
        vmem_cap = int(pltpu.get_tpu_info().vmem_capacity_bytes)
    except Exception:
        vmem_cap = None
    if vmem_cap is None:
        vmem_cap = 64 * 1024 * 1024 if is_v7x else 128 * 1024 * 1024
    return is_v7x, vmem_cap


def _pick_batch_tile(B, is_v7x, target_rows=512):
    # Matmul rows per grid step == batch tile (the spatial dim lives in lanes).
    nb = max(1, -(-B // target_rows))
    if is_v7x and B > 1:
        nb = max(nb, 2)               # v7x: 2 TensorCores share the parallel grid
    bt = -(-B // nb)
    if nb > 1:
        bt = -(-bt // 8) * 8          # multi-step tiles must be sublane-aligned
        nb = -(-B // bt)
    return bt, nb


# ---------------------------------------------------------------------------
# Wrapper: parameter fusion (glue) + pallas_call.
# ---------------------------------------------------------------------------
def fno1d_pallas(x, params, modes, *, batch_tile=None):
    B, S, _ = x.shape
    f32 = jnp.float32

    is_v7x, vmem_cap = _tpu_generation()
    if batch_tile is None:
        bt, nb = _pick_batch_tile(B, is_v7x)
    else:
        bt, nb = batch_tile, -(-B // batch_tile)
    B_pad = nb * bt

    fused = _build_fused_params(params, modes, S)

    x2d = x.astype(f32).reshape(B, S)
    if B_pad != B:
        x2d = jnp.concatenate([x2d, jnp.zeros((B_pad - B, S), f32)], axis=0)

    def const_spec(a):
        zeros = (0,) * a.ndim
        return pl.BlockSpec(a.shape, lambda i, _z=zeros: _z)

    # 128-MiB parts (v5e/v6e) get a roomier limit than the 64-MiB v7x.
    vmem_limit = min(96 * 1024 * 1024,
                     max(32 * 1024 * 1024, int(vmem_cap * 0.6)))

    out = pl.pallas_call(
        _fno1d_kernel,
        out_shape=jax.ShapeDtypeStruct((nb, bt, S), f32),
        grid=(nb,),
        in_specs=[
            pl.BlockSpec((bt, S), lambda i: (i, 0)),               # x (batch tile)
            const_spec(fused['e0']), const_spec(fused['c0']),      # fc0 (+grid)
            const_spec(fused['k']), const_spec(fused['b']),        # layers 0..2
            const_spec(fused['k3']), const_spec(fused['b3']),      # layer 3 + fc1
            const_spec(fused['p2']), const_spec(fused['b2']),      # fc2
        ],
        out_specs=pl.BlockSpec((1, bt, S), lambda i: (i, 0, 0)),
        compiler_params=pltpu.CompilerParams(
            dimension_semantics=("parallel",),
            vmem_limit_bytes=vmem_limit),
    )(x2d, fused['e0'], fused['c0'], fused['k'], fused['b'],
      fused['k3'], fused['b3'], fused['p2'], fused['b2'])

    return out.reshape(B_pad, S)[:B, :, None]                      # (B, S, 1)


# ---------------------------------------------------------------------------
# Pure-JAX reference mirroring the PyTorch forward (for validation).
# ---------------------------------------------------------------------------
def fno1d_reference(x, params, modes):
    B, S, _ = x.shape
    f32 = jnp.float32
    gridx = jnp.broadcast_to(
        jnp.linspace(0.0, 1.0, S, dtype=f32).reshape(1, S, 1), (B, S, 1))
    h = jnp.concatenate([x.astype(f32), gridx], axis=-1)
    h = h @ params['fc0_w'].T + params['fc0_b']
    h = jnp.transpose(h, (0, 2, 1))                                  # (B, W, S)

    def spectral(h, wr, wi):
        x_ft = jnp.fft.rfft(h, axis=-1)
        w = wr.astype(jnp.complex64) + 1j * wi.astype(jnp.complex64)
        out = jnp.einsum('bix,iox->box', x_ft[:, :, :modes], w)
        out_full = jnp.zeros((h.shape[0], wr.shape[1], S // 2 + 1),
                             jnp.complex64).at[:, :, :modes].set(out)
        return jnp.fft.irfft(out_full, n=S, axis=-1)

    for l in range(4):
        x1 = spectral(h, params['sw_r'][l], params['sw_i'][l])
        x2 = jnp.einsum('oi,bis->bos', params['cw'][l][:, :, 0], h) \
             + params['cb'][l][None, :, None]
        h = x1 + x2
        if l < 3:
            h = jax.nn.gelu(h, approximate=False)
    h = jnp.transpose(h, (0, 2, 1))                                  # (B, S, W)
    h = jax.nn.gelu(h @ params['fc1_w'].T + params['fc1_b'], approximate=False)
    return h @ params['fc2_w'].T + params['fc2_b']


# ---------------------------------------------------------------------------
if __name__ == "__main__":
    B, S, width, modes = 2, 16, 32, 8                                # modes <= S//2 + 1
    key = jax.random.PRNGKey(0)
    ks = jax.random.split(key, 12)
    u = lambda k, shape, b: jax.random.uniform(k, shape, jnp.float32, -b, b)
    scale = 1.0 / (width * width)

    params = {
        'fc0_w': u(ks[0], (width, 2), 1.0 / np.sqrt(2.0)),
        'fc0_b': u(ks[1], (width,), 1.0 / np.sqrt(2.0)),
        # SpectralConv1d weights: scale * (U[0,1) + i U[0,1)), stacked for 4 layers.
        'sw_r': scale * jax.random.uniform(ks[2], (4, width, width, modes), jnp.float32),
        'sw_i': scale * jax.random.uniform(ks[3], (4, width, width, modes), jnp.float32),
        'cw': u(ks[4], (4, width, width, 1), 1.0 / np.sqrt(width)),  # Conv1d(W, W, 1)
        'cb': u(ks[5], (4, width), 1.0 / np.sqrt(width)),
        'fc1_w': u(ks[6], (128, width), 1.0 / np.sqrt(width)),
        'fc1_b': u(ks[7], (128,), 1.0 / np.sqrt(width)),
        'fc2_w': u(ks[8], (1, 128), 1.0 / np.sqrt(128.0)),
        'fc2_b': u(ks[9], (1,), 1.0 / np.sqrt(128.0)),
    }
    x = jax.random.normal(ks[10], (B, S, 1), jnp.float32)            # (batch, x=s, c=1)

    out = jax.block_until_ready(fno1d_pallas(x, params, modes))
    with jax.default_matmul_precision("float32"):
        ref = jax.block_until_ready(fno1d_reference(x, params, modes))

    assert out.shape == (B, S, 1), out.shape
    assert bool(jnp.all(jnp.isfinite(out)))
    max_err = float(jnp.max(jnp.abs(out - ref)))
    assert max_err < 5e-2, f"max |pallas - reference| = {max_err}"
    print("KERNEL_OK")
</pallas_src>

<mosaic_0001>
module attributes {stable_mosaic.version = 11 : i64} {
  func.func @_fno1d_kernel(%arg0: i32, %arg1: memref<2x16xf32, #tpu.memory_space<vmem>>, %arg2: memref<16x512xf32, #tpu.memory_space<vmem>>, %arg3: memref<1x512xf32, #tpu.memory_space<vmem>>, %arg4: memref<3x512x512xbf16, #tpu.memory_space<vmem>>, %arg5: memref<3x1x512xf32, #tpu.memory_space<vmem>>, %arg6: memref<512x2048xbf16, #tpu.memory_space<vmem>>, %arg7: memref<1x2048xf32, #tpu.memory_space<vmem>>, %arg8: memref<2048x16xf32, #tpu.memory_space<vmem>>, %arg9: memref<1x1xf32, #tpu.memory_space<vmem>>, %arg10: memref<1x2x16xf32, #tpu.memory_space<vmem>>) attributes {dimension_semantics = [#tpu.dimension_semantics<parallel>], iteration_bounds = array<i64: 1>, scalar_prefetch = 0 : i64, scratch_operands = 0 : i64, tpu.core_type = #tpu.core_type<tc>, window_params = [{transform_indices = @transform_0, window_bounds = array<i64: 2, 16>}, {pipeline_mode = #tpu.pipeline_mode<synchronous>, transform_indices = @transform_1, window_bounds = array<i64: 16, 512>}, {pipeline_mode = #tpu.pipeline_mode<synchronous>, transform_indices = @transform_2, window_bounds = array<i64: 1, 512>}, {pipeline_mode = #tpu.pipeline_mode<synchronous>, transform_indices = @transform_3, window_bounds = array<i64: 3, 512, 512>}, {pipeline_mode = #tpu.pipeline_mode<synchronous>, transform_indices = @transform_4, window_bounds = array<i64: 3, 1, 512>}, {pipeline_mode = #tpu.pipeline_mode<synchronous>, transform_indices = @transform_5, window_bounds = array<i64: 512, 2048>}, {pipeline_mode = #tpu.pipeline_mode<synchronous>, transform_indices = @transform_6, window_bounds = array<i64: 1, 2048>}, {pipeline_mode = #tpu.pipeline_mode<synchronous>, transform_indices = @transform_7, window_bounds = array<i64: 2048, 16>}, {pipeline_mode = #tpu.pipeline_mode<synchronous>, transform_indices = @transform_8, window_bounds = array<i64: 1, 1>}, {transform_indices = @transform_9, window_bounds = array<i64: 1, 2, 16>}]} {
    %c0 = arith.constant 0 : index
    %c0_0 = arith.constant 0 : index
    %0 = vector.load %arg1[%c0, %c0_0] : memref<2x16xf32, #tpu.memory_space<vmem>>, vector<2x16xf32>
    %c0_1 = arith.constant 0 : index
    %c0_2 = arith.constant 0 : index
    %1 = vector.load %arg2[%c0_1, %c0_2] : memref<16x512xf32, #tpu.memory_space<vmem>>, vector<16x512xf32>
    %cst = arith.constant dense<0.000000e+00> : vector<2x512xf32>
    %2 = tpu.matmul %0, %1, %cst {dimension_numbers = #tpu.dot_dimension_numbers<[1], [0], [0], [1], [0, 0, 1, 1], [], []>} : vector<2x16xf32>, vector<16x512xf32>, vector<2x512xf32> -> vector<2x512xf32>
    %c0_3 = arith.constant 0 : index
    %c0_4 = arith.constant 0 : index
    %3 = vector.load %arg3[%c0_3, %c0_4] : memref<1x512xf32, #tpu.memory_space<vmem>>, vector<1x512xf32>
    %4 = vector.broadcast %3 : vector<1x512xf32> to vector<2x512xf32>
    %5 = arith.addf %2, %4 : vector<2x512xf32>
    %6 = arith.truncf %5 : vector<2x512xf32> to vector<2x512xbf16>
    %c0_5 = arith.constant 0 : index
    %c0_6 = arith.constant 0 : index
    %c0_7 = arith.constant 0 : index
    %7 = vector.load %arg4[%c0_5, %c0_6, %c0_7] : memref<3x512x512xbf16, #tpu.memory_space<vmem>>, vector<1x512x512xbf16>
    %8 = vector.shape_cast %7 : vector<1x512x512xbf16> to vector<512x512xbf16>
    %cst_8 = arith.constant dense<0.000000e+00> : vector<2x512xf32>
    %9 = tpu.matmul %6, %8, %cst_8 {dimension_numbers = #tpu.dot_dimension_numbers<[1], [0], [0], [1], [0, 0, 1, 1], [], []>} : vector<2x512xbf16>, vector<512x512xbf16>, vector<2x512xf32> -> vector<2x512xf32>
    %c0_9 = arith.constant 0 : index
    %c0_10 = arith.constant 0 : index
    %c0_11 = arith.constant 0 : index
    %10 = vector.load %arg5[%c0_9, %c0_10, %c0_11] : memref<3x1x512xf32, #tpu.memory_space<vmem>>, vector<1x1x512xf32>
    %11 = vector.shape_cast %10 : vector<1x1x512xf32> to vector<1x512xf32>
    %12 = vector.broadcast %11 : vector<1x512xf32> to vector<2x512xf32>
    %13 = arith.addf %9, %12 : vector<2x512xf32>
    %cst_12 = arith.constant 5.000000e-01 : f32
    %14 = vector.broadcast %cst_12 : f32 to vector<2x512xf32>
    %15 = arith.mulf %14, %13 : vector<2x512xf32>
    %16 = arith.mulf %13, %13 : vector<2x512xf32>
    %17 = arith.mulf %16, %13 : vector<2x512xf32>
    %cst_13 = arith.constant 4.471500e-02 : f32
    %18 = vector.broadcast %cst_13 : f32 to vector<2x512xf32>
    %19 = arith.mulf %18, %17 : vector<2x512xf32>
    %20 = arith.addf %13, %19 : vector<2x512xf32>
    %cst_14 = arith.constant 0.797884583 : f32
    %21 = vector.broadcast %cst_14 : f32 to vector<2x512xf32>
    %22 = arith.mulf %21, %20 : vector<2x512xf32>
    %23 = math.tanh %22 : vector<2x512xf32>
    %cst_15 = arith.constant 1.000000e+00 : f32
    %24 = vector.broadcast %cst_15 : f32 to vector<2x512xf32>
    %25 = arith.addf %24, %23 : vector<2x512xf32>
    %26 = arith.mulf %15, %25 : vector<2x512xf32>
    %27 = arith.truncf %26 : vector<2x512xf32> to vector<2x512xbf16>
    %c1 = arith.constant 1 : index
    %c0_16 = arith.constant 0 : index
    %c0_17 = arith.constant 0 : index
    %28 = vector.load %arg4[%c1, %c0_16, %c0_17] : memref<3x512x512xbf16, #tpu.memory_space<vmem>>, vector<1x512x512xbf16>
    %29 = vector.shape_cast %28 : vector<1x512x512xbf16> to vector<512x512xbf16>
    %cst_18 = arith.constant dense<0.000000e+00> : vector<2x512xf32>
    %30 = tpu.matmul %27, %29, %cst_18 {dimension_numbers = #tpu.dot_dimension_numbers<[1], [0], [0], [1], [0, 0, 1, 1], [], []>} : vector<2x512xbf16>, vector<512x512xbf16>, vector<2x512xf32> -> vector<2x512xf32>
    %c1_19 = arith.constant 1 : index
    %c0_20 = arith.constant 0 : index
    %c0_21 = arith.constant 0 : index
    %31 = vector.load %arg5[%c1_19, %c0_20, %c0_21] : memref<3x1x512xf32, #tpu.memory_space<vmem>>, vector<1x1x512xf32>
    %32 = vector.shape_cast %31 : vector<1x1x512xf32> to vector<1x512xf32>
    %33 = vector.broadcast %32 : vector<1x512xf32> to vector<2x512xf32>
    %34 = arith.addf %30, %33 : vector<2x512xf32>
    %cst_22 = arith.constant 5.000000e-01 : f32
    %35 = vector.broadcast %cst_22 : f32 to vector<2x512xf32>
    %36 = arith.mulf %35, %34 : vector<2x512xf32>
    %37 = arith.mulf %34, %34 : vector<2x512xf32>
    %38 = arith.mulf %37, %34 : vector<2x512xf32>
    %cst_23 = arith.constant 4.471500e-02 : f32
    %39 = vector.broadcast %cst_23 : f32 to vector<2x512xf32>
    %40 = arith.mulf %39, %38 : vector<2x512xf32>
    %41 = arith.addf %34, %40 : vector<2x512xf32>
    %cst_24 = arith.constant 0.797884583 : f32
    %42 = vector.broadcast %cst_24 : f32 to vector<2x512xf32>
    %43 = arith.mulf %42, %41 : vector<2x512xf32>
    %44 = math.tanh %43 : vector<2x512xf32>
    %cst_25 = arith.constant 1.000000e+00 : f32
    %45 = vector.broadcast %cst_25 : f32 to vector<2x512xf32>
    %46 = arith.addf %45, %44 : vector<2x512xf32>
    %47 = arith.mulf %36, %46 : vector<2x512xf32>
    %48 = arith.truncf %47 : vector<2x512xf32> to vector<2x512xbf16>
    %c2 = arith.constant 2 : index
    %c0_26 = arith.constant 0 : index
    %c0_27 = arith.constant 0 : index
    %49 = vector.load %arg4[%c2, %c0_26, %c0_27] : memref<3x512x512xbf16, #tpu.memory_space<vmem>>, vector<1x512x512xbf16>
    %50 = vector.shape_cast %49 : vector<1x512x512xbf16> to vector<512x512xbf16>
    %cst_28 = arith.constant dense<0.000000e+00> : vector<2x512xf32>
    %51 = tpu.matmul %48, %50, %cst_28 {dimension_numbers = #tpu.dot_dimension_numbers<[1], [0], [0], [1], [0, 0, 1, 1], [], []>} : vector<2x512xbf16>, vector<512x512xbf16>, vector<2x512xf32> -> vector<2x512xf32>
    %c2_29 = arith.constant 2 : index
    %c0_30 = arith.constant 0 : index
    %c0_31 = arith.constant 0 : index
    %52 = vector.load %arg5[%c2_29, %c0_30, %c0_31] : memref<3x1x512xf32, #tpu.memory_space<vmem>>, vector<1x1x512xf32>
    %53 = vector.shape_cast %52 : vector<1x1x512xf32> to vector<1x512xf32>
    %54 = vector.broadcast %53 : vector<1x512xf32> to vector<2x512xf32>
    %55 = arith.addf %51, %54 : vector<2x512xf32>
    %cst_32 = arith.constant 5.000000e-01 : f32
    %56 = vector.broadcast %cst_32 : f32 to vector<2x512xf32>
    %57 = arith.mulf %56, %55 : vector<2x512xf32>
    %58 = arith.mulf %55, %55 : vector<2x512xf32>
    %59 = arith.mulf %58, %55 : vector<2x512xf32>
    %cst_33 = arith.constant 4.471500e-02 : f32
    %60 = vector.broadcast %cst_33 : f32 to vector<2x512xf32>
    %61 = arith.mulf %60, %59 : vector<2x512xf32>
    %62 = arith.addf %55, %61 : vector<2x512xf32>
    %cst_34 = arith.constant 0.797884583 : f32
    %63 = vector.broadcast %cst_34 : f32 to vector<2x512xf32>
    %64 = arith.mulf %63, %62 : vector<2x512xf32>
    %65 = math.tanh %64 : vector<2x512xf32>
    %cst_35 = arith.constant 1.000000e+00 : f32
    %66 = vector.broadcast %cst_35 : f32 to vector<2x512xf32>
    %67 = arith.addf %66, %65 : vector<2x512xf32>
    %68 = arith.mulf %57, %67 : vector<2x512xf32>
    %69 = arith.truncf %68 : vector<2x512xf32> to vector<2x512xbf16>
    %c0_36 = arith.constant 0 : index
    %c0_37 = arith.constant 0 : index
    %70 = vector.load %arg6[%c0_36, %c0_37] : memref<512x2048xbf16, #tpu.memory_space<vmem>>, vector<512x2048xbf16>
    %cst_38 = arith.constant dense<0.000000e+00> : vector<2x2048xf32>
    %71 = tpu.matmul %69, %70, %cst_38 {dimension_numbers = #tpu.dot_dimension_numbers<[1], [0], [0], [1], [0, 0, 1, 1], [], []>} : vector<2x512xbf16>, vector<512x2048xbf16>, vector<2x2048xf32> -> vector<2x2048xf32>
    %c0_39 = arith.constant 0 : index
    %c0_40 = arith.constant 0 : index
    %72 = vector.load %arg7[%c0_39, %c0_40] : memref<1x2048xf32, #tpu.memory_space<vmem>>, vector<1x2048xf32>
    %73 = vector.broadcast %72 : vector<1x2048xf32> to vector<2x2048xf32>
    %74 = arith.addf %71, %73 : vector<2x2048xf32>
    %cst_41 = arith.constant 5.000000e-01 : f32
    %75 = vector.broadcast %cst_41 : f32 to vector<2x2048xf32>
    %76 = arith.mulf %75, %74 : vector<2x2048xf32>
    %77 = arith.mulf %74, %74 : vector<2x2048xf32>
    %78 = arith.mulf %77, %74 : vector<2x2048xf32>
    %cst_42 = arith.constant 4.471500e-02 : f32
    %79 = vector.broadcast %cst_42 : f32 to vector<2x2048xf32>
    %80 = arith.mulf %79, %78 : vector<2x2048xf32>
    %81 = arith.addf %74, %80 : vector<2x2048xf32>
    %cst_43 = arith.constant 0.797884583 : f32
    %82 = vector.broadcast %cst_43 : f32 to vector<2x2048xf32>
    %83 = arith.mulf %82, %81 : vector<2x2048xf32>
    %84 = math.tanh %83 : vector<2x2048xf32>
    %cst_44 = arith.constant 1.000000e+00 : f32
    %85 = vector.broadcast %cst_44 : f32 to vector<2x2048xf32>
    %86 = arith.addf %85, %84 : vector<2x2048xf32>
    %87 = arith.mulf %76, %86 : vector<2x2048xf32>
    %c0_45 = arith.constant 0 : index
    %c0_46 = arith.constant 0 : index
    %88 = vector.load %arg8[%c0_45, %c0_46] : memref<2048x16xf32, #tpu.memory_space<vmem>>, vector<2048x16xf32>
    %cst_47 = arith.constant dense<0.000000e+00> : vector<2x16xf32>
    %89 = tpu.matmul %87, %88, %cst_47 {dimension_numbers = #tpu.dot_dimension_numbers<[1], [0], [0], [1], [0, 0, 1, 1], [], []>} : vector<2x2048xf32>, vector<2048x16xf32>, vector<2x16xf32> -> vector<2x16xf32>
    %c0_48 = arith.constant 0 : index
    %c0_49 = arith.constant 0 : index
    %90 = vector.load %arg9[%c0_48, %c0_49] : memref<1x1xf32, #tpu.memory_space<vmem>>, vector<1x1xf32>
    %91 = vector.broadcast %90 : vector<1x1xf32> to vector<2x16xf32>
    %92 = arith.addf %89, %91 : vector<2x16xf32>
    %c0_50 = arith.constant 0 : index
    %c0_51 = arith.constant 0 : index
    %c0_52 = arith.constant 0 : index
    %93 = vector.load %arg10[%c0_50, %c0_51, %c0_52] : memref<1x2x16xf32, #tpu.memory_space<vmem>>, vector<1x2x16xf32>
    %94 = vector.shape_cast %93 : vector<1x2x16xf32> to vector<2x16xf32>
    %95 = vector.shape_cast %92 : vector<2x16xf32> to vector<1x2x16xf32>
    tpu.vector_store %arg10[%c0_50, %c0_51, %c0_52], %95 {strides = array<i32>} : memref<1x2x16xf32, #tpu.memory_space<vmem>>, vector<1x2x16xf32>,
    return
  }
  func.func @transform_0(%arg0: i32) -> (i32, i32) {
    %c0_i32 = arith.constant 0 : i32
    %c0_i32_0 = arith.constant 0 : i32
    return %arg0, %c0_i32 : i32, i32
  }
  func.func @transform_1(%arg0: i32) -> (i32, i32) {
    %c0_i32 = arith.constant 0 : i32
    %c0_i32_0 = arith.constant 0 : i32
    %c0_i32_1 = arith.constant 0 : i32
    return %c0_i32, %c0_i32_0 : i32, i32
  }
  func.func @transform_2(%arg0: i32) -> (i32, i32) {
    %c0_i32 = arith.constant 0 : i32
    %c0_i32_0 = arith.constant 0 : i32
    %c0_i32_1 = arith.constant 0 : i32
    return %c0_i32, %c0_i32_0 : i32, i32
  }
  func.func @transform_3(%arg0: i32) -> (i32, i32, i32) {
    %c0_i32 = arith.constant 0 : i32
    %c0_i32_0 = arith.constant 0 : i32
    %c0_i32_1 = arith.constant 0 : i32
    %c0_i32_2 = arith.constant 0 : i32
    return %c0_i32, %c0_i32_0, %c0_i32_1 : i32, i32, i32
  }
  func.func @transform_4(%arg0: i32) -> (i32, i32, i32) {
    %c0_i32 = arith.constant 0 : i32
    %c0_i32_0 = arith.constant 0 : i32
    %c0_i32_1 = arith.constant 0 : i32
    %c0_i32_2 = arith.constant 0 : i32
    return %c0_i32, %c0_i32_0, %c0_i32_1 : i32, i32, i32
  }
  func.func @transform_5(%arg0: i32) -> (i32, i32) {
    %c0_i32 = arith.constant 0 : i32
    %c0_i32_0 = arith.constant 0 : i32
    %c0_i32_1 = arith.constant 0 : i32
    return %c0_i32, %c0_i32_0 : i32, i32
  }
  func.func @transform_6(%arg0: i32) -> (i32, i32) {
    %c0_i32 = arith.constant 0 : i32
    %c0_i32_0 = arith.constant 0 : i32
    %c0_i32_1 = arith.constant 0 : i32
    return %c0_i32, %c0_i32_0 : i32, i32
  }
  func.func @transform_7(%arg0: i32) -> (i32, i32) {
    %c0_i32 = arith.constant 0 : i32
    %c0_i32_0 = arith.constant 0 : i32
    %c0_i32_1 = arith.constant 0 : i32
    return %c0_i32, %c0_i32_0 : i32, i32
  }
  func.func @transform_8(%arg0: i32) -> (i32, i32) {
    %c0_i32 = arith.constant 0 : i32
    %c0_i32_0 = arith.constant 0 : i32
    %c0_i32_1 = arith.constant 0 : i32
    return %c0_i32, %c0_i32_0 : i32, i32
  }
  func.func @transform_9(%arg0: i32) -> (i32, i32, i32) {
    %c0_i32 = arith.constant 0 : i32
    %c0_i32_0 = arith.constant 0 : i32
    %c0_i32_1 = arith.constant 0 : i32
    return %arg0, %c0_i32, %c0_i32_0 : i32, i32, i32
  }
}

</mosaic_0001>

<bundles_post_ra>
// kernel: tpu_custom_call.1
= control target key start
LH: loop header
LB: loop body
LE: loop exit
PB: predicated region body
PF: predicated region fallthrough
CT: control target
= control target key end

     0   :  { %s10987_s0 = inlined_call_operand.hbm [shape: f32[2,16], index: 0, kind: input, shape index: {}]   ;;  %s10988_s1 = inlined_call_operand.hbm [shape: f32[16,512], index: 1, kind: input, shape index: {}]   ;;  %s10989_s2 = inlined_call_operand.hbm [shape: f32[1,512], index: 2, kind: input, shape index: {}]   ;;  %s10990_s3 = inlined_call_operand.hbm [shape: bf16[3,512,512], index: 3, kind: input, shape index: {}]   ;;  %s10991_s4 = inlined_call_operand.hbm [shape: f32[3,1,512], index: 4, kind: input, shape index: {}]   ;;  %s10992_s5 = inlined_call_operand.hbm [shape: bf16[512,2048], index: 5, kind: input, shape index: {}]   ;;  %s10993_s6 = inlined_call_operand.hbm [shape: f32[1,2048], index: 6, kind: input, shape index: {}]   ;;  %s10994_s7 = inlined_call_operand.hbm [shape: f32[2048,16], index: 7, kind: input, shape index: {}]   ;;  %s10995_s8 = inlined_call_operand.<no memory space> [shape: f32[1,1], index: 8, kind: input, shape index: {}]   ;;  %s10996_s9 = inlined_call_operand.hbm [shape: f32[1,2,16], index: 9, kind: output, shape index: {}]  }
   0x1   :  { %v14_v0 = vstv %s10995_s8 }
   0x2   :  { %15 = vst [vmem:[#allocation2] sm:$0x1] %v14_v0 }
   0x3   :  { %16 = vsyncpa [#allocation4], 0 }
   0x4   :  { %17 = vsyncpa [#allocation7], 0 }
   0x5   :  { %18 = vsyncpa [#allocation10], 0 }
   0x6   :  { %19 = vsyncpa [#allocation13], 0 }
   0x7   :  { %20 = vsyncpa [#allocation16], 0 }
   0x8   :  { %21 = vsyncpa [#allocation5], 0  ;;  %s10498_s11 = smov [#allocation6]   ;;  %s10288_s15 = scalar_lea.hbm %s10988_s1, 1024 }
   0x9   :  { %s37_s12 = sshll.u32 %s10498_s11, 4  ;;  %p10289_p0 = scmp.ne.s32.totalorder %s10988_s1, %s10288_s15  ;;  %s38_s12 = int_to_ptr.vmem [resolvable:$true] %s37_s12 }
   0xa   :  { %p10292_p1 = scmp.lt.u32.totalorder %s10288_s15, %s10988_s1 }
   0xc   :  { %p10294_p2 = pnand %p10292_p1, %p10289_p0 }
   0xe   :  { %10297 = shalt.err (!%p10294_p2)
}
   0xf   :  { %s10298_s19 = scalar_lea.vmem %s38_s12, 1024  ;;  %p10303_p4 = scmp.lt.s32.totalorder %s38_s12, %s38_s12 }
  0x10   :  { %p10299_p3 = scmp.ne.s32.totalorder %s38_s12, %s10298_s19  ;;  %p10304_p5 = scmp.lt.s32.totalorder %s10298_s19, %s10298_s19 }
  0x12   :  { %p10305_p6 = por %p10304_p5, %p10303_p4 }
  0x14   :  { %p10306_p7 = pnand %p10305_p6, %p10299_p3 }
  0x16   :  { %10309 = shalt.err (!%p10306_p7)
}
  0x17   :  { %s10499_s20 = smov 512   ;;  %s10500_s21 = smov 32  }
  0x18   :  { %43 = dma.hbm_to_vmem [thread:$0]  %s10988_s1, 1024, %s38_s12, [#allocation7], %s10499_s20, %s10499_s20, %s10500_s21  }
  0x19   :  { %s10501_s24 = smov [#allocation9]   ;;  %s10310_s28 = scalar_lea.hbm %s10990_s3, 49152 }
  0x1a   :  { %s59_s25 = sshll.u32 %s10501_s24, 4  ;;  %p10311_p8 = scmp.ne.s32.totalorder %s10990_s3, %s10310_s28  ;;  %s60_s25 = int_to_ptr.vmem [resolvable:$true] %s59_s25 }
  0x1b   :  { %p10314_p9 = scmp.lt.u32.totalorder %s10310_s28, %s10990_s3 }
  0x1d   :  { %p10316_p10 = pnand %p10314_p9, %p10311_p8 }
  0x1f   :  { %10319 = shalt.err (!%p10316_p10)
}
  0x20   :  { %s10320_s13 = scalar_lea.vmem %s60_s25, 49152  ;;  %p10325_p12 = scmp.lt.s32.totalorder %s60_s25, %s60_s25 }
  0x21   :  { %p10321_p11 = scmp.ne.s32.totalorder %s60_s25, %s10320_s13  ;;  %p10326_p13 = scmp.lt.s32.totalorder %s10320_s13, %s10320_s13 }
  0x23   :  { %p10327_p0 = por %p10326_p13, %p10325_p12 }
  0x25   :  { %p10328_p1 = pnand %p10327_p0, %p10321_p11 }
  0x27   :  { %10331 = shalt.err (!%p10328_p1)
}
  0x28   :  { %s10502_s1 = smov 256   ;;  %s10503_s12 = smov 16  }
  0x29   :  { %65 = dma.hbm_to_vmem [thread:$0]  %s10990_s3, 49152, %s60_s25, [#allocation10], %s10502_s1, %s10502_s1, %s10503_s12  }
  0x2a   :  { %s10504_s16 = smov [#allocation12]   ;;  %s10332_s19 = scalar_lea.hbm %s10992_s5, 65536 }
  0x2b   :  { %s83_s17 = sshll.u32 %s10504_s16, 4  ;;  %p10333_p2 = scmp.ne.s32.totalorder %s10992_s5, %s10332_s19  ;;  %s84_s17 = int_to_ptr.vmem [resolvable:$true] %s83_s17 }
  0x2c   :  { %p10336_p3 = scmp.lt.u32.totalorder %s10332_s19, %s10992_s5 }
  0x2e   :  { %p10338_p4 = pnand %p10336_p3, %p10333_p2 }
  0x30   :  { %10341 = shalt.err (!%p10338_p4)
}
  0x31   :  { %s10342_s24 = scalar_lea.vmem %s84_s17, 65536  ;;  %p10347_p6 = scmp.lt.s32.totalorder %s84_s17, %s84_s17 }
  0x32   :  { %p10343_p5 = scmp.ne.s32.totalorder %s84_s17, %s10342_s24  ;;  %p10348_p7 = scmp.lt.s32.totalorder %s10342_s24, %s10342_s24 }
  0x34   :  { %p10349_p8 = por %p10348_p7, %p10347_p6 }
  0x36   :  { %p10350_p9 = pnand %p10349_p8, %p10343_p5 }
  0x38   :  { %10353 = shalt.err (!%p10350_p9)
}
  0x39   :  { %s10505_s3 = smov 1024   ;;  %s10506_s25 = smov 64  }
  0x3a   :  { %89 = dma.hbm_to_vmem [thread:$0]  %s10992_s5, 65536, %s84_s17, [#allocation13], %s10505_s3, %s10505_s3, %s10506_s25  }
  0x3b   :  { %s10507_s28 = smov [#allocation3]   ;;  %s10508_s30 = smov [#allocation8]  }
  0x3c   :  { %s28_s29 = sshll.u32 %s10507_s28, 4  ;;  %s50_s10 = sshll.u32 %s10508_s30, 4  ;;  %s29_s29 = int_to_ptr.vmem [resolvable:$true] %s28_s29  ;;  %s51_s10 = int_to_ptr.vmem [resolvable:$true] %s50_s10 }
  0x3d   :  { %s10354_s1 = scalar_lea.hbm %s10987_s0, 32 }
  0x3e   :  { %p10355_p10 = scmp.ne.s32.totalorder %s10987_s0, %s10354_s1  ;;  %p10358_p11 = scmp.lt.u32.totalorder %s10354_s1, %s10987_s0 }
  0x40   :  { %p10360_p12 = pnand %p10358_p11, %p10355_p10 }
  0x42   :  { %10363 = shalt.err (!%p10360_p12)
}
  0x43   :  { %s10364_s5 = scalar_lea.vmem %s29_s29, 32  ;;  %p10369_p0 = scmp.lt.s32.totalorder %s29_s29, %s29_s29 }
  0x44   :  { %p10365_p13 = scmp.ne.s32.totalorder %s29_s29, %s10364_s5  ;;  %p10370_p1 = scmp.lt.s32.totalorder %s10364_s5, %s10364_s5 }
  0x46   :  { %p10371_p2 = por %p10370_p1, %p10369_p0 }
  0x48   :  { %p10372_p3 = pnand %p10371_p2, %p10365_p13 }
  0x4a   :  { %10375 = shalt.err (!%p10372_p3)
}
  0x4b   :  { %31 = dma.hbm_to_vmem [thread:$0]  %s10987_s0, 32, %s29_s29, [#allocation4]  }
  0x4c   :  { %s10376_s20 = scalar_lea.hbm %s10989_s2, 64 }
  0x4d   :  { %p10377_p4 = scmp.ne.s32.totalorder %s10989_s2, %s10376_s20  ;;  %p10380_p5 = scmp.lt.u32.totalorder %s10376_s20, %s10989_s2 }
  0x4f   :  { %p10382_p6 = pnand %p10380_p5, %p10377_p4 }
  0x51   :  { %10385 = shalt.err (!%p10382_p6)
}
  0x52   :  { %s10386_s3 = scalar_lea.vmem %s51_s10, 64  ;;  %p10391_p8 = scmp.lt.s32.totalorder %s51_s10, %s51_s10 }
  0x53   :  { %p10387_p7 = scmp.ne.s32.totalorder %s51_s10, %s10386_s3  ;;  %p10392_p9 = scmp.lt.s32.totalorder %s10386_s3, %s10386_s3 }
  0x55   :  { %p10393_p10 = por %p10392_p9, %p10391_p8 }
  0x57   :  { %p10394_p11 = pnand %p10393_p10, %p10387_p7 }
  0x59   :  { %10397 = shalt.err (!%p10394_p11)
}
  0x5a   :  { %53 = dma.hbm_to_vmem [thread:$0]  %s10989_s2, 64, %s51_s10, [#allocation7]  }
  0x5b   :  { %s10509_s27 = smov [#allocation11]   ;;  %s10398_s11 = scalar_lea.hbm %s10991_s4, 192 }
  0x5c   :  { %s71_s28 = sshll.u32 %s10509_s27, 4  ;;  %p10399_p12 = scmp.ne.s32.totalorder %s10991_s4, %s10398_s11  ;;  %s72_s28 = int_to_ptr.vmem [resolvable:$true] %s71_s28 }
  0x5d   :  { %p10402_p13 = scmp.lt.u32.totalorder %s10398_s11, %s10991_s4 }
  0x5f   :  { %p10404_p0 = pnand %p10402_p13, %p10399_p12 }
  0x61   :  { %10407 = shalt.err (!%p10404_p0)
}
  0x62   :  { %s10408_s15 = scalar_lea.vmem %s72_s28, 192  ;;  %p10413_p2 = scmp.lt.s32.totalorder %s72_s28, %s72_s28 }
  0x63   :  { %p10409_p1 = scmp.ne.s32.totalorder %s72_s28, %s10408_s15  ;;  %p10414_p3 = scmp.lt.s32.totalorder %s10408_s15, %s10408_s15 }
  0x65   :  { %p10415_p4 = por %p10414_p3, %p10413_p2 }
  0x67   :  { %p10416_p5 = pnand %p10415_p4, %p10409_p1 }
  0x69   :  { %10419 = shalt.err (!%p10416_p5)
}
  0x6a   :  { %s10510_s2 = smov 4   ;;  %s10511_s5 = smov [#allocation14]  }
  0x6b   :  { %77 = dma.hbm_to_vmem [thread:$0]  %s10991_s4, 192, %s72_s28, [#allocation10], %s10506_s25, %s10506_s25, %s10510_s2  }
  0x6c   :  { %s96_s17 = sshll.u32 %s10511_s5, 4  ;;  %s10512_s18 = smov [#allocation15]   ;;  %s97_s17 = int_to_ptr.vmem [resolvable:$true] %s96_s17 }
  0x6d   :  { %s105_s8 = sshll.u32 %s10512_s18, 4  ;;  %s10420_s21 = scalar_lea.hbm %s10993_s6, 256  ;;  %s106_s8 = int_to_ptr.vmem [resolvable:$true] %s105_s8 }
  0x6e   :  { %p10421_p6 = scmp.ne.s32.totalorder %s10993_s6, %s10420_s21  ;;  %p10424_p7 = scmp.lt.u32.totalorder %s10420_s21, %s10993_s6 }
  0x70   :  { %p10426_p8 = pnand %p10424_p7, %p10421_p6 }
  0x72   :  { %10429 = shalt.err (!%p10426_p8)
}
  0x73   :  { %s10430_s4 = scalar_lea.vmem %s97_s17, 256  ;;  %p10435_p10 = scmp.lt.s32.totalorder %s97_s17, %s97_s17 }
  0x74   :  { %p10431_p9 = scmp.ne.s32.totalorder %s97_s17, %s10430_s4  ;;  %p10436_p11 = scmp.lt.s32.totalorder %s10430_s4, %s10430_s4 }
  0x76   :  { %p10437_p12 = por %p10436_p11, %p10435_p10 }
  0x78   :  { %p10438_p13 = pnand %p10437_p12, %p10431_p9 }
  0x7a   :  { %10441 = shalt.err (!%p10438_p13)
}
  0x7b   :  { %99 = dma.hbm_to_vmem [thread:$0]  %s10993_s6, 256, %s97_s17, [#allocation13]  }
  0x7c   :  { %s10442_s28 = scalar_lea.hbm %s10994_s7, 32768 }
  0x7d   :  { %p10443_p0 = scmp.ne.s32.totalorder %s10994_s7, %s10442_s28  ;;  %p10446_p1 = scmp.lt.u32.totalorder %s10442_s28, %s10994_s7 }
  0x7f   :  { %p10448_p2 = pnand %p10446_p1, %p10443_p0 }
  0x81   :  { %10451 = shalt.err (!%p10448_p2)
}
  0x82   :  { %s10452_s1 = scalar_lea.vmem %s106_s8, 32768  ;;  %p10457_p4 = scmp.lt.s32.totalorder %s106_s8, %s106_s8 }
  0x83   :  { %p10453_p3 = scmp.ne.s32.totalorder %s106_s8, %s10452_s1  ;;  %p10458_p5 = scmp.lt.s32.totalorder %s10452_s1, %s10452_s1 }
  0x85   :  { %p10459_p6 = por %p10458_p5, %p10457_p4 }
  0x87   :  { %p10460_p7 = pnand %p10459_p6, %p10453_p3 }
  0x89   :  { %10463 = shalt.err (!%p10460_p7)
}
  0x8a   :  { %s10513_s6 = smov 128   ;;  %s10514_s12 = smov 8  }
  0x8b   :  { %111 = dma.hbm_to_vmem [thread:$0]  %s10994_s7, 32768, %s106_s8, [#allocation16], %s10513_s6, %s10513_s6, %s10514_s12  }
  0x8c   :  { %10486 = dma.done.wait [#allocation4], 32  }
  0x8d   :  { %10487 = vsyncadd [#allocation4], 4294967264 }
  0x8e   :  { %10488 = dma.done.wait [#allocation7], 1088  }
  0x8f   :  { %10489 = vsyncadd [#allocation7], 4294966208 }
  0x90   :  { %10490 = dma.done.wait [#allocation10], 49344  }
  0x91   :  { %10491 = vsyncadd [#allocation10], 4294917952 }
  0x92   :  { %10492 = dma.done.wait [#allocation13], 65792  }
  0x93   :  { %10493 = vsyncadd [#allocation13], 4294901504 }
  0x94   :  { %10494 = dma.done.wait [#allocation16], 32768  }
  0x95   :  { %10495 = vsyncadd [#allocation16], 4294934528  ;;  %v10515_v1 = vmov 0.0   ;;  %v140_v2 = vld [vmem:[#allocation6 + $0x8] sm:$0xff]  ;;  %v139_v4 = vld [vmem:[#allocation6] sm:$0xff]  ;;  %vm169_vm0 = vcmask 130048  }
  0x96   :  { %237 = vmatprep.mubr.f32.mxu0 %v10515_v1  ;;  %308 = vmatprep.mubr.f32.mxu1 %v10515_v1  ;;  %v144_v3 = vld [vmem:[#allocation6 + $0x28] sm:$0xff]  ;;  %v143_v6 = vld [vmem:[#allocation6 + $0x20] sm:$0xff]  ;;  %v142_v7 = vld [vmem:[#allocation6 + $0x18] sm:$0xff]  ;;  %s10517_s7 = smov [#allocation17]   ;;  %vm8087_vm1 = vcmask 123904  }
  0x97   :  { %v9287_v5 = vpack.c.bf16 %v144_v3, %v140_v2  ;;  %v9289_v8 = vpack.c.bf16 %v143_v6, %v139_v4  ;;  %v138_v9 = vld [vmem:[#allocation3] sm:$0x3]  ;;  %v141_v11 = vld [vmem:[#allocation6 + $0x10] sm:$0xff]  ;;  %v9658_v16 = vld [vmem:[#allocation9 + $0x4] ss:$16 sps:$4 sm:$0xff]   ;;  %s8095_s2 = sshll.u32 %s10517_s7, 4  ;;  %s8096_s2 = int_to_ptr.vmem [resolvable:$true] %s8095_s2 }
  0x98   :  { %v146_v10 = vld [vmem:[#allocation6 + $0x38] sm:$0xff]  ;;  %v145_v12 = vld [vmem:[#allocation6 + $0x30] sm:$0xff]  ;;  %s10464_s10 = scalar_lea.vmem %s8096_s2, 32  ;;  %p10469_p9 = scmp.lt.s32.totalorder %s8096_s2, %s8096_s2 }
  0x99   :  { %9288 = vmatprep.subr.bf16.mxu0 %v9287_v5  ;;  %v9291_v13 = vpack.c.bf16 %v146_v10, %v142_v7  ;;  %v9293_v14 = vpack.c.bf16 %v145_v12, %v141_v11  ;;  %v9656_v15 = vld [vmem:[#allocation9] ss:$16 sps:$4 sm:$0xff]   ;;  %v9661_v17 = vld [vmem:[#allocation9 + $0xc] ss:$16 sps:$4 sm:$0xff]   ;;  %v9659_v18 = vld [vmem:[#allocation9 + $0x8] ss:$16 sps:$4 sm:$0xff]   ;;  %p10465_p8 = scmp.ne.s32.totalorder %s8096_s2, %s10464_s10  ;;  %p10470_p10 = scmp.lt.s32.totalorder %s10464_s10, %s10464_s10 }
  0x9a   :  { %9290 = vmatpush1.bf16.msra.mxu0 %v9289_v8  ;;  %v9664_v19 = vld [vmem:[#allocation9 + $0x24] ss:$16 sps:$4 sm:$0xff]   ;;  %v9662_v20 = vld [vmem:[#allocation9 + $0x20] ss:$16 sps:$4 sm:$0xff]   ;;  %v9667_v21 = vld [vmem:[#allocation9 + $0x2c] ss:$16 sps:$4 sm:$0xff]  }
  0x9b   :  { %9292 = vmatprep.subr.bf16.mxu1 %v9291_v13  ;;  %1109 = vmatprep.subr.bf16.mxu0 %v9658_v16  ;;  %v9670_v22 = vld [vmem:[#allocation9 + $0x44] ss:$16 sps:$4 sm:$0xff]   ;;  %v9665_v23 = vld [vmem:[#allocation9 + $0x28] ss:$16 sps:$4 sm:$0xff]   ;;  %v9673_v24 = vld [vmem:[#allocation9 + $0x4c] ss:$16 sps:$4 sm:$0xff]   ;;  %p10471_p11 = por %p10470_p10, %p10469_p9 }
  0x9c   :  { %9294 = vmatpush1.bf16.msra.mxu1 %v9293_v14  ;;  %v9668_v25 = vld [vmem:[#allocation9 + $0x40] ss:$16 sps:$4 sm:$0xff]   ;;  %v9676_v26 = vld [vmem:[#allocation9 + $0x64] ss:$16 sps:$4 sm:$0xff]   ;;  %v9671_v27 = vld [vmem:[#allocation9 + $0x48] ss:$16 sps:$4 sm:$0xff]  }
  0x9d   :  { %8108 = vmatmul.mubr.msk.f32.vlgmr.msra.gmra.mrb[0].mxu0 %vm169_vm0, %v138_v9  ;;  %1191 = vmatprep.subr.bf16.mxu1 %v9661_v17  ;;  %v9679_v28 = vld [vmem:[#allocation9 + $0x6c] ss:$16 sps:$4 sm:$0xff]   ;;  %v9674_v29 = vld [vmem:[#allocation9 + $0x60] ss:$16 sps:$4 sm:$0xff]   ;;  %v9682_v30 = vld [vmem:[#allocation9 + $0x84] ss:$16 sps:$4 sm:$0xff]   ;;  %v149_v17 = vlaneseq  ;;  %p10472_p12 = pnand %p10471_p11, %p10465_p8 }
  0x9e   :  { %1110 = vmatpush1.bf16.msra.mxu0 %v9656_v15  ;;  %v9677_v31 = vld [vmem:[#allocation9 + $0x68] ss:$16 sps:$4 sm:$0xff]   ;;  %v9685_v32 = vld [vmem:[#allocation9 + $0x8c] ss:$16 sps:$4 sm:$0xff]   ;;  %v9680_v33 = vld [vmem:[#allocation9 + $0x80] ss:$16 sps:$4 sm:$0xff]  }
  0x9f   :  { %8109 = vmatmul.mubr.msk.f32.vlgmr.msra.gmra.mrb[0].mxu1 %vm169_vm0, %v138_v9  ;;  %1111 = vmatprep.subr.bf16.mxu0 %v9664_v19  ;;  %v9688_v34 = vld [vmem:[#allocation9 + $0xa4] ss:$16 sps:$4 sm:$0xff]   ;;  %v9683_v35 = vld [vmem:[#allocation9 + $0x88] ss:$16 sps:$4 sm:$0xff]   ;;  %v9691_v36 = vld [vmem:[#allocation9 + $0xac] ss:$16 sps:$4 sm:$0xff]  }
  0xa0   :  { %1192 = vmatpush1.bf16.msra.mxu1 %v9659_v18  ;;  %v9686_v37 = vld [vmem:[#allocation9 + $0xa0] ss:$16 sps:$4 sm:$0xff]   ;;  %v9694_v38 = vld [vmem:[#allocation9 + $0xc4] ss:$16 sps:$4 sm:$0xff]   ;;  %v9689_v39 = vld [vmem:[#allocation9 + $0xa8] ss:$16 sps:$4 sm:$0xff]  }
  0xa1   :  { %1193 = vmatprep.subr.bf16.mxu1 %v9667_v21  ;;  %v9697_v40 = vld [vmem:[#allocation9 + $0xcc] ss:$16 sps:$4 sm:$0xff]   ;;  %v9692_v41 = vld [vmem:[#allocation9 + $0xc0] ss:$16 sps:$4 sm:$0xff]   ;;  %v9700_v42 = vld [vmem:[#allocation9 + $0xe4] ss:$16 sps:$4 sm:$0xff]  }
  0xa2   :  { %1112 = vmatpush1.bf16.msra.mxu0 %v9662_v20  ;;  %v9695_v43 = vld [vmem:[#allocation9 + $0xc8] ss:$16 sps:$4 sm:$0xff]   ;;  %v9703_v44 = vld [vmem:[#allocation9 + $0xec] ss:$16 sps:$4 sm:$0xff]   ;;  %v9698_v45 = vld [vmem:[#allocation9 + $0xe0] ss:$16 sps:$4 sm:$0xff]  }
  0xa3   :  { %1113 = vmatprep.subr.bf16.mxu0 %v9670_v22  ;;  %v9706_v46 = vld [vmem:[#allocation9 + $0x104] ss:$16 sps:$4 sm:$0xff]   ;;  %v9701_v47 = vld [vmem:[#allocation9 + $0xe8] ss:$16 sps:$4 sm:$0xff]   ;;  %v9709_v48 = vld [vmem:[#allocation9 + $0x10c] ss:$16 sps:$4 sm:$0xff]  }
  0xa4   :  { %1194 = vmatpush1.bf16.msra.mxu1 %v9665_v23  ;;  %v9704_v49 = vld [vmem:[#allocation9 + $0x100] ss:$16 sps:$4 sm:$0xff]   ;;  %v9712_v50 = vld [vmem:[#allocation9 + $0x124] ss:$16 sps:$4 sm:$0xff]   ;;  %v9707_v51 = vld [vmem:[#allocation9 + $0x108] ss:$16 sps:$4 sm:$0xff]  }
  0xa5   :  { %1195 = vmatprep.subr.bf16.mxu1 %v9673_v24  ;;  %v9715_v52 = vld [vmem:[#allocation9 + $0x12c] ss:$16 sps:$4 sm:$0xff]   ;;  %v9710_v53 = vld [vmem:[#allocation9 + $0x120] ss:$16 sps:$4 sm:$0xff]   ;;  %v9713_v54 = vld [vmem:[#allocation9 + $0x128] ss:$16 sps:$4 sm:$0xff]  }
  0xa6   :  { %1114 = vmatpush1.bf16.msra.mxu0 %v9668_v25  ;;  %v9718_v55 = vld [vmem:[#allocation9 + $0x144] ss:$16 sps:$4 sm:$0xff]   ;;  %v9716_v56 = vld [vmem:[#allocation9 + $0x140] ss:$16 sps:$4 sm:$0xff]   ;;  %v9721_v57 = vld [vmem:[#allocation9 + $0x14c] ss:$16 sps:$4 sm:$0xff]  }
  0xa7   :  { %1115 = vmatprep.subr.bf16.mxu0 %v9676_v26  ;;  %v9724_v58 = vld [vmem:[#allocation9 + $0x164] ss:$16 sps:$4 sm:$0xff]   ;;  %v9719_v59 = vld [vmem:[#allocation9 + $0x148] ss:$16 sps:$4 sm:$0xff]   ;;  %v9727_v60 = vld [vmem:[#allocation9 + $0x16c] ss:$16 sps:$4 sm:$0xff]  }
  0xa8   :  { %1196 = vmatpush1.bf16.msra.mxu1 %v9671_v27  ;;  %v9722_v61 = vld [vmem:[#allocation9 + $0x160] ss:$16 sps:$4 sm:$0xff]   ;;  %v9730_v62 = vld [vmem:[#allocation9 + $0x184] ss:$16 sps:$4 sm:$0xff]   ;;  %v9725_v63 = vld [vmem:[#allocation9 + $0x168] ss:$16 sps:$4 sm:$0xff]  }
  0xa9   :  { %1197 = vmatprep.subr.bf16.mxu1 %v9679_v28  ;;  %v9733_v0 = vld [vmem:[#allocation9 + $0x18c] ss:$16 sps:$4 sm:$0xff]   ;;  %v9728_v1 = vld [vmem:[#allocation9 + $0x180] ss:$16 sps:$4 sm:$0xff]   ;;  %v9736_v2 = vld [vmem:[#allocation9 + $0x1a4] ss:$16 sps:$4 sm:$0xff]  }
  0xaa   :  { %1116 = vmatpush1.bf16.msra.mxu0 %v9674_v29  ;;  %v9731_v3 = vld [vmem:[#allocation9 + $0x188] ss:$16 sps:$4 sm:$0xff]   ;;  %v9739_v4 = vld [vmem:[#allocation9 + $0x1ac] ss:$16 sps:$4 sm:$0xff]   ;;  %v9734_v5 = vld [vmem:[#allocation9 + $0x1a0] ss:$16 sps:$4 sm:$0xff]  }
  0xab   :  { %1117 = vmatprep.subr.bf16.mxu0 %v9682_v30  ;;  %v9742_v6 = vld [vmem:[#allocation9 + $0x1c4] ss:$16 sps:$4 sm:$0xff]   ;;  %v9737_v7 = vld [vmem:[#allocation9 + $0x1a8] ss:$16 sps:$4 sm:$0xff]   ;;  %v9745_v8 = vld [vmem:[#allocation9 + $0x1cc] ss:$16 sps:$4 sm:$0xff]  }
  0xac   :  { %1198 = vmatpush1.bf16.msra.mxu1 %v9677_v31  ;;  %v9740_v9 = vld [vmem:[#allocation9 + $0x1c0] ss:$16 sps:$4 sm:$0xff]   ;;  %v9743_v10 = vld [vmem:[#allocation9 + $0x1c8] ss:$16 sps:$4 sm:$0xff]   ;;  %v9748_v11 = vld [vmem:[#allocation9 + $0x1e4] ss:$16 sps:$4 sm:$0xff]  }
  0xad   :  { %1199 = vmatprep.subr.bf16.mxu1 %v9685_v32  ;;  %v9751_v12 = vld [vmem:[#allocation9 + $0x1ec] ss:$16 sps:$4 sm:$0xff]   ;;  %v9746_v13 = vld [vmem:[#allocation9 + $0x1e0] ss:$16 sps:$4 sm:$0xff]   ;;  %v9749_v14 = vld [vmem:[#allocation9 + $0x1e8] ss:$16 sps:$4 sm:$0xff]  }
  0xae   :  { %1118 = vmatpush1.bf16.msra.mxu0 %v9680_v33  ;;  %v9754_v15 = vld [vmem:[#allocation9 + $0x204] ss:$16 sps:$4 sm:$0xff]   ;;  %v9757_v16 = vld [vmem:[#allocation9 + $0x20c] ss:$16 sps:$4 sm:$0xff]   ;;  %v10670_v18 = vshrl.u32 %v149_v17, 7 }
  0xaf   :  { %1119 = vmatprep.subr.bf16.mxu0 %v9688_v34  ;;  %v10675_v20 = vld [vmem:[#allocation8] sm:$0xf]  ;;  %v9752_v33 = vld [vmem:[#allocation9 + $0x200] ss:$16 sps:$4 sm:$0xff]   ;;  %v9755_v34 = vld [vmem:[#allocation9 + $0x208] ss:$16 sps:$4 sm:$0xff]  }
  0xb0   :  { %1200 = vmatpush1.bf16.msra.mxu1 %v9683_v35  ;;  %v10673_v19 = vsub.s32 0, %v10670_v18  ;;  %v10678_v21 = vsub.s32 1, %v10670_v18  ;;  %v10681_v22 = vsub.s32 3, %v10670_v18  ;;  %v9821_v17 = vld [vmem:[#allocation9 + $0x368] ss:$16 sps:$4 sm:$0xff]  }
  0xb1   :  { %1201 = vmatprep.subr.bf16.mxu1 %v9691_v36 }
  0xb2   :  { %1120 = vmatpush1.bf16.msra.mxu0 %v9686_v37  ;;  %v152_v23 = vrot.slane %v10675_v20, %v10673_v19  ;;  %v156_v24 = vrot.slane %v10675_v20, %v10678_v21  ;;  %v164_v26 = vrot.slane %v10675_v20, %v10681_v22  ;;  %v9760_v37 = vld [vmem:[#allocation9 + $0x224] ss:$16 sps:$4 sm:$0xff]  }
  0xb3   :  { %1121 = vmatprep.subr.bf16.mxu0 %v9694_v38  ;;  %v9763_v38 = vld [vmem:[#allocation9 + $0x22c] ss:$16 sps:$4 sm:$0xff]  }
  0xb4   :  { %1202 = vmatpush1.bf16.msra.mxu1 %v9689_v39 }
  0xb5   :  { %1203 = vmatprep.subr.bf16.mxu1 %v9697_v40  ;;  %v9758_v40 = vld [vmem:[#allocation9 + $0x220] ss:$16 sps:$4 sm:$0xff]  }
  0xb6   :  { %1122 = vmatpush1.bf16.msra.mxu0 %v9692_v41  ;;  %v9761_v41 = vld [vmem:[#allocation9 + $0x228] ss:$16 sps:$4 sm:$0xff]  }
  0xb7   :  { %1123 = vmatprep.subr.bf16.mxu0 %v9700_v42  ;;  %v9766_v42 = vld [vmem:[#allocation9 + $0x244] ss:$16 sps:$4 sm:$0xff]  }
  0xb8   :  { %1204 = vmatpush1.bf16.msra.mxu1 %v9695_v43  ;;  %v9769_v43 = vld [vmem:[#allocation9 + $0x24c] ss:$16 sps:$4 sm:$0xff]  }
  0xb9   :  { %1205 = vmatprep.subr.bf16.mxu1 %v9703_v44  ;;  %v9764_v44 = vld [vmem:[#allocation9 + $0x240] ss:$16 sps:$4 sm:$0xff]  }
  0xba   :  { %1124 = vmatpush1.bf16.msra.mxu0 %v9698_v45  ;;  %v9767_v45 = vld [vmem:[#allocation9 + $0x248] ss:$16 sps:$4 sm:$0xff]  }
  0xbb   :  { %1125 = vmatprep.subr.bf16.mxu0 %v9706_v46  ;;  %v9772_v46 = vld [vmem:[#allocation9 + $0x264] ss:$16 sps:$4 sm:$0xff]  }
  0xbc   :  { %1206 = vmatpush1.bf16.msra.mxu1 %v9701_v47  ;;  %v9775_v47 = vld [vmem:[#allocation9 + $0x26c] ss:$16 sps:$4 sm:$0xff]  }
  0xbd   :  { %1207 = vmatprep.subr.bf16.mxu1 %v9709_v48  ;;  %v9770_v48 = vld [vmem:[#allocation9 + $0x260] ss:$16 sps:$4 sm:$0xff]  }
  0xbe   :  { %1126 = vmatpush1.bf16.msra.mxu0 %v9704_v49  ;;  %v9773_v49 = vld [vmem:[#allocation9 + $0x268] ss:$16 sps:$4 sm:$0xff]  }
  0xbf   :  { %1127 = vmatprep.subr.bf16.mxu0 %v9712_v50  ;;  %v9778_v50 = vld [vmem:[#allocation9 + $0x284] ss:$16 sps:$4 sm:$0xff]  }
  0xc0   :  { %1208 = vmatpush1.bf16.msra.mxu1 %v9707_v51  ;;  %v9781_v51 = vld [vmem:[#allocation9 + $0x28c] ss:$16 sps:$4 sm:$0xff]  }
  0xc1   :  { %1209 = vmatprep.subr.bf16.mxu1 %v9715_v52  ;;  %v9776_v52 = vld [vmem:[#allocation9 + $0x280] ss:$16 sps:$4 sm:$0xff]  }
  0xc2   :  { %1128 = vmatpush1.bf16.msra.mxu0 %v9710_v53  ;;  %v9779_v53 = vld [vmem:[#allocation9 + $0x288] ss:$16 sps:$4 sm:$0xff]  }
  0xc3   :  { %1129 = vmatprep.subr.bf16.mxu0 %v9718_v55  ;;  %v9787_v55 = vld [vmem:[#allocation9 + $0x2ac] ss:$16 sps:$4 sm:$0xff]  }
  0xc4   :  { %1210 = vmatpush1.bf16.msra.mxu1 %v9713_v54  ;;  %v9784_v54 = vld [vmem:[#allocation9 + $0x2a4] ss:$16 sps:$4 sm:$0xff]  }
  0xc5   :  { %1211 = vmatprep.subr.bf16.mxu1 %v9721_v57  ;;  %v9785_v57 = vld [vmem:[#allocation9 + $0x2a8] ss:$16 sps:$4 sm:$0xff]  }
  0xc6   :  { %1130 = vmatpush1.bf16.msra.mxu0 %v9716_v56  ;;  %v9782_v56 = vld [vmem:[#allocation9 + $0x2a0] ss:$16 sps:$4 sm:$0xff]  }
  0xc7   :  { %1131 = vmatprep.subr.bf16.mxu0 %v9724_v58  ;;  %v9790_v58 = vld [vmem:[#allocation9 + $0x2c4] ss:$16 sps:$4 sm:$0xff]  }
  0xc8   :  { %1212 = vmatpush1.bf16.msra.mxu1 %v9719_v59  ;;  %v9793_v59 = vld [vmem:[#allocation9 + $0x2cc] ss:$16 sps:$4 sm:$0xff]  }
  0xc9   :  { %1213 = vmatprep.subr.bf16.mxu1 %v9727_v60  ;;  %v9788_v60 = vld [vmem:[#allocation9 + $0x2c0] ss:$16 sps:$4 sm:$0xff]  }
  0xca   :  { %1132 = vmatpush1.bf16.msra.mxu0 %v9722_v61  ;;  %v9791_v61 = vld [vmem:[#allocation9 + $0x2c8] ss:$16 sps:$4 sm:$0xff]  }
  0xcb   :  { %1133 = vmatprep.subr.bf16.mxu0 %v9730_v62  ;;  %v9796_v62 = vld [vmem:[#allocation9 + $0x2e4] ss:$16 sps:$4 sm:$0xff]  }
  0xcc   :  { %1214 = vmatpush1.bf16.msra.mxu1 %v9725_v63  ;;  %v9799_v63 = vld [vmem:[#allocation9 + $0x2ec] ss:$16 sps:$4 sm:$0xff]  }
  0xcd   :  { %1215 = vmatprep.subr.bf16.mxu1 %v9733_v0  ;;  %v9794_v0 = vld [vmem:[#allocation9 + $0x2e0] ss:$16 sps:$4 sm:$0xff]  }
  0xce   :  { %1134 = vmatpush1.bf16.msra.mxu0 %v9728_v1  ;;  %v9797_v1 = vld [vmem:[#allocation9 + $0x2e8] ss:$16 sps:$4 sm:$0xff]  }
  0xcf   :  { %1135 = vmatprep.subr.bf16.mxu0 %v9736_v2  ;;  %v9802_v2 = vld [vmem:[#allocation9 + $0x304] ss:$16 sps:$4 sm:$0xff]  }
  0xd0   :  { %1216 = vmatpush1.bf16.msra.mxu1 %v9731_v3  ;;  %v9805_v3 = vld [vmem:[#allocation9 + $0x30c] ss:$16 sps:$4 sm:$0xff]  }
  0xd1   :  { %1217 = vmatprep.subr.bf16.mxu1 %v9739_v4  ;;  %v9800_v4 = vld [vmem:[#allocation9 + $0x300] ss:$16 sps:$4 sm:$0xff]  }
  0xd2   :  { %1136 = vmatpush1.bf16.msra.mxu0 %v9734_v5  ;;  %v9803_v5 = vld [vmem:[#allocation9 + $0x308] ss:$16 sps:$4 sm:$0xff]  }
  0xd3   :  { %1137 = vmatprep.subr.bf16.mxu0 %v9742_v6  ;;  %v9808_v6 = vld [vmem:[#allocation9 + $0x324] ss:$16 sps:$4 sm:$0xff]  }
  0xd4   :  { %1218 = vmatpush1.bf16.msra.mxu1 %v9737_v7  ;;  %v9811_v7 = vld [vmem:[#allocation9 + $0x32c] ss:$16 sps:$4 sm:$0xff]  }
  0xd5   :  { %1219 = vmatprep.subr.bf16.mxu1 %v9745_v8  ;;  %v9806_v8 = vld [vmem:[#allocation9 + $0x320] ss:$16 sps:$4 sm:$0xff]  }
  0xd6   :  { %1138 = vmatpush1.bf16.msra.mxu0 %v9740_v9  ;;  %v9809_v9 = vld [vmem:[#allocation9 + $0x328] ss:$16 sps:$4 sm:$0xff]  }
  0xd7   :  { %1139 = vmatprep.subr.bf16.mxu0 %v9748_v11  ;;  %v9817_v11 = vld [vmem:[#allocation9 + $0x34c] ss:$16 sps:$4 sm:$0xff]  }
  0xd8   :  { %1220 = vmatpush1.bf16.msra.mxu1 %v9743_v10  ;;  %v9814_v10 = vld [vmem:[#allocation9 + $0x344] ss:$16 sps:$4 sm:$0xff]  }
  0xd9   :  { %1221 = vmatprep.subr.bf16.mxu1 %v9751_v12  ;;  %v9812_v12 = vld [vmem:[#allocation9 + $0x340] ss:$16 sps:$4 sm:$0xff]  }
  0xda   :  { %1140 = vmatpush1.bf16.msra.mxu0 %v9746_v13  ;;  %v9815_v13 = vld [vmem:[#allocation9 + $0x348] ss:$16 sps:$4 sm:$0xff]  }
  0xdb   :  { %1150 = vmatprep.subr.bf16.mxu0 %v9754_v15  ;;  %v9823_v15 = vld [vmem:[#allocation9 + $0x36c] ss:$16 sps:$4 sm:$0xff]  }
  0xdc   :  { %1222 = vmatpush1.bf16.msra.mxu1 %v9749_v14  ;;  %v9820_v14 = vld [vmem:[#allocation9 + $0x364] ss:$16 sps:$4 sm:$0xff]  }
  0xdd   :  { %1232 = vmatprep.subr.bf16.mxu1 %v9757_v16  ;;  %v9818_v16 = vld [vmem:[#allocation9 + $0x360] ss:$16 sps:$4 sm:$0xff]  }
 0x170   :  { %v239_v25 = vpop.f32.mrb[0].mxu0 }
 0x171   :  { %v240_v27 = vadd.f32 %v239_v25, %v152_v23  ;;  %v241_v28 = vpop.f32.mrb[1].mxu0  ;;  %v9826_v23 = vld [vmem:[#allocation9 + $0x384] ss:$16 sps:$4 sm:$0xff]   ;;  %v9824_v25 = vld [vmem:[#allocation9 + $0x380] ss:$16 sps:$4 sm:$0xff]  }
 0x172   :  { %v242_v29 = vadd.f32 %v241_v28, %v156_v24  ;;  %v10689_v30 = vpop.f32.mrb[0].mxu1  ;;  %v9829_v24 = vld [vmem:[#allocation9 + $0x38c] ss:$16 sps:$4 sm:$0xff]  }
 0x173   :  { %v312_v31 = vpop.f32.mrb[1].mxu1  ;;  %v315_v36 = vpack.c.bf16 %v240_v27, %v240_v27  ;;  %v9832_v27 = vld [vmem:[#allocation9 + $0x3a4] ss:$16 sps:$4 sm:$0xff]   ;;  %v9835_v28 = vld [vmem:[#allocation9 + $0x3ac] ss:$16 sps:$4 sm:$0xff]  }
 0x174   :  { %v316_v32 = vpack.c.bf16 %v242_v29, %v242_v29  ;;  %v313_v35 = vadd.f32 %v312_v31, %v164_v26  ;;  %v9827_v26 = vld [vmem:[#allocation9 + $0x388] ss:$16 sps:$4 sm:$0xff]   ;;  %v9830_v29 = vld [vmem:[#allocation9 + $0x3a0] ss:$16 sps:$4 sm:$0xff]  }
 0x175   :  { %v9833_v31 = vld [vmem:[#allocation9 + $0x3a8] ss:$16 sps:$4 sm:$0xff]  }
 0x176   :  { %1141 = vmatprep.mubr.bf16.mxu0 %v316_v32  ;;  %1223 = vmatprep.mubr.bf16.mxu1 %v316_v32  ;;  %v318_v39 = vpack.c.bf16 %v313_v35, %v313_v35  ;;  %v10692_v32 = vsub.s32 2, %v10670_v18  ;;  %v9836_v35 = vld [vmem:[#allocation9 + $0x3c0] ss:$16 sps:$4 sm:$0xff]  }
 0x177   :  { %1142 = vmatmul.mubr.bf16.vlgmr.msra.gmra.mrb[4].mxu0 %v315_v36  ;;  %1224 = vmatmul.mubr.bf16.vlgmr.msra.gmra.mrb[4].mxu1 %v315_v36  ;;  %v9839_v36 = vld [vmem:[#allocation9 + $0x3c8] ss:$16 sps:$4 sm:$0xff]  }
 0x178   :  { %1151 = vmatpush1.bf16.msra.mxu0 %v9752_v33  ;;  %1233 = vmatpush1.bf16.msra.mxu1 %v9755_v34  ;;  %v9838_v33 = vld [vmem:[#allocation9 + $0x3c4] ss:$16 sps:$4 sm:$0xff]   ;;  %v9841_v34 = vld [vmem:[#allocation9 + $0x3cc] ss:$16 sps:$4 sm:$0xff]  }
 0x179   :  { %1152 = vmatprep.subr.bf16.mxu0 %v9760_v37  ;;  %1234 = vmatprep.subr.bf16.mxu1 %v9763_v38  ;;  %v160_v37 = vrot.slane %v10675_v20, %v10692_v32  ;;  %v9844_v38 = vld [vmem:[#allocation9 + $0x3e4] ss:$16 sps:$4 sm:$0xff]  }
 0x17a   :  { %1182 = vmatprep.mubr.bf16.mxu0 %v318_v39  ;;  %1264 = vmatprep.mubr.bf16.mxu1 %v318_v39  ;;  %v9847_v39 = vld [vmem:[#allocation9 + $0x3ec] ss:$16 sps:$4 sm:$0xff]   ;;  %v9856_v20 = vld [vmem:[#allocation9 + $0x424] ss:$16 sps:$4 sm:$0xff]  }
 0x17c   :  { %1153 = vmatpush1.bf16.msra.mxu0 %v9758_v40  ;;  %1235 = vmatpush1.bf16.msra.mxu1 %v9761_v41  ;;  %v9842_v40 = vld [vmem:[#allocation9 + $0x3e0] ss:$16 sps:$4 sm:$0xff]   ;;  %v9845_v41 = vld [vmem:[#allocation9 + $0x3e8] ss:$16 sps:$4 sm:$0xff]  }
 0x17d   :  { %1154 = vmatprep.subr.bf16.mxu0 %v9766_v42  ;;  %1236 = vmatprep.subr.bf16.mxu1 %v9769_v43  ;;  %v311_v42 = vadd.f32 %v10689_v30, %v160_v37  ;;  %v9850_v43 = vld [vmem:[#allocation9 + $0x404] ss:$16 sps:$4 sm:$0xff]  }
 0x17e   :  { %v9862_v30 = vld [vmem:[#allocation9 + $0x444] ss:$16 sps:$4 sm:$0xff]  }
 0x17f   :  { %v9928_v37 = vld [vmem:[#allocation9 + $0x5a4] ss:$16 sps:$4 sm:$0xff]  }
 0x180   :  { %1155 = vmatpush1.bf16.msra.mxu0 %v9764_v44  ;;  %1237 = vmatpush1.bf16.msra.mxu1 %v9767_v45  ;;  %v9853_v44 = vld [vmem:[#allocation9 + $0x40c] ss:$16 sps:$4 sm:$0xff]   ;;  %v9848_v45 = vld [vmem:[#allocation9 + $0x400] ss:$16 sps:$4 sm:$0xff]  }
 0x181   :  { %1156 = vmatprep.subr.bf16.mxu0 %v9772_v46  ;;  %1238 = vmatprep.subr.bf16.mxu1 %v9775_v47  ;;  %v9851_v46 = vld [vmem:[#allocation9 + $0x408] ss:$16 sps:$4 sm:$0xff]   ;;  %v317_v47 = vpack.c.bf16 %v311_v42, %v311_v42  ;;  %v9937_v42 = vld [vmem:[#allocation9 + $0x5cc] ss:$16 sps:$4 sm:$0xff]  }
 0x184   :  { %1157 = vmatpush1.bf16.msra.mxu0 %v9770_v48  ;;  %1239 = vmatpush1.bf16.msra.mxu1 %v9773_v49  ;;  %v9859_v48 = vld [vmem:[#allocation9 + $0x42c] ss:$16 sps:$4 sm:$0xff]   ;;  %v9854_v49 = vld [vmem:[#allocation9 + $0x420] ss:$16 sps:$4 sm:$0xff]  }
 0x185   :  { %1158 = vmatprep.subr.bf16.mxu0 %v9778_v50  ;;  %1240 = vmatprep.subr.bf16.mxu1 %v9781_v51  ;;  %v9857_v50 = vld [vmem:[#allocation9 + $0x428] ss:$16 sps:$4 sm:$0xff]   ;;  %v9865_v51 = vld [vmem:[#allocation9 + $0x44c] ss:$16 sps:$4 sm:$0xff]  }
 0x188   :  { %1159 = vmatpush1.bf16.msra.mxu0 %v9776_v52  ;;  %1241 = vmatpush1.bf16.msra.mxu1 %v9779_v53  ;;  %v9860_v52 = vld [vmem:[#allocation9 + $0x440] ss:$16 sps:$4 sm:$0xff]   ;;  %v9863_v53 = vld [vmem:[#allocation9 + $0x448] ss:$16 sps:$4 sm:$0xff]  }
 0x189   :  { %1160 = vmatprep.subr.bf16.mxu0 %v9784_v54  ;;  %1242 = vmatprep.subr.bf16.mxu1 %v9787_v55  ;;  %v9868_v54 = vld [vmem:[#allocation9 + $0x464] ss:$16 sps:$4 sm:$0xff]   ;;  %v9871_v55 = vld [vmem:[#allocation9 + $0x46c] ss:$16 sps:$4 sm:$0xff]  }
 0x18c   :  { %1161 = vmatpush1.bf16.msra.mxu0 %v9782_v56  ;;  %1243 = vmatpush1.bf16.msra.mxu1 %v9785_v57  ;;  %v9866_v56 = vld [vmem:[#allocation9 + $0x460] ss:$16 sps:$4 sm:$0xff]   ;;  %v9869_v57 = vld [vmem:[#allocation9 + $0x468] ss:$16 sps:$4 sm:$0xff]  }
 0x18d   :  { %1162 = vmatprep.subr.bf16.mxu0 %v9790_v58  ;;  %1244 = vmatprep.subr.bf16.mxu1 %v9793_v59  ;;  %v9874_v58 = vld [vmem:[#allocation9 + $0x484] ss:$16 sps:$4 sm:$0xff]   ;;  %v9877_v59 = vld [vmem:[#allocation9 + $0x48c] ss:$16 sps:$4 sm:$0xff]  }
 0x190   :  { %1163 = vmatpush1.bf16.msra.mxu0 %v9788_v60  ;;  %1245 = vmatpush1.bf16.msra.mxu1 %v9791_v61  ;;  %v9872_v60 = vld [vmem:[#allocation9 + $0x480] ss:$16 sps:$4 sm:$0xff]   ;;  %v9875_v61 = vld [vmem:[#allocation9 + $0x488] ss:$16 sps:$4 sm:$0xff]  }
 0x191   :  { %1164 = vmatprep.subr.bf16.mxu0 %v9796_v62  ;;  %1246 = vmatprep.subr.bf16.mxu1 %v9799_v63  ;;  %v9880_v62 = vld [vmem:[#allocation9 + $0x4a4] ss:$16 sps:$4 sm:$0xff]   ;;  %v9883_v63 = vld [vmem:[#allocation9 + $0x4ac] ss:$16 sps:$4 sm:$0xff]  }
 0x194   :  { %1165 = vmatpush1.bf16.msra.mxu0 %v9794_v0  ;;  %1247 = vmatpush1.bf16.msra.mxu1 %v9797_v1  ;;  %v9878_v0 = vld [vmem:[#allocation9 + $0x4a0] ss:$16 sps:$4 sm:$0xff]   ;;  %v9881_v1 = vld [vmem:[#allocation9 + $0x4a8] ss:$16 sps:$4 sm:$0xff]  }
 0x195   :  { %1166 = vmatprep.subr.bf16.mxu0 %v9802_v2  ;;  %1248 = vmatprep.subr.bf16.mxu1 %v9805_v3  ;;  %v9886_v2 = vld [vmem:[#allocation9 + $0x4c4] ss:$16 sps:$4 sm:$0xff]   ;;  %v9889_v3 = vld [vmem:[#allocation9 + $0x4cc] ss:$16 sps:$4 sm:$0xff]  }
 0x198   :  { %1167 = vmatpush1.bf16.msra.mxu0 %v9800_v4  ;;  %1249 = vmatpush1.bf16.msra.mxu1 %v9803_v5  ;;  %v9884_v4 = vld [vmem:[#allocation9 + $0x4c0] ss:$16 sps:$4 sm:$0xff]   ;;  %v9887_v5 = vld [vmem:[#allocation9 + $0x4c8] ss:$16 sps:$4 sm:$0xff]  }
 0x199   :  { %1168 = vmatprep.subr.bf16.mxu0 %v9808_v6  ;;  %1250 = vmatprep.subr.bf16.mxu1 %v9811_v7  ;;  %v9892_v6 = vld [vmem:[#allocation9 + $0x4e4] ss:$16 sps:$4 sm:$0xff]   ;;  %v9895_v7 = vld [vmem:[#allocation9 + $0x4ec] ss:$16 sps:$4 sm:$0xff]  }
 0x19c   :  { %1169 = vmatpush1.bf16.msra.mxu0 %v9806_v8  ;;  %1251 = vmatpush1.bf16.msra.mxu1 %v9809_v9  ;;  %v9890_v8 = vld [vmem:[#allocation9 + $0x4e0] ss:$16 sps:$4 sm:$0xff]   ;;  %v9893_v9 = vld [vmem:[#allocation9 + $0x4e8] ss:$16 sps:$4 sm:$0xff]  }
 0x19d   :  { %1170 = vmatprep.subr.bf16.mxu0 %v9814_v10  ;;  %1252 = vmatprep.subr.bf16.mxu1 %v9817_v11  ;;  %v9898_v10 = vld [vmem:[#allocation9 + $0x504] ss:$16 sps:$4 sm:$0xff]   ;;  %v9901_v11 = vld [vmem:[#allocation9 + $0x50c] ss:$16 sps:$4 sm:$0xff]  }
 0x1a0   :  { %1171 = vmatpush1.bf16.msra.mxu0 %v9812_v12  ;;  %1253 = vmatpush1.bf16.msra.mxu1 %v9815_v13  ;;  %v9896_v12 = vld [vmem:[#allocation9 + $0x500] ss:$16 sps:$4 sm:$0xff]   ;;  %v9899_v13 = vld [vmem:[#allocation9 + $0x508] ss:$16 sps:$4 sm:$0xff]  }
 0x1a1   :  { %1172 = vmatprep.subr.bf16.mxu0 %v9820_v14  ;;  %1254 = vmatprep.subr.bf16.mxu1 %v9823_v15  ;;  %v9904_v14 = vld [vmem:[#allocation9 + $0x524] ss:$16 sps:$4 sm:$0xff]   ;;  %v9907_v15 = vld [vmem:[#allocation9 + $0x52c] ss:$16 sps:$4 sm:$0xff]  }
 0x1a4   :  { %1173 = vmatpush1.bf16.msra.mxu0 %v9818_v16  ;;  %1255 = vmatpush1.bf16.msra.mxu1 %v9821_v17  ;;  %v9902_v16 = vld [vmem:[#allocation9 + $0x520] ss:$16 sps:$4 sm:$0xff]   ;;  %v9905_v17 = vld [vmem:[#allocation9 + $0x528] ss:$16 sps:$4 sm:$0xff]  }
 0x1a5   :  { %1174 = vmatprep.subr.bf16.mxu0 %v9826_v23  ;;  %1256 = vmatprep.subr.bf16.mxu1 %v9829_v24  ;;  %v9910_v23 = vld [vmem:[#allocation9 + $0x544] ss:$16 sps:$4 sm:$0xff]   ;;  %v9913_v24 = vld [vmem:[#allocation9 + $0x54c] ss:$16 sps:$4 sm:$0xff]  }
 0x1a8   :  { %1175 = vmatpush1.bf16.msra.mxu0 %v9824_v25  ;;  %1257 = vmatpush1.bf16.msra.mxu1 %v9827_v26  ;;  %v9908_v25 = vld [vmem:[#allocation9 + $0x540] ss:$16 sps:$4 sm:$0xff]   ;;  %v9911_v26 = vld [vmem:[#allocation9 + $0x548] ss:$16 sps:$4 sm:$0xff]  }
 0x1a9   :  { %1176 = vmatprep.subr.bf16.mxu0 %v9832_v27  ;;  %1258 = vmatprep.subr.bf16.mxu1 %v9835_v28  ;;  %v9916_v27 = vld [vmem:[#allocation9 + $0x564] ss:$16 sps:$4 sm:$0xff]   ;;  %v9919_v28 = vld [vmem:[#allocation9 + $0x56c] ss:$16 sps:$4 sm:$0xff]  }
 0x1ac   :  { %1177 = vmatpush1.bf16.msra.mxu0 %v9830_v29  ;;  %1259 = vmatpush1.bf16.msra.mxu1 %v9833_v31  ;;  %v9914_v29 = vld [vmem:[#allocation9 + $0x560] ss:$16 sps:$4 sm:$0xff]   ;;  %v9917_v31 = vld [vmem:[#allocation9 + $0x568] ss:$16 sps:$4 sm:$0xff]  }
 0x1ad   :  { %1178 = vmatprep.subr.bf16.mxu0 %v9838_v33  ;;  %1260 = vmatprep.subr.bf16.mxu1 %v9841_v34  ;;  %v9920_v33 = vld [vmem:[#allocation9 + $0x580] ss:$16 sps:$4 sm:$0xff]   ;;  %v9922_v34 = vld [vmem:[#allocation9 + $0x584] ss:$16 sps:$4 sm:$0xff]  }
 0x1b0   :  { %1179 = vmatpush1.bf16.msra.mxu0 %v9836_v35  ;;  %1261 = vmatpush1.bf16.msra.mxu1 %v9839_v36  ;;  %v9923_v35 = vld [vmem:[#allocation9 + $0x588] ss:$16 sps:$4 sm:$0xff]   ;;  %v9925_v36 = vld [vmem:[#allocation9 + $0x58c] ss:$16 sps:$4 sm:$0xff]  }
 0x1b1   :  { %1180 = vmatprep.subr.bf16.mxu0 %v9844_v38  ;;  %1262 = vmatprep.subr.bf16.mxu1 %v9847_v39  ;;  %v9931_v38 = vld [vmem:[#allocation9 + $0x5ac] ss:$16 sps:$4 sm:$0xff]   ;;  %v9926_v39 = vld [vmem:[#allocation9 + $0x5a0] ss:$16 sps:$4 sm:$0xff]  }
 0x1b4   :  { %1181 = vmatpush1.bf16.msra.mxu0 %v9842_v40  ;;  %1263 = vmatpush1.bf16.msra.mxu1 %v9845_v41  ;;  %v9929_v40 = vld [vmem:[#allocation9 + $0x5a8] ss:$16 sps:$4 sm:$0xff]   ;;  %v9934_v41 = vld [vmem:[#allocation9 + $0x5c4] ss:$16 sps:$4 sm:$0xff]  }
 0x1b5   :  { %2105 = vmatprep.subr.bf16.mxu0 %v9850_v43  ;;  %2187 = vmatprep.subr.bf16.mxu1 %v9853_v44  ;;  %v9932_v43 = vld [vmem:[#allocation9 + $0x5c0] ss:$16 sps:$4 sm:$0xff]   ;;  %v9935_v44 = vld [vmem:[#allocation9 + $0x5c8] ss:$16 sps:$4 sm:$0xff]  }
 0x1b7   :  { %1183 = vmatmul.mubr.bf16.vlgmr.msra.gmra.mrb[4].mxu0 %v317_v47  ;;  %1265 = vmatmul.mubr.bf16.vlgmr.msra.gmra.mrb[4].mxu1 %v317_v47  ;;  %v9938_v47 = vld [vmem:[#allocation9 + $0x5e0] ss:$16 sps:$4 sm:$0xff]  }
 0x1b8   :  { %2106 = vmatpush1.bf16.msra.mxu0 %v9848_v45  ;;  %2188 = vmatpush1.bf16.msra.mxu1 %v9851_v46  ;;  %v9940_v45 = vld [vmem:[#allocation9 + $0x5e4] ss:$16 sps:$4 sm:$0xff]   ;;  %v9943_v46 = vld [vmem:[#allocation9 + $0x5ec] ss:$16 sps:$4 sm:$0xff]  }
 0x1b9   :  { %2107 = vmatprep.subr.bf16.mxu0 %v9856_v20  ;;  %2189 = vmatprep.subr.bf16.mxu1 %v9859_v48  ;;  %v9941_v20 = vld [vmem:[#allocation9 + $0x5e8] ss:$16 sps:$4 sm:$0xff]   ;;  %v9946_v48 = vld [vmem:[#allocation9 + $0x604] ss:$16 sps:$4 sm:$0xff]  }
 0x1bc   :  { %2108 = vmatpush1.bf16.msra.mxu0 %v9854_v49  ;;  %2190 = vmatpush1.bf16.msra.mxu1 %v9857_v50  ;;  %v9949_v49 = vld [vmem:[#allocation9 + $0x60c] ss:$16 sps:$4 sm:$0xff]   ;;  %v10697_v50 = vld [vmem:[#allocation11] sm:$0xf] }
 0x1bd   :  { %2109 = vmatprep.subr.bf16.mxu0 %v9862_v30  ;;  %2191 = vmatprep.subr.bf16.mxu1 %v9865_v51  ;;  %v452_v30 = vrot.slane %v10697_v50, %v10673_v19  ;;  %v456_v51 = vrot.slane %v10697_v50, %v10678_v21 }
 0x1c0   :  { %2110 = vmatpush1.bf16.msra.mxu0 %v9860_v52  ;;  %2192 = vmatpush1.bf16.msra.mxu1 %v9863_v53  ;;  %v464_v52 = vrot.slane %v10697_v50, %v10681_v22 }
 0x1c1   :  { %2111 = vmatprep.subr.bf16.mxu0 %v9868_v54  ;;  %2193 = vmatprep.subr.bf16.mxu1 %v9871_v55 }
 0x1c4   :  { %2112 = vmatpush1.bf16.msra.mxu0 %v9866_v56  ;;  %2194 = vmatpush1.bf16.msra.mxu1 %v9869_v57 }
 0x1c5   :  { %2113 = vmatprep.subr.bf16.mxu0 %v9874_v58  ;;  %2195 = vmatprep.subr.bf16.mxu1 %v9877_v59 }
 0x1c8   :  { %2114 = vmatpush1.bf16.msra.mxu0 %v9872_v60  ;;  %2196 = vmatpush1.bf16.msra.mxu1 %v9875_v61 }
 0x1c9   :  { %2115 = vmatprep.subr.bf16.mxu0 %v9880_v62  ;;  %2197 = vmatprep.subr.bf16.mxu1 %v9883_v63 }
 0x1cc   :  { %2116 = vmatpush1.bf16.msra.mxu0 %v9878_v0  ;;  %2198 = vmatpush1.bf16.msra.mxu1 %v9881_v1 }
 0x1cd   :  { %2117 = vmatprep.subr.bf16.mxu0 %v9886_v2  ;;  %2199 = vmatprep.subr.bf16.mxu1 %v9889_v3 }
 0x1d0   :  { %2118 = vmatpush1.bf16.msra.mxu0 %v9884_v4  ;;  %2200 = vmatpush1.bf16.msra.mxu1 %v9887_v5 }
 0x1d1   :  { %2119 = vmatprep.subr.bf16.mxu0 %v9892_v6  ;;  %2201 = vmatprep.subr.bf16.mxu1 %v9895_v7 }
 0x1d4   :  { %2120 = vmatpush1.bf16.msra.mxu0 %v9890_v8  ;;  %2202 = vmatpush1.bf16.msra.mxu1 %v9893_v9 }
 0x1d5   :  { %2121 = vmatprep.subr.bf16.mxu0 %v9898_v10  ;;  %2203 = vmatprep.subr.bf16.mxu1 %v9901_v11 }
 0x1d8   :  { %2122 = vmatpush1.bf16.msra.mxu0 %v9896_v12  ;;  %2204 = vmatpush1.bf16.msra.mxu1 %v9899_v13 }
 0x1d9   :  { %2123 = vmatprep.subr.bf16.mxu0 %v9904_v14  ;;  %2205 = vmatprep.subr.bf16.mxu1 %v9907_v15 }
 0x1dc   :  { %2124 = vmatpush1.bf16.msra.mxu0 %v9902_v16  ;;  %2206 = vmatpush1.bf16.msra.mxu1 %v9905_v17 }
 0x1dd   :  { %2125 = vmatprep.subr.bf16.mxu0 %v9910_v23  ;;  %2207 = vmatprep.subr.bf16.mxu1 %v9913_v24 }
 0x1e0   :  { %2126 = vmatpush1.bf16.msra.mxu0 %v9908_v25  ;;  %2208 = vmatpush1.bf16.msra.mxu1 %v9911_v26 }
 0x1e1   :  { %2127 = vmatprep.subr.bf16.mxu0 %v9916_v27  ;;  %2209 = vmatprep.subr.bf16.mxu1 %v9919_v28 }
 0x1e4   :  { %2128 = vmatpush1.bf16.msra.mxu0 %v9914_v29  ;;  %2210 = vmatpush1.bf16.msra.mxu1 %v9917_v31 }
 0x1e5   :  { %2129 = vmatprep.subr.bf16.mxu0 %v9922_v34  ;;  %2211 = vmatprep.subr.bf16.mxu1 %v9925_v36  ;;  %v9947_v36 = vld [vmem:[#allocation9 + $0x608] ss:$16 sps:$4 sm:$0xff]  }
 0x1e8   :  { %2130 = vmatpush1.bf16.msra.mxu0 %v9920_v33  ;;  %2212 = vmatpush1.bf16.msra.mxu1 %v9923_v35  ;;  %v9944_v35 = vld [vmem:[#allocation9 + $0x600] ss:$16 sps:$4 sm:$0xff]  }
 0x1e9   :  { %2131 = vmatprep.subr.bf16.mxu0 %v9928_v37  ;;  %2213 = vmatprep.subr.bf16.mxu1 %v9931_v38  ;;  %v9952_v38 = vld [vmem:[#allocation9 + $0x624] ss:$16 sps:$4 sm:$0xff]  }
 0x1ec   :  { %2132 = vmatpush1.bf16.msra.mxu0 %v9926_v39  ;;  %2214 = vmatpush1.bf16.msra.mxu1 %v9929_v40  ;;  %v9955_v39 = vld [vmem:[#allocation9 + $0x62c] ss:$16 sps:$4 sm:$0xff]  }
 0x1ed   :  { %2133 = vmatprep.subr.bf16.mxu0 %v9934_v41  ;;  %2215 = vmatprep.subr.bf16.mxu1 %v9937_v42  ;;  %v9950_v41 = vld [vmem:[#allocation9 + $0x620] ss:$16 sps:$4 sm:$0xff]   ;;  %v9953_v42 = vld [vmem:[#allocation9 + $0x628] ss:$16 sps:$4 sm:$0xff]  }
 0x1f0   :  { %2134 = vmatpush1.bf16.msra.mxu0 %v9932_v43  ;;  %2216 = vmatpush1.bf16.msra.mxu1 %v9935_v44  ;;  %v9958_v43 = vld [vmem:[#allocation9 + $0x644] ss:$16 sps:$4 sm:$0xff]   ;;  %v9961_v44 = vld [vmem:[#allocation9 + $0x64c] ss:$16 sps:$4 sm:$0xff]  }
 0x1f1   :  { %2135 = vmatprep.subr.bf16.mxu0 %v9940_v45  ;;  %2217 = vmatprep.subr.bf16.mxu1 %v9943_v46  ;;  %v9956_v45 = vld [vmem:[#allocation9 + $0x640] ss:$16 sps:$4 sm:$0xff]   ;;  %v9959_v46 = vld [vmem:[#allocation9 + $0x648] ss:$16 sps:$4 sm:$0xff]  }
 0x1f4   :  { %2136 = vmatpush1.bf16.msra.mxu0 %v9938_v47  ;;  %2218 = vmatpush1.bf16.msra.mxu1 %v9941_v20  ;;  %v9964_v47 = vld [vmem:[#allocation9 + $0x664] ss:$16 sps:$4 sm:$0xff]   ;;  %v9967_v20 = vld [vmem:[#allocation9 + $0x66c] ss:$16 sps:$4 sm:$0xff]  }
 0x1f5   :  { %2146 = vmatprep.subr.bf16.mxu0 %v9946_v48  ;;  %2228 = vmatprep.subr.bf16.mxu1 %v9949_v49  ;;  %v9962_v48 = vld [vmem:[#allocation9 + $0x660] ss:$16 sps:$4 sm:$0xff]   ;;  %v9965_v49 = vld [vmem:[#allocation9 + $0x668] ss:$16 sps:$4 sm:$0xff]  }
 0x28a   :  { %v1184_v53 = vpop.f32.mrb[4].mxu0  ;;  %v10705_v54 = vpop.f32.mrb[4].mxu1 }
 0x28b   :  { %v9551_v55 = vadd.f32 %v1184_v53, %v452_v30  ;;  %v1186_v56 = vpop.f32.mrb[5].mxu0  ;;  %v1268_v57 = vpop.f32.mrb[5].mxu1  ;;  %v9970_v30 = vld [vmem:[#allocation9 + $0x684] ss:$16 sps:$4 sm:$0xff]   ;;  %v9968_v53 = vld [vmem:[#allocation9 + $0x680] ss:$16 sps:$4 sm:$0xff]  }
 0x28c   :  { %v9552_v58 = vadd.f32 %v1186_v56, %v456_v51  ;;  %v9554_v59 = vadd.f32 %v1268_v57, %v464_v52  ;;  %v1188_v60 = vpop.f32.mrb[6].mxu0  ;;  %v1270_v61 = vpop.f32.mrb[6].mxu1  ;;  %v9973_v51 = vld [vmem:[#allocation9 + $0x68c] ss:$16 sps:$4 sm:$0xff]   ;;  %v460_v52 = vrot.slane %v10697_v50, %v10692_v32  ;;  %v9976_v56 = vld [vmem:[#allocation9 + $0x6a4] ss:$16 sps:$4 sm:$0xff]  }
 0x28d   :  { %v1277_v62 = vmul.f32 %v9551_v55, %v9551_v55  ;;  %v1189_v63 = vpop.f32.mrb[7].mxu0  ;;  %v1271_v0 = vpop.f32.mrb[7].mxu1  ;;  %v1273_v23 = vmul.f32 0.5, %v9551_v55  ;;  %v9979_v57 = vld [vmem:[#allocation9 + $0x6ac] ss:$16 sps:$4 sm:$0xff]  }
 0x28e   :  { %v1278_v1 = vmul.f32 %v9552_v58, %v9552_v58  ;;  %v1280_v2 = vmul.f32 %v9554_v59, %v9554_v59  ;;  %v1274_v25 = vmul.f32 0.5, %v9552_v58  ;;  %v1276_v28 = vmul.f32 0.5, %v9554_v59  ;;  %v9977_v60 = vld [vmem:[#allocation9 + $0x6a8] ss:$16 sps:$4 sm:$0xff]   ;;  %v9982_v61 = vld [vmem:[#allocation9 + $0x6c4] ss:$16 sps:$4 sm:$0xff]  }
 0x28f   :  { %v1281_v3 = vmul.f32 %v9551_v55, %v1277_v62  ;;  %v9985_v62 = vld [vmem:[#allocation9 + $0x6cc] ss:$16 sps:$4 sm:$0xff]   ;;  %v9980_v63 = vld [vmem:[#allocation9 + $0x6c0] ss:$16 sps:$4 sm:$0xff]   ;;  %v9983_v0 = vld [vmem:[#allocation9 + $0x6c8] ss:$16 sps:$4 sm:$0xff]  }
 0x290   :  { %v1282_v4 = vmul.f32 %v9552_v58, %v1278_v1  ;;  %v1284_v5 = vmul.f32 %v9554_v59, %v1280_v2  ;;  %v9988_v1 = vld [vmem:[#allocation9 + $0x6e4] ss:$16 sps:$4 sm:$0xff]  }
 0x291   :  { %v1285_v6 = vmul.f32 0.044715, %v1281_v3  ;;  %v9986_v3 = vld [vmem:[#allocation9 + $0x6e0] ss:$16 sps:$4 sm:$0xff]  }
 0x292   :  { %v1286_v7 = vmul.f32 0.044715, %v1282_v4  ;;  %v1288_v8 = vmul.f32 0.044715, %v1284_v5  ;;  %v9989_v4 = vld [vmem:[#allocation9 + $0x6e8] ss:$16 sps:$4 sm:$0xff]  }
 0x293   :  { %v1289_v9 = vadd.f32 %v9551_v55, %v1285_v6  ;;  %v9971_v55 = vld [vmem:[#allocation9 + $0x688] ss:$16 sps:$4 sm:$0xff]   ;;  %v9994_v5 = vld [vmem:[#allocation9 + $0x704] ss:$16 sps:$4 sm:$0xff]   ;;  %v9997_v6 = vld [vmem:[#allocation9 + $0x70c] ss:$16 sps:$4 sm:$0xff]  }
 0x294   :  { %v1290_v10 = vadd.f32 %v9552_v58, %v1286_v7  ;;  %v1292_v11 = vadd.f32 %v9554_v59, %v1288_v8  ;;  %v10710_v58 = vadd.f32 %v10705_v54, %v460_v52  ;;  %v9974_v59 = vld [vmem:[#allocation9 + $0x6a0] ss:$16 sps:$4 sm:$0xff]   ;;  %v9991_v54 = vld [vmem:[#allocation9 + $0x6ec] ss:$16 sps:$4 sm:$0xff]  }
 0x295   :  { %v1293_v12 = vmul.f32 0.7978846, %v1289_v9  ;;  %v9992_v8 = vld [vmem:[#allocation9 + $0x700] ss:$16 sps:$4 sm:$0xff]   ;;  %v9995_v9 = vld [vmem:[#allocation9 + $0x708] ss:$16 sps:$4 sm:$0xff]  }
 0x296   :  { %v1294_v13 = vmul.f32 0.7978846, %v1290_v10  ;;  %v1296_v14 = vmul.f32 0.7978846, %v1292_v11  ;;  %v1279_v50 = vmul.f32 %v10710_v58, %v10710_v58  ;;  %v10000_v10 = vld [vmem:[#allocation9 + $0x724] ss:$16 sps:$4 sm:$0xff]  }
 0x297   :  { %10232 = vtanh.f32 %v1293_v12  ;;  %v10003_v11 = vld [vmem:[#allocation9 + $0x72c] ss:$16 sps:$4 sm:$0xff]   ;;  %v10040_v52 = vld [vmem:[#allocation9 + $0x800] ss:$16 sps:$4 sm:$0xff]  }
 0x298   :  { %10234 = vtanh.f32 %v1294_v13  ;;  %v1283_v2 = vmul.f32 %v10710_v58, %v1279_v50  ;;  %v9998_v13 = vld [vmem:[#allocation9 + $0x720] ss:$16 sps:$4 sm:$0xff]   ;;  %v10055_v50 = vld [vmem:[#allocation9 + $0x848] ss:$16 sps:$4 sm:$0xff]  }
 0x299   :  { %10236 = vtanh.f32 %v1296_v14  ;;  %v10001_v14 = vld [vmem:[#allocation9 + $0x728] ss:$16 sps:$4 sm:$0xff]  }
 0x29a   :  { %v1287_v7 = vmul.f32 0.044715, %v1283_v2  ;;  %v10066_v2 = vld [vmem:[#allocation9 + $0x884] ss:$16 sps:$4 sm:$0xff]  }
 0x29c   :  { %v1291_v12 = vadd.f32 %v10710_v58, %v1287_v7  ;;  %v10075_v7 = vld [vmem:[#allocation9 + $0x8ac] ss:$16 sps:$4 sm:$0xff]  }
 0x2a1   :  { %v10233_v15 = vpop.eup %10232 }
 0x2a2   :  { %v1301_v16 = vadd.f32 1.0, %v10233_v15  ;;  %v10235_v17 = vpop.eup %10234  ;;  %v10006_v15 = vld [vmem:[#allocation9 + $0x744] ss:$16 sps:$4 sm:$0xff]  }
 0x2a3   :  { %v10237_v24 = vpop.eup %10236  ;;  %v1302_v26 = vadd.f32 1.0, %v10235_v17  ;;  %v1295_v17 = vmul.f32 0.7978846, %v1291_v12  ;;  %v10076_v12 = vld [vmem:[#allocation9 + $0x8c0] ss:$16 sps:$4 sm:$0xff]  }
 0x2a4   :  { %v1305_v27 = vmul.f32 %v1301_v16, %v1273_v23  ;;  %v1304_v29 = vadd.f32 1.0, %v10237_v24  ;;  %v10009_v16 = vld [vmem:[#allocation9 + $0x74c] ss:$16 sps:$4 sm:$0xff]   ;;  %v10004_v23 = vld [vmem:[#allocation9 + $0x740] ss:$16 sps:$4 sm:$0xff]  }
 0x2a5   :  { %v1306_v31 = vmul.f32 %v1302_v26, %v1274_v25  ;;  %v10007_v24 = vld [vmem:[#allocation9 + $0x748] ss:$16 sps:$4 sm:$0xff]   ;;  %v10012_v25 = vld [vmem:[#allocation9 + $0x764] ss:$16 sps:$4 sm:$0xff]   ;;  %v10015_v26 = vld [vmem:[#allocation9 + $0x76c] ss:$16 sps:$4 sm:$0xff]   ;;  %10238 = vtanh.f32 %v1295_v17 }
 0x2a6   :  { %v1308_v33 = vmul.f32 %v1304_v29, %v1276_v28  ;;  %v1309_v37 = vpack.c.bf16 %v1305_v27, %v1305_v27  ;;  %v10010_v27 = vld [vmem:[#allocation9 + $0x760] ss:$16 sps:$4 sm:$0xff]   ;;  %v10013_v28 = vld [vmem:[#allocation9 + $0x768] ss:$16 sps:$4 sm:$0xff]   ;;  %v10018_v29 = vld [vmem:[#allocation9 + $0x784] ss:$16 sps:$4 sm:$0xff]  }
 0x2a7   :  { %v1310_v34 = vpack.c.bf16 %v1306_v31, %v1306_v31  ;;  %v10021_v31 = vld [vmem:[#allocation9 + $0x78c] ss:$16 sps:$4 sm:$0xff]   ;;  %v10085_v17 = vld [vmem:[#allocation9 + $0x8e8] ss:$16 sps:$4 sm:$0xff]  }
 0x2a8   :  { %v1312_v40 = vpack.c.bf16 %v1308_v33, %v1308_v33  ;;  %v10016_v33 = vld [vmem:[#allocation9 + $0x780] ss:$16 sps:$4 sm:$0xff]  }
 0x2a9   :  { %2137 = vmatprep.mubr.bf16.mxu0 %v1310_v34  ;;  %2219 = vmatprep.mubr.bf16.mxu1 %v1310_v34  ;;  %v10019_v34 = vld [vmem:[#allocation9 + $0x788] ss:$16 sps:$4 sm:$0xff]  }
 0x2aa   :  { %2138 = vmatmul.mubr.bf16.vlgmr.msra.gmra.mrb[8].mxu0 %v1309_v37  ;;  %2220 = vmatmul.mubr.bf16.vlgmr.msra.gmra.mrb[8].mxu1 %v1309_v37  ;;  %v10022_v37 = vld [vmem:[#allocation9 + $0x7a0] ss:$16 sps:$4 sm:$0xff]  }
 0x2ab   :  { %2147 = vmatpush1.bf16.msra.mxu0 %v9944_v35  ;;  %2229 = vmatpush1.bf16.msra.mxu1 %v9947_v36  ;;  %v10024_v35 = vld [vmem:[#allocation9 + $0x7a4] ss:$16 sps:$4 sm:$0xff]   ;;  %v10027_v36 = vld [vmem:[#allocation9 + $0x7ac] ss:$16 sps:$4 sm:$0xff]  }
 0x2ac   :  { %2178 = vmatprep.mubr.bf16.mxu0 %v1312_v40  ;;  %2260 = vmatprep.mubr.bf16.mxu1 %v1312_v40  ;;  %v10033_v40 = vld [vmem:[#allocation9 + $0x7cc] ss:$16 sps:$4 sm:$0xff]  }
 0x2ad   :  { %2148 = vmatprep.subr.bf16.mxu0 %v9952_v38  ;;  %2230 = vmatprep.subr.bf16.mxu1 %v9955_v39  ;;  %v10025_v38 = vld [vmem:[#allocation9 + $0x7a8] ss:$16 sps:$4 sm:$0xff]   ;;  %v10030_v39 = vld [vmem:[#allocation9 + $0x7c4] ss:$16 sps:$4 sm:$0xff]  }
 0x2af   :  { %2149 = vmatpush1.bf16.msra.mxu0 %v9950_v41  ;;  %2231 = vmatpush1.bf16.msra.mxu1 %v9953_v42  ;;  %v10239_v41 = vpop.eup %10238  ;;  %v10028_v42 = vld [vmem:[#allocation9 + $0x7c0] ss:$16 sps:$4 sm:$0xff]  }
 0x2b0   :  { %2150 = vmatprep.subr.bf16.mxu0 %v9958_v43  ;;  %2232 = vmatprep.subr.bf16.mxu1 %v9961_v44  ;;  %v10031_v43 = vld [vmem:[#allocation9 + $0x7c8] ss:$16 sps:$4 sm:$0xff]   ;;  %v10036_v44 = vld [vmem:[#allocation9 + $0x7e4] ss:$16 sps:$4 sm:$0xff]  }
 0x2b3   :  { %2151 = vmatpush1.bf16.msra.mxu0 %v9956_v45  ;;  %2233 = vmatpush1.bf16.msra.mxu1 %v9959_v46  ;;  %v10039_v45 = vld [vmem:[#allocation9 + $0x7ec] ss:$16 sps:$4 sm:$0xff]   ;;  %v1303_v46 = vadd.f32 1.0, %v10239_v41  ;;  %v10112_v41 = vld [vmem:[#allocation9 + $0x980] ss:$16 sps:$4 sm:$0xff]  }
 0x2b4   :  { %2152 = vmatprep.subr.bf16.mxu0 %v9964_v47  ;;  %2234 = vmatprep.subr.bf16.mxu1 %v9967_v20  ;;  %v1275_v47 = vmul.f32 0.5, %v10710_v58  ;;  %v10034_v20 = vld [vmem:[#allocation9 + $0x7e0] ss:$16 sps:$4 sm:$0xff]  }
 0x2b5   :  { %v10046_v58 = vld [vmem:[#allocation9 + $0x820] ss:$16 sps:$4 sm:$0xff]  }
 0x2b7   :  { %2153 = vmatpush1.bf16.msra.mxu0 %v9962_v48  ;;  %2235 = vmatpush1.bf16.msra.mxu1 %v9965_v49  ;;  %v10037_v48 = vld [vmem:[#allocation9 + $0x7e8] ss:$16 sps:$4 sm:$0xff]   ;;  %v1307_v49 = vmul.f32 %v1303_v46, %v1275_v47  ;;  %v10123_v46 = vld [vmem:[#allocation9 + $0x9ac] ss:$16 sps:$4 sm:$0xff]   ;;  %v10118_v47 = vld [vmem:[#allocation9 + $0x9a0] ss:$16 sps:$4 sm:$0xff]  }
 0x2b8   :  { %2154 = vmatprep.subr.bf16.mxu0 %v9970_v30  ;;  %2236 = vmatprep.subr.bf16.mxu1 %v9973_v51  ;;  %v10042_v30 = vld [vmem:[#allocation9 + $0x804] ss:$16 sps:$4 sm:$0xff]   ;;  %v10045_v51 = vld [vmem:[#allocation9 + $0x80c] ss:$16 sps:$4 sm:$0xff]  }
 0x2bb   :  { %2155 = vmatpush1.bf16.msra.mxu0 %v9968_v53  ;;  %2237 = vmatpush1.bf16.msra.mxu1 %v9971_v55  ;;  %v10043_v53 = vld [vmem:[#allocation9 + $0x808] ss:$16 sps:$4 sm:$0xff]   ;;  %v1311_v55 = vpack.c.bf16 %v1307_v49, %v1307_v49  ;;  %v10129_v49 = vld [vmem:[#allocation9 + $0x9cc] ss:$16 sps:$4 sm:$0xff]  }
 0x2bc   :  { %2156 = vmatprep.subr.bf16.mxu0 %v9976_v56  ;;  %2238 = vmatprep.subr.bf16.mxu1 %v9979_v57  ;;  %v10048_v56 = vld [vmem:[#allocation9 + $0x824] ss:$16 sps:$4 sm:$0xff]   ;;  %v10051_v57 = vld [vmem:[#allocation9 + $0x82c] ss:$16 sps:$4 sm:$0xff]  }
 0x2bf   :  { %2157 = vmatpush1.bf16.msra.mxu0 %v9974_v59  ;;  %2239 = vmatpush1.bf16.msra.mxu1 %v9977_v60  ;;  %v10049_v59 = vld [vmem:[#allocation9 + $0x828] ss:$16 sps:$4 sm:$0xff]   ;;  %v10054_v60 = vld [vmem:[#allocation9 + $0x844] ss:$16 sps:$4 sm:$0xff]  }
 0x2c0   :  { %2158 = vmatprep.subr.bf16.mxu0 %v9982_v61  ;;  %2240 = vmatprep.subr.bf16.mxu1 %v9985_v62  ;;  %v10057_v61 = vld [vmem:[#allocation9 + $0x84c] ss:$16 sps:$4 sm:$0xff]   ;;  %v10052_v62 = vld [vmem:[#allocation9 + $0x840] ss:$16 sps:$4 sm:$0xff]  }
 0x2c3   :  { %2159 = vmatpush1.bf16.msra.mxu0 %v9980_v63  ;;  %2241 = vmatpush1.bf16.msra.mxu1 %v9983_v0  ;;  %v10060_v63 = vld [vmem:[#allocation9 + $0x864] ss:$16 sps:$4 sm:$0xff]   ;;  %v10063_v0 = vld [vmem:[#allocation9 + $0x86c] ss:$16 sps:$4 sm:$0xff]  }
 0x2c4   :  { %2160 = vmatprep.subr.bf16.mxu0 %v9988_v1  ;;  %2242 = vmatprep.subr.bf16.mxu1 %v9991_v54  ;;  %v10058_v1 = vld [vmem:[#allocation9 + $0x860] ss:$16 sps:$4 sm:$0xff]   ;;  %v10061_v54 = vld [vmem:[#allocation9 + $0x868] ss:$16 sps:$4 sm:$0xff]  }
 0x2c7   :  { %2161 = vmatpush1.bf16.msra.mxu0 %v9986_v3  ;;  %2243 = vmatpush1.bf16.msra.mxu1 %v9989_v4  ;;  %v10069_v3 = vld [vmem:[#allocation9 + $0x88c] ss:$16 sps:$4 sm:$0xff]   ;;  %v10064_v4 = vld [vmem:[#allocation9 + $0x880] ss:$16 sps:$4 sm:$0xff]  }
 0x2c8   :  { %2162 = vmatprep.subr.bf16.mxu0 %v9994_v5  ;;  %2244 = vmatprep.subr.bf16.mxu1 %v9997_v6  ;;  %v10067_v5 = vld [vmem:[#allocation9 + $0x888] ss:$16 sps:$4 sm:$0xff]   ;;  %v10072_v6 = vld [vmem:[#allocation9 + $0x8a4] ss:$16 sps:$4 sm:$0xff]  }
 0x2cb   :  { %2163 = vmatpush1.bf16.msra.mxu0 %v9992_v8  ;;  %2245 = vmatpush1.bf16.msra.mxu1 %v9995_v9  ;;  %v10070_v8 = vld [vmem:[#allocation9 + $0x8a0] ss:$16 sps:$4 sm:$0xff]   ;;  %v10073_v9 = vld [vmem:[#allocation9 + $0x8a8] ss:$16 sps:$4 sm:$0xff]  }
 0x2cc   :  { %2164 = vmatprep.subr.bf16.mxu0 %v10000_v10  ;;  %2246 = vmatprep.subr.bf16.mxu1 %v10003_v11  ;;  %v10078_v10 = vld [vmem:[#allocation9 + $0x8c4] ss:$16 sps:$4 sm:$0xff]   ;;  %v10081_v11 = vld [vmem:[#allocation9 + $0x8cc] ss:$16 sps:$4 sm:$0xff]  }
 0x2cf   :  { %2165 = vmatpush1.bf16.msra.mxu0 %v9998_v13  ;;  %2247 = vmatpush1.bf16.msra.mxu1 %v10001_v14  ;;  %v10079_v13 = vld [vmem:[#allocation9 + $0x8c8] ss:$16 sps:$4 sm:$0xff]   ;;  %v10084_v14 = vld [vmem:[#allocation9 + $0x8e4] ss:$16 sps:$4 sm:$0xff]  }
 0x2d0   :  { %2166 = vmatprep.subr.bf16.mxu0 %v10006_v15  ;;  %2248 = vmatprep.subr.bf16.mxu1 %v10009_v16  ;;  %v10087_v15 = vld [vmem:[#allocation9 + $0x8ec] ss:$16 sps:$4 sm:$0xff]   ;;  %v10082_v16 = vld [vmem:[#allocation9 + $0x8e0] ss:$16 sps:$4 sm:$0xff]  }
 0x2d3   :  { %2167 = vmatpush1.bf16.msra.mxu0 %v10004_v23  ;;  %2249 = vmatpush1.bf16.msra.mxu1 %v10007_v24  ;;  %v10090_v23 = vld [vmem:[#allocation9 + $0x904] ss:$16 sps:$4 sm:$0xff]   ;;  %v10093_v24 = vld [vmem:[#allocation9 + $0x90c] ss:$16 sps:$4 sm:$0xff]  }
 0x2d4   :  { %2168 = vmatprep.subr.bf16.mxu0 %v10012_v25  ;;  %2250 = vmatprep.subr.bf16.mxu1 %v10015_v26  ;;  %v10088_v25 = vld [vmem:[#allocation9 + $0x900] ss:$16 sps:$4 sm:$0xff]   ;;  %v10091_v26 = vld [vmem:[#allocation9 + $0x908] ss:$16 sps:$4 sm:$0xff]  }
 0x2d7   :  { %2169 = vmatpush1.bf16.msra.mxu0 %v10010_v27  ;;  %2251 = vmatpush1.bf16.msra.mxu1 %v10013_v28  ;;  %v10096_v27 = vld [vmem:[#allocation9 + $0x924] ss:$16 sps:$4 sm:$0xff]   ;;  %v10099_v28 = vld [vmem:[#allocation9 + $0x92c] ss:$16 sps:$4 sm:$0xff]  }
 0x2d8   :  { %2170 = vmatprep.subr.bf16.mxu0 %v10018_v29  ;;  %2252 = vmatprep.subr.bf16.mxu1 %v10021_v31  ;;  %v10094_v29 = vld [vmem:[#allocation9 + $0x920] ss:$16 sps:$4 sm:$0xff]   ;;  %v10097_v31 = vld [vmem:[#allocation9 + $0x928] ss:$16 sps:$4 sm:$0xff]  }
 0x2db   :  { %2171 = vmatpush1.bf16.msra.mxu0 %v10016_v33  ;;  %2253 = vmatpush1.bf16.msra.mxu1 %v10019_v34  ;;  %v10102_v33 = vld [vmem:[#allocation9 + $0x944] ss:$16 sps:$4 sm:$0xff]   ;;  %v10105_v34 = vld [vmem:[#allocation9 + $0x94c] ss:$16 sps:$4 sm:$0xff]  }
 0x2dc   :  { %2172 = vmatprep.subr.bf16.mxu0 %v10024_v35  ;;  %2254 = vmatprep.subr.bf16.mxu1 %v10027_v36  ;;  %v10100_v35 = vld [vmem:[#allocation9 + $0x940] ss:$16 sps:$4 sm:$0xff]   ;;  %v10103_v36 = vld [vmem:[#allocation9 + $0x948] ss:$16 sps:$4 sm:$0xff]  }
 0x2df   :  { %2173 = vmatpush1.bf16.msra.mxu0 %v10022_v37  ;;  %2255 = vmatpush1.bf16.msra.mxu1 %v10025_v38  ;;  %v10108_v37 = vld [vmem:[#allocation9 + $0x964] ss:$16 sps:$4 sm:$0xff]   ;;  %v10111_v38 = vld [vmem:[#allocation9 + $0x96c] ss:$16 sps:$4 sm:$0xff]  }
 0x2e0   :  { %2174 = vmatprep.subr.bf16.mxu0 %v10030_v39  ;;  %2256 = vmatprep.subr.bf16.mxu1 %v10033_v40  ;;  %v10106_v39 = vld [vmem:[#allocation9 + $0x960] ss:$16 sps:$4 sm:$0xff]   ;;  %v10109_v40 = vld [vmem:[#allocation9 + $0x968] ss:$16 sps:$4 sm:$0xff]  }
 0x2e3   :  { %2175 = vmatpush1.bf16.msra.mxu0 %v10028_v42  ;;  %2257 = vmatpush1.bf16.msra.mxu1 %v10031_v43  ;;  %v10114_v42 = vld [vmem:[#allocation9 + $0x984] ss:$16 sps:$4 sm:$0xff]   ;;  %v10115_v43 = vld [vmem:[#allocation9 + $0x988] ss:$16 sps:$4 sm:$0xff]  }
 0x2e4   :  { %2176 = vmatprep.subr.bf16.mxu0 %v10036_v44  ;;  %2258 = vmatprep.subr.bf16.mxu1 %v10039_v45  ;;  %v10117_v44 = vld [vmem:[#allocation9 + $0x98c] ss:$16 sps:$4 sm:$0xff]   ;;  %v10120_v45 = vld [vmem:[#allocation9 + $0x9a4] ss:$16 sps:$4 sm:$0xff]  }
 0x2e7   :  { %2177 = vmatpush1.bf16.msra.mxu0 %v10034_v20  ;;  %2259 = vmatpush1.bf16.msra.mxu1 %v10037_v48  ;;  %v10121_v20 = vld [vmem:[#allocation9 + $0x9a8] ss:$16 sps:$4 sm:$0xff]   ;;  %v10126_v48 = vld [vmem:[#allocation9 + $0x9c4] ss:$16 sps:$4 sm:$0xff]  }
 0x2e8   :  { %3101 = vmatprep.subr.bf16.mxu0 %v10042_v30  ;;  %3183 = vmatprep.subr.bf16.mxu1 %v10045_v51  ;;  %v10124_v30 = vld [vmem:[#allocation9 + $0x9c0] ss:$16 sps:$4 sm:$0xff]   ;;  %v10127_v51 = vld [vmem:[#allocation9 + $0x9c8] ss:$16 sps:$4 sm:$0xff]  }
 0x2ea   :  { %2179 = vmatmul.mubr.bf16.vlgmr.msra.gmra.mrb[8].mxu0 %v1311_v55  ;;  %2261 = vmatmul.mubr.bf16.vlgmr.msra.gmra.mrb[8].mxu1 %v1311_v55  ;;  %v10130_v55 = vld [vmem:[#allocation9 + $0x9e0] ss:$16 sps:$4 sm:$0xff]  }
 0x2eb   :  { %3102 = vmatpush1.bf16.msra.mxu0 %v10040_v52  ;;  %3184 = vmatpush1.bf16.msra.mxu1 %v10043_v53  ;;  %v10132_v52 = vld [vmem:[#allocation9 + $0x9e4] ss:$16 sps:$4 sm:$0xff]   ;;  %v10135_v53 = vld [vmem:[#allocation9 + $0x9ec] ss:$16 sps:$4 sm:$0xff]  }
 0x2ec   :  { %3103 = vmatprep.subr.bf16.mxu0 %v10048_v56  ;;  %3185 = vmatprep.subr.bf16.mxu1 %v10051_v57  ;;  %v10133_v56 = vld [vmem:[#allocation9 + $0x9e8] ss:$16 sps:$4 sm:$0xff]   ;;  %v10138_v57 = vld [vmem:[#allocation9 + $0xa04] ss:$16 sps:$4 sm:$0xff]  }
 0x2ef   :  { %3104 = vmatpush1.bf16.msra.mxu0 %v10046_v58  ;;  %3186 = vmatpush1.bf16.msra.mxu1 %v10049_v59  ;;  %v10141_v58 = vld [vmem:[#allocation9 + $0xa0c] ss:$16 sps:$4 sm:$0xff]   ;;  %v10717_v59 = vld [vmem:[#allocation11 + $0x4] sm:$0xf] }
 0x2f0   :  { %3105 = vmatprep.subr.bf16.mxu0 %v10054_v60  ;;  %3187 = vmatprep.subr.bf16.mxu1 %v10057_v61  ;;  %v1448_v60 = vrot.slane %v10717_v59, %v10673_v19  ;;  %v1452_v61 = vrot.slane %v10717_v59, %v10678_v21 }
 0x2f3   :  { %3106 = vmatpush1.bf16.msra.mxu0 %v10052_v62  ;;  %3188 = vmatpush1.bf16.msra.mxu1 %v10055_v50  ;;  %v1460_v62 = vrot.slane %v10717_v59, %v10681_v22 }
 0x2f4   :  { %3107 = vmatprep.subr.bf16.mxu0 %v10060_v63  ;;  %3189 = vmatprep.subr.bf16.mxu1 %v10063_v0 }
 0x2f7   :  { %3108 = vmatpush1.bf16.msra.mxu0 %v10058_v1  ;;  %3190 = vmatpush1.bf16.msra.mxu1 %v10061_v54 }
 0x2f8   :  { %3109 = vmatprep.subr.bf16.mxu0 %v10066_v2  ;;  %3191 = vmatprep.subr.bf16.mxu1 %v10069_v3 }
 0x2fb   :  { %3110 = vmatpush1.bf16.msra.mxu0 %v10064_v4  ;;  %3192 = vmatpush1.bf16.msra.mxu1 %v10067_v5 }
 0x2fc   :  { %3111 = vmatprep.subr.bf16.mxu0 %v10072_v6  ;;  %3193 = vmatprep.subr.bf16.mxu1 %v10075_v7 }
 0x2ff   :  { %3112 = vmatpush1.bf16.msra.mxu0 %v10070_v8  ;;  %3194 = vmatpush1.bf16.msra.mxu1 %v10073_v9 }
 0x300   :  { %3113 = vmatprep.subr.bf16.mxu0 %v10078_v10  ;;  %3195 = vmatprep.subr.bf16.mxu1 %v10081_v11 }
 0x303   :  { %3114 = vmatpush1.bf16.msra.mxu0 %v10076_v12  ;;  %3196 = vmatpush1.bf16.msra.mxu1 %v10079_v13 }
 0x304   :  { %3115 = vmatprep.subr.bf16.mxu0 %v10084_v14  ;;  %3197 = vmatprep.subr.bf16.mxu1 %v10087_v15 }
 0x307   :  { %3116 = vmatpush1.bf16.msra.mxu0 %v10082_v16  ;;  %3198 = vmatpush1.bf16.msra.mxu1 %v10085_v17 }
 0x308   :  { %3117 = vmatprep.subr.bf16.mxu0 %v10090_v23  ;;  %3199 = vmatprep.subr.bf16.mxu1 %v10093_v24 }
 0x30b   :  { %3118 = vmatpush1.bf16.msra.mxu0 %v10088_v25  ;;  %3200 = vmatpush1.bf16.msra.mxu1 %v10091_v26 }
 0x30c   :  { %3119 = vmatprep.subr.bf16.mxu0 %v10096_v27  ;;  %3201 = vmatprep.subr.bf16.mxu1 %v10099_v28 }
 0x30f   :  { %3120 = vmatpush1.bf16.msra.mxu0 %v10094_v29  ;;  %3202 = vmatpush1.bf16.msra.mxu1 %v10097_v31 }
 0x310   :  { %3121 = vmatprep.subr.bf16.mxu0 %v10102_v33  ;;  %3203 = vmatprep.subr.bf16.mxu1 %v10105_v34 }
 0x313   :  { %3122 = vmatpush1.bf16.msra.mxu0 %v10100_v35  ;;  %3204 = vmatpush1.bf16.msra.mxu1 %v10103_v36 }
 0x314   :  { %3123 = vmatprep.subr.bf16.mxu0 %v10108_v37  ;;  %3205 = vmatprep.subr.bf16.mxu1 %v10111_v38 }
 0x317   :  { %3124 = vmatpush1.bf16.msra.mxu0 %v10106_v39  ;;  %3206 = vmatpush1.bf16.msra.mxu1 %v10109_v40 }
 0x318   :  { %3125 = vmatprep.subr.bf16.mxu0 %v10114_v42  ;;  %3207 = vmatprep.subr.bf16.mxu1 %v10117_v44  ;;  %v10139_v44 = vld [vmem:[#allocation9 + $0xa08] ss:$16 sps:$4 sm:$0xff]  }
 0x31b   :  { %3126 = vmatpush1.bf16.msra.mxu0 %v10112_v41  ;;  %3208 = vmatpush1.bf16.msra.mxu1 %v10115_v43  ;;  %v10136_v43 = vld [vmem:[#allocation9 + $0xa00] ss:$16 sps:$4 sm:$0xff]  }
 0x31c   :  { %3127 = vmatprep.subr.bf16.mxu0 %v10120_v45  ;;  %3209 = vmatprep.subr.bf16.mxu1 %v10123_v46  ;;  %v10144_v46 = vld [vmem:[#allocation9 + $0xa24] ss:$16 sps:$4 sm:$0xff]  }
 0x31f   :  { %3128 = vmatpush1.bf16.msra.mxu0 %v10118_v47  ;;  %3210 = vmatpush1.bf16.msra.mxu1 %v10121_v20  ;;  %v10147_v47 = vld [vmem:[#allocation9 + $0xa2c] ss:$16 sps:$4 sm:$0xff]  }
 0x320   :  { %3129 = vmatprep.subr.bf16.mxu0 %v10126_v48  ;;  %3211 = vmatprep.subr.bf16.mxu1 %v10129_v49  ;;  %v10142_v48 = vld [vmem:[#allocation9 + $0xa20] ss:$16 sps:$4 sm:$0xff]   ;;  %v10145_v49 = vld [vmem:[#allocation9 + $0xa28] ss:$16 sps:$4 sm:$0xff]  }
 0x323   :  { %3130 = vmatpush1.bf16.msra.mxu0 %v10124_v30  ;;  %3212 = vmatpush1.bf16.msra.mxu1 %v10127_v51  ;;  %v10150_v30 = vld [vmem:[#allocation9 + $0xa44] ss:$16 sps:$4 sm:$0xff]   ;;  %v10153_v51 = vld [vmem:[#allocation9 + $0xa4c] ss:$16 sps:$4 sm:$0xff]  }
 0x324   :  { %3131 = vmatprep.subr.bf16.mxu0 %v10132_v52  ;;  %3213 = vmatprep.subr.bf16.mxu1 %v10135_v53  ;;  %v10148_v52 = vld [vmem:[#allocation9 + $0xa40] ss:$16 sps:$4 sm:$0xff]   ;;  %v10151_v53 = vld [vmem:[#allocation9 + $0xa48] ss:$16 sps:$4 sm:$0xff]  }
 0x327   :  { %3132 = vmatpush1.bf16.msra.mxu0 %v10130_v55  ;;  %3214 = vmatpush1.bf16.msra.mxu1 %v10133_v56  ;;  %v10156_v55 = vld [vmem:[#allocation9 + $0xa64] ss:$16 sps:$4 sm:$0xff]   ;;  %v10159_v56 = vld [vmem:[#allocation9 + $0xa6c] ss:$16 sps:$4 sm:$0xff]  }
 0x328   :  { %3142 = vmatprep.subr.bf16.mxu0 %v10138_v57  ;;  %3224 = vmatprep.subr.bf16.mxu1 %v10141_v58  ;;  %v10154_v57 = vld [vmem:[#allocation9 + $0xa60] ss:$16 sps:$4 sm:$0xff]   ;;  %v10157_v58 = vld [vmem:[#allocation9 + $0xa68] ss:$16 sps:$4 sm:$0xff]  }
 0x3bd   :  { %v2180_v50 = vpop.f32.mrb[8].mxu0  ;;  %v10725_v63 = vpop.f32.mrb[8].mxu1 }
 0x3be   :  { %v9555_v0 = vadd.f32 %v2180_v50, %v1448_v60  ;;  %v2182_v1 = vpop.f32.mrb[9].mxu0  ;;  %v2264_v54 = vpop.f32.mrb[9].mxu1  ;;  %v10162_v60 = vld [vmem:[#allocation9 + $0xa84] ss:$16 sps:$4 sm:$0xff]   ;;  %v10160_v50 = vld [vmem:[#allocation9 + $0xa80] ss:$16 sps:$4 sm:$0xff]  }
 0x3bf   :  { %v9556_v2 = vadd.f32 %v2182_v1, %v1452_v61  ;;  %v9558_v3 = vadd.f32 %v2264_v54, %v1460_v62  ;;  %v2184_v4 = vpop.f32.mrb[10].mxu0  ;;  %v2266_v5 = vpop.f32.mrb[10].mxu1  ;;  %v10165_v61 = vld [vmem:[#allocation9 + $0xa8c] ss:$16 sps:$4 sm:$0xff]   ;;  %v1456_v62 = vrot.slane %v10717_v59, %v10692_v32  ;;  %v10168_v1 = vld [vmem:[#allocation9 + $0xaa4] ss:$16 sps:$4 sm:$0xff]  }
 0x3c0   :  { %v2273_v6 = vmul.f32 %v9555_v0, %v9555_v0  ;;  %v2185_v7 = vpop.f32.mrb[11].mxu0  ;;  %v2267_v8 = vpop.f32.mrb[11].mxu1  ;;  %v2269_v33 = vmul.f32 0.5, %v9555_v0  ;;  %v10171_v54 = vld [vmem:[#allocation9 + $0xaac] ss:$16 sps:$4 sm:$0xff]  }
 0x3c1   :  { %v2274_v9 = vmul.f32 %v9556_v2, %v9556_v2  ;;  %v2276_v10 = vmul.f32 %v9558_v3, %v9558_v3  ;;  %v2270_v35 = vmul.f32 0.5, %v9556_v2  ;;  %v2272_v38 = vmul.f32 0.5, %v9558_v3  ;;  %v10169_v4 = vld [vmem:[#allocation9 + $0xaa8] ss:$16 sps:$4 sm:$0xff]   ;;  %v10174_v5 = vld [vmem:[#allocation9 + $0xac4] ss:$16 sps:$4 sm:$0xff]  }
 0x3c2   :  { %v2277_v11 = vmul.f32 %v9555_v0, %v2273_v6  ;;  %v10177_v6 = vld [vmem:[#allocation9 + $0xacc] ss:$16 sps:$4 sm:$0xff]   ;;  %v10172_v7 = vld [vmem:[#allocation9 + $0xac0] ss:$16 sps:$4 sm:$0xff]   ;;  %v10175_v8 = vld [vmem:[#allocation9 + $0xac8] ss:$16 sps:$4 sm:$0xff]  }
 0x3c3   :  { %v2278_v12 = vmul.f32 %v9556_v2, %v2274_v9  ;;  %v2280_v13 = vmul.f32 %v9558_v3, %v2276_v10  ;;  %v10180_v9 = vld [vmem:[#allocation9 + $0xae4] ss:$16 sps:$4 sm:$0xff]  }
 0x3c4   :  { %v2281_v14 = vmul.f32 0.044715, %v2277_v11  ;;  %v10178_v11 = vld [vmem:[#allocation9 + $0xae0] ss:$16 sps:$4 sm:$0xff]  }
 0x3c5   :  { %v2282_v15 = vmul.f32 0.044715, %v2278_v12  ;;  %v2284_v16 = vmul.f32 0.044715, %v2280_v13  ;;  %v10181_v12 = vld [vmem:[#allocation9 + $0xae8] ss:$16 sps:$4 sm:$0xff]  }
 0x3c6   :  { %v2285_v17 = vadd.f32 %v9555_v0, %v2281_v14  ;;  %v10163_v0 = vld [vmem:[#allocation9 + $0xa88] ss:$16 sps:$4 sm:$0xff]   ;;  %v10186_v13 = vld [vmem:[#allocation9 + $0xb04] ss:$16 sps:$4 sm:$0xff]   ;;  %v10189_v14 = vld [vmem:[#allocation9 + $0xb0c] ss:$16 sps:$4 sm:$0xff]  }
 0x3c7   :  { %v2286_v23 = vadd.f32 %v9556_v2, %v2282_v15  ;;  %v2288_v24 = vadd.f32 %v9558_v3, %v2284_v16  ;;  %v10730_v2 = vadd.f32 %v10725_v63, %v1456_v62  ;;  %v10166_v3 = vld [vmem:[#allocation9 + $0xaa0] ss:$16 sps:$4 sm:$0xff]   ;;  %v10183_v63 = vld [vmem:[#allocation9 + $0xaec] ss:$16 sps:$4 sm:$0xff]   ;;  %v10229_v62 = vld [vmem:[#allocation9 + $0xbe8] ss:$16 sps:$4 sm:$0xff]  }
 0x3c8   :  { %v2289_v25 = vmul.f32 0.7978846, %v2285_v17  ;;  %v10184_v16 = vld [vmem:[#allocation9 + $0xb00] ss:$16 sps:$4 sm:$0xff]   ;;  %v10187_v17 = vld [vmem:[#allocation9 + $0xb08] ss:$16 sps:$4 sm:$0xff]  }
 0x3c9   :  { %v2290_v26 = vmul.f32 0.7978846, %v2286_v23  ;;  %v2292_v27 = vmul.f32 0.7978846, %v2288_v24  ;;  %v2275_v59 = vmul.f32 %v10730_v2, %v10730_v2  ;;  %v10192_v23 = vld [vmem:[#allocation9 + $0xb24] ss:$16 sps:$4 sm:$0xff]  }
 0x3ca   :  { %10240 = vtanh.f32 %v2289_v25  ;;  %v10195_v24 = vld [vmem:[#allocation9 + $0xb2c] ss:$16 sps:$4 sm:$0xff]  }
 0x3cb   :  { %10242 = vtanh.f32 %v2290_v26  ;;  %v2279_v10 = vmul.f32 %v10730_v2, %v2275_v59  ;;  %v10190_v26 = vld [vmem:[#allocation9 + $0xb20] ss:$16 sps:$4 sm:$0xff]  }
 0x3cc   :  { %10244 = vtanh.f32 %v2292_v27  ;;  %v10193_v27 = vld [vmem:[#allocation9 + $0xb28] ss:$16 sps:$4 sm:$0xff]  }
 0x3cd   :  { %v2283_v15 = vmul.f32 0.044715, %v2279_v10  ;;  %v3338_v10 = vld [vmem:[#allocation12 + $0x108] sm:$0xff] }
 0x3cf   :  { %v2287_v25 = vadd.f32 %v10730_v2, %v2283_v15 }
 0x3d4   :  { %v10241_v28 = vpop.eup %10240 }
 0x3d5   :  { %v2297_v29 = vadd.f32 1.0, %v10241_v28  ;;  %v10243_v31 = vpop.eup %10242  ;;  %v10198_v28 = vld [vmem:[#allocation9 + $0xb44] ss:$16 sps:$4 sm:$0xff]  }
 0x3d6   :  { %v10245_v34 = vpop.eup %10244  ;;  %v2298_v36 = vadd.f32 1.0, %v10243_v31  ;;  %v2291_v31 = vmul.f32 0.7978846, %v2287_v25 }
 0x3d7   :  { %v2301_v37 = vmul.f32 %v2297_v29, %v2269_v33  ;;  %v2300_v39 = vadd.f32 1.0, %v10245_v34  ;;  %v10201_v29 = vld [vmem:[#allocation9 + $0xb4c] ss:$16 sps:$4 sm:$0xff]   ;;  %v10196_v33 = vld [vmem:[#allocation9 + $0xb40] ss:$16 sps:$4 sm:$0xff]  }
 0x3d8   :  { %v2302_v40 = vmul.f32 %v2298_v36, %v2270_v35  ;;  %v10199_v34 = vld [vmem:[#allocation9 + $0xb48] ss:$16 sps:$4 sm:$0xff]   ;;  %v10204_v35 = vld [vmem:[#allocation9 + $0xb64] ss:$16 sps:$4 sm:$0xff]   ;;  %v10207_v36 = vld [vmem:[#allocation9 + $0xb6c] ss:$16 sps:$4 sm:$0xff]   ;;  %10246 = vtanh.f32 %v2291_v31 }
 0x3d9   :  { %v2304_v41 = vmul.f32 %v2300_v39, %v2272_v38  ;;  %v2305_v45 = vpack.c.bf16 %v2301_v37, %v2301_v37  ;;  %v10202_v37 = vld [vmem:[#allocation9 + $0xb60] ss:$16 sps:$4 sm:$0xff]   ;;  %v10205_v38 = vld [vmem:[#allocation9 + $0xb68] ss:$16 sps:$4 sm:$0xff]   ;;  %v10210_v39 = vld [vmem:[#allocation9 + $0xb84] ss:$16 sps:$4 sm:$0xff]  }
 0x3da   :  { %v2306_v42 = vpack.c.bf16 %v2302_v40, %v2302_v40  ;;  %v10213_v40 = vld [vmem:[#allocation9 + $0xb8c] ss:$16 sps:$4 sm:$0xff]  }
 0x3db   :  { %v2308_v20 = vpack.c.bf16 %v2304_v41, %v2304_v41  ;;  %v10208_v41 = vld [vmem:[#allocation9 + $0xb80] ss:$16 sps:$4 sm:$0xff]  }
 0x3dc   :  { %3133 = vmatprep.mubr.bf16.mxu0 %v2306_v42  ;;  %3215 = vmatprep.mubr.bf16.mxu1 %v2306_v42  ;;  %v10211_v42 = vld [vmem:[#allocation9 + $0xb88] ss:$16 sps:$4 sm:$0xff]   ;;  %v3377_v31 = vld [vmem:[#allocation12 + $0x240] sm:$0xff] }
 0x3dd   :  { %3134 = vmatmul.mubr.bf16.vlgmr.msra.gmra.mrb[12].mxu0 %v2305_v45  ;;  %3216 = vmatmul.mubr.bf16.vlgmr.msra.gmra.mrb[12].mxu1 %v2305_v45  ;;  %v10214_v45 = vld [vmem:[#allocation9 + $0xba0] ss:$16 sps:$4 sm:$0xff]  }
 0x3de   :  { %3143 = vmatpush1.bf16.msra.mxu0 %v10136_v43  ;;  %3225 = vmatpush1.bf16.msra.mxu1 %v10139_v44  ;;  %v10216_v43 = vld [vmem:[#allocation9 + $0xba4] ss:$16 sps:$4 sm:$0xff]   ;;  %v10219_v44 = vld [vmem:[#allocation9 + $0xbac] ss:$16 sps:$4 sm:$0xff]  }
 0x3df   :  { %3174 = vmatprep.mubr.bf16.mxu0 %v2308_v20  ;;  %3256 = vmatprep.mubr.bf16.mxu1 %v2308_v20  ;;  %v10225_v20 = vld [vmem:[#allocation9 + $0xbcc] ss:$16 sps:$4 sm:$0xff]  }
 0x3e0   :  { %3144 = vmatprep.subr.bf16.mxu0 %v10144_v46  ;;  %3226 = vmatprep.subr.bf16.mxu1 %v10147_v47  ;;  %v10217_v46 = vld [vmem:[#allocation9 + $0xba8] ss:$16 sps:$4 sm:$0xff]   ;;  %v10222_v47 = vld [vmem:[#allocation9 + $0xbc4] ss:$16 sps:$4 sm:$0xff]  }
 0x3e2   :  { %3145 = vmatpush1.bf16.msra.mxu0 %v10142_v48  ;;  %3227 = vmatpush1.bf16.msra.mxu1 %v10145_v49  ;;  %v10247_v48 = vpop.eup %10246  ;;  %v10220_v49 = vld [vmem:[#allocation9 + $0xbc0] ss:$16 sps:$4 sm:$0xff]  }
 0x3e3   :  { %3146 = vmatprep.subr.bf16.mxu0 %v10150_v30  ;;  %3228 = vmatprep.subr.bf16.mxu1 %v10153_v51  ;;  %v10223_v30 = vld [vmem:[#allocation9 + $0xbc8] ss:$16 sps:$4 sm:$0xff]   ;;  %v10228_v51 = vld [vmem:[#allocation9 + $0xbe4] ss:$16 sps:$4 sm:$0xff]  }
 0x3e6   :  { %3147 = vmatpush1.bf16.msra.mxu0 %v10148_v52  ;;  %3229 = vmatpush1.bf16.msra.mxu1 %v10151_v53  ;;  %v10231_v52 = vld [vmem:[#allocation9 + $0xbec] ss:$16 sps:$4 sm:$0xff]   ;;  %v2299_v53 = vadd.f32 1.0, %v10247_v48  ;;  %v3402_v48 = vld [vmem:[#allocation12 + $0x308] sm:$0xff] }
 0x3e7   :  { %3148 = vmatprep.subr.bf16.mxu0 %v10156_v55  ;;  %3230 = vmatprep.subr.bf16.mxu1 %v10159_v56  ;;  %v3305_v55 = vld [vmem:[#allocation12] sm:$0xff] }
 0x3e8   :  { %v3313_v56 = vld [vmem:[#allocation12 + $0x40] sm:$0xff] }
 0x3ea   :  { %3149 = vmatpush1.bf16.msra.mxu0 %v10154_v57  ;;  %3231 = vmatpush1.bf16.msra.mxu1 %v10157_v58  ;;  %v3306_v57 = vld [vmem:[#allocation12 + $0x8] sm:$0xff] }
 0x3eb   :  { %3150 = vmatprep.subr.bf16.mxu0 %v10162_v60  ;;  %3232 = vmatprep.subr.bf16.mxu1 %v10165_v61  ;;  %v3314_v58 = vld [vmem:[#allocation12 + $0x48] sm:$0xff]  ;;  %v2271_v60 = vmul.f32 0.5, %v10730_v2  ;;  %v10226_v61 = vld [vmem:[#allocation9 + $0xbe0] ss:$16 sps:$4 sm:$0xff]  }
 0x3ec   :  { %v8496_v59 = vcombine.low %v3306_v57, %v3314_v58 }
 0x3ee   :  { %3151 = vmatpush1.bf16.msra.mxu0 %v10160_v50  ;;  %3233 = vmatpush1.bf16.msra.mxu1 %v10163_v0  ;;  %v2303_v50 = vmul.f32 %v2299_v53, %v2271_v60  ;;  %v8495_v0 = vcombine.high %v3305_v55, %v3313_v56 }
 0x3ef   :  { %3152 = vmatprep.subr.bf16.mxu0 %v10168_v1  ;;  %3234 = vmatprep.subr.bf16.mxu1 %v10171_v54  ;;  %v8497_v1 = vcombine.high %v3306_v57, %v3314_v58  ;;  %v3321_v54 = vld [vmem:[#allocation12 + $0x80] sm:$0xff]  ;;  %v3418_v57 = vld [vmem:[#allocation12 + $0x388] sm:$0xff] }
 0x3f0   :  { %v3426_v58 = vld [vmem:[#allocation12 + $0x3c8] sm:$0xff] }
 0x3f2   :  { %3153 = vmatpush1.bf16.msra.mxu0 %v10166_v3  ;;  %3235 = vmatpush1.bf16.msra.mxu1 %v10169_v4  ;;  %v3329_v3 = vld [vmem:[#allocation12 + $0xc0] sm:$0xff]  ;;  %v3322_v4 = vld [vmem:[#allocation12 + $0x88] sm:$0xff] }
 0x3f3   :  { %3154 = vmatprep.subr.bf16.mxu0 %v10174_v5  ;;  %3236 = vmatprep.subr.bf16.mxu1 %v10177_v6  ;;  %v3330_v5 = vld [vmem:[#allocation12 + $0xc8] sm:$0xff]  ;;  %v8494_v6 = vcombine.low %v3305_v55, %v3313_v56  ;;  %v8511_v2 = vcombine.high %v3321_v54, %v3329_v3  ;;  %v3417_v55 = vld [vmem:[#allocation12 + $0x380] sm:$0xff] }
 0x3f4   :  { %v3425_v56 = vld [vmem:[#allocation12 + $0x3c0] sm:$0xff] }
 0x3f6   :  { %3155 = vmatpush1.bf16.msra.mxu0 %v10172_v7  ;;  %3237 = vmatpush1.bf16.msra.mxu1 %v10175_v8  ;;  %v2307_v7 = vpack.c.bf16 %v2303_v50, %v2303_v50  ;;  %v8513_v8 = vcombine.high %v3322_v4, %v3330_v5  ;;  %v8609_v50 = vcombine.high %v3418_v57, %v3426_v58 }
 0x3f7   :  { %3156 = vmatprep.subr.bf16.mxu0 %v10180_v9  ;;  %3238 = vmatprep.subr.bf16.mxu1 %v10183_v63  ;;  %v3337_v9 = vld [vmem:[#allocation12 + $0x100] sm:$0xff] }
 0x3f8   :  { %v3345_v63 = vld [vmem:[#allocation12 + $0x140] sm:$0xff] }
 0x3f9   :  { %v8526_v25 = vcombine.low %v3337_v9, %v3345_v63 }
 0x3fa   :  { %3157 = vmatpush1.bf16.msra.mxu0 %v10178_v11  ;;  %3239 = vmatpush1.bf16.msra.mxu1 %v10181_v12  ;;  %v3346_v11 = vld [vmem:[#allocation12 + $0x148] sm:$0xff]  ;;  %v8510_v12 = vcombine.low %v3321_v54, %v3329_v3 }
 0x3fb   :  { %3158 = vmatprep.subr.bf16.mxu0 %v10186_v13  ;;  %3240 = vmatprep.subr.bf16.mxu1 %v10189_v14  ;;  %v8512_v13 = vcombine.low %v3322_v4, %v3330_v5  ;;  %v8527_v14 = vcombine.high %v3337_v9, %v3345_v63  ;;  %v8529_v15 = vcombine.high %v3338_v10, %v3346_v11  ;;  %v3434_v54 = vld [vmem:[#allocation12 + $0x408] sm:$0xff]  ;;  %v3457_v9 = vld [vmem:[#allocation12 + $0x4c0] sm:$0xff] }
 0x3fc   :  { %v3442_v3 = vld [vmem:[#allocation12 + $0x448] sm:$0xff]  ;;  %v8606_v4 = vcombine.low %v3417_v55, %v3425_v56  ;;  %v8608_v5 = vcombine.low %v3418_v57, %v3426_v58 }
 0x3fd   :  { %v3450_v63 = vld [vmem:[#allocation12 + $0x488] sm:$0xff] }
 0x3fe   :  { %3159 = vmatpush1.bf16.msra.mxu0 %v10184_v16  ;;  %3241 = vmatpush1.bf16.msra.mxu1 %v10187_v17  ;;  %v3353_v16 = vld [vmem:[#allocation12 + $0x180] sm:$0xff]  ;;  %v3538_v58 = vld [vmem:[#allocation12 + $0x748] sm:$0xff] }
 0x3ff   :  { %3160 = vmatprep.subr.bf16.mxu0 %v10192_v23  ;;  %3242 = vmatprep.subr.bf16.mxu1 %v10195_v24  ;;  %v3361_v17 = vld [vmem:[#allocation12 + $0x1c0] sm:$0xff]  ;;  %v3354_v23 = vld [vmem:[#allocation12 + $0x188] sm:$0xff] }
 0x400   :  { %v3362_v24 = vld [vmem:[#allocation12 + $0x1c8] sm:$0xff] }
 0x402   :  { %3161 = vmatpush1.bf16.msra.mxu0 %v10190_v26  ;;  %3243 = vmatpush1.bf16.msra.mxu1 %v10193_v27  ;;  %v8528_v26 = vcombine.low %v3338_v10, %v3346_v11  ;;  %v8543_v27 = vcombine.high %v3353_v16, %v3361_v17  ;;  %v3458_v11 = vld [vmem:[#allocation12 + $0x4c8] sm:$0xff] }
 0x403   :  { %3162 = vmatprep.subr.bf16.mxu0 %v10198_v28  ;;  %3244 = vmatprep.subr.bf16.mxu1 %v10201_v29  ;;  %v8545_v28 = vcombine.high %v3354_v23, %v3362_v24  ;;  %v3369_v29 = vld [vmem:[#allocation12 + $0x200] sm:$0xff] }
 0x406   :  { %3163 = vmatpush1.bf16.msra.mxu0 %v10196_v33  ;;  %3245 = vmatpush1.bf16.msra.mxu1 %v10199_v34  ;;  %v3370_v33 = vld [vmem:[#allocation12 + $0x208] sm:$0xff] }
 0x407   :  { %3164 = vmatprep.subr.bf16.mxu0 %v10204_v35  ;;  %3246 = vmatprep.subr.bf16.mxu1 %v10207_v36  ;;  %v3378_v34 = vld [vmem:[#allocation12 + $0x248] sm:$0xff]  ;;  %v8542_v35 = vcombine.low %v3353_v16, %v3361_v17  ;;  %v8544_v36 = vcombine.low %v3354_v23, %v3362_v24  ;;  %v3473_v16 = vld [vmem:[#allocation12 + $0x540] sm:$0xff] }
 0x408   :  { %v3466_v17 = vld [vmem:[#allocation12 + $0x508] sm:$0xff] }
 0x409   :  { %v3474_v24 = vld [vmem:[#allocation12 + $0x548] sm:$0xff] }
 0x40a   :  { %3165 = vmatpush1.bf16.msra.mxu0 %v10202_v37  ;;  %3247 = vmatpush1.bf16.msra.mxu1 %v10205_v38  ;;  %v8559_v37 = vcombine.high %v3369_v29, %v3377_v31  ;;  %v8561_v38 = vcombine.high %v3370_v33, %v3378_v34 }
 0x40b   :  { %3166 = vmatprep.subr.bf16.mxu0 %v10210_v39  ;;  %3248 = vmatprep.subr.bf16.mxu1 %v10213_v40  ;;  %v3385_v39 = vld [vmem:[#allocation12 + $0x280] sm:$0xff] }
 0x40c   :  { %v3393_v40 = vld [vmem:[#allocation12 + $0x2c0] sm:$0xff] }
 0x40e   :  { %3167 = vmatpush1.bf16.msra.mxu0 %v10208_v41  ;;  %3249 = vmatpush1.bf16.msra.mxu1 %v10211_v42  ;;  %v3386_v41 = vld [vmem:[#allocation12 + $0x288] sm:$0xff] }
 0x40f   :  { %3168 = vmatprep.subr.bf16.mxu0 %v10216_v43  ;;  %3250 = vmatprep.subr.bf16.mxu1 %v10219_v44  ;;  %v3394_v42 = vld [vmem:[#allocation12 + $0x2c8] sm:$0xff]  ;;  %v8558_v43 = vcombine.low %v3369_v29, %v3377_v31  ;;  %v8560_v44 = vcombine.low %v3370_v33, %v3378_v34  ;;  %v3489_v29 = vld [vmem:[#allocation12 + $0x5c0] sm:$0xff] }
 0x410   :  { %v3482_v31 = vld [vmem:[#allocation12 + $0x588] sm:$0xff] }
 0x411   :  { %v3490_v34 = vld [vmem:[#allocation12 + $0x5c8] sm:$0xff] }
 0x412   :  { %3169 = vmatpush1.bf16.msra.mxu0 %v10214_v45  ;;  %3251 = vmatpush1.bf16.msra.mxu1 %v10217_v46  ;;  %v8575_v45 = vcombine.high %v3385_v39, %v3393_v40  ;;  %v8577_v46 = vcombine.high %v3386_v41, %v3394_v42 }
 0x413   :  { %3170 = vmatprep.subr.bf16.mxu0 %v10222_v47  ;;  %3252 = vmatprep.subr.bf16.mxu1 %v10225_v20  ;;  %v3401_v47 = vld [vmem:[#allocation12 + $0x300] sm:$0xff] }
 0x414   :  { %v3409_v20 = vld [vmem:[#allocation12 + $0x340] sm:$0xff] }
 0x415   :  { %v8590_v60 = vcombine.low %v3401_v47, %v3409_v20 }
 0x416   :  { %3171 = vmatpush1.bf16.msra.mxu0 %v10220_v49  ;;  %3253 = vmatpush1.bf16.msra.mxu1 %v10223_v30  ;;  %v3410_v49 = vld [vmem:[#allocation12 + $0x348] sm:$0xff]  ;;  %v8574_v30 = vcombine.low %v3385_v39, %v3393_v40  ;;  %v3505_v39 = vld [vmem:[#allocation12 + $0x640] sm:$0xff] }
 0x417   :  { %3172 = vmatprep.subr.bf16.mxu0 %v10228_v51  ;;  %3254 = vmatprep.subr.bf16.mxu1 %v10231_v52  ;;  %v8576_v51 = vcombine.low %v3386_v41, %v3394_v42  ;;  %v8591_v52 = vcombine.high %v3401_v47, %v3409_v20  ;;  %v8593_v53 = vcombine.high %v3402_v48, %v3410_v49  ;;  %v3498_v40 = vld [vmem:[#allocation12 + $0x608] sm:$0xff]  ;;  %v3521_v47 = vld [vmem:[#allocation12 + $0x6c0] sm:$0xff] }
 0x418   :  { %v3506_v42 = vld [vmem:[#allocation12 + $0x648] sm:$0xff] }
 0x419   :  { %v3514_v20 = vld [vmem:[#allocation12 + $0x688] sm:$0xff] }
 0x41a   :  { %3173 = vmatpush1.bf16.msra.mxu0 %v10226_v61  ;;  %3255 = vmatpush1.bf16.msra.mxu1 %v10229_v62  ;;  %v8592_v61 = vcombine.low %v3402_v48, %v3410_v49  ;;  %v8607_v62 = vcombine.high %v3417_v55, %v3425_v56  ;;  %v3522_v49 = vld [vmem:[#allocation12 + $0x6c8] sm:$0xff]  ;;  %v3537_v55 = vld [vmem:[#allocation12 + $0x740] sm:$0xff] }
 0x41b   :  { %6461 = vmatprep.subr.bf16.mxu0 %v8495_v0  ;;  %6543 = vmatprep.subr.bf16.mxu1 %v8497_v1  ;;  %v3433_v0 = vld [vmem:[#allocation12 + $0x400] sm:$0xff]  ;;  %v3530_v56 = vld [vmem:[#allocation12 + $0x708] sm:$0xff] }
 0x41c   :  { %v3441_v1 = vld [vmem:[#allocation12 + $0x440] sm:$0xff] }
 0x41d   :  { %3175 = vmatmul.mubr.bf16.vlgmr.msra.gmra.mrb[12].mxu0 %v2307_v7  ;;  %3257 = vmatmul.mubr.bf16.vlgmr.msra.gmra.mrb[12].mxu1 %v2307_v7  ;;  %v8622_v7 = vcombine.low %v3433_v0, %v3441_v1 }
 0x41e   :  { %6462 = vmatpush1.bf16.msra.mxu0 %v8494_v6  ;;  %6544 = vmatpush1.bf16.msra.mxu1 %v8496_v59  ;;  %v8623_v6 = vcombine.high %v3433_v0, %v3441_v1  ;;  %v8625_v59 = vcombine.high %v3434_v54, %v3442_v3  ;;  %v3553_v0 = vld [vmem:[#allocation12 + $0x7c0] sm:$0xff]  ;;  %v3546_v1 = vld [vmem:[#allocation12 + $0x788] sm:$0xff] }
 0x41f   :  { %6463 = vmatprep.subr.bf16.mxu0 %v8511_v2  ;;  %6545 = vmatprep.subr.bf16.mxu1 %v8513_v8  ;;  %v8624_v2 = vcombine.low %v3434_v54, %v3442_v3  ;;  %v3449_v8 = vld [vmem:[#allocation12 + $0x480] sm:$0xff]  ;;  %v3554_v3 = vld [vmem:[#allocation12 + $0x7c8] sm:$0xff] }
 0x420   :  { %v8639_v10 = vcombine.high %v3449_v8, %v3457_v9 }
 0x422   :  { %6464 = vmatpush1.bf16.msra.mxu0 %v8510_v12  ;;  %6546 = vmatpush1.bf16.msra.mxu1 %v8512_v13  ;;  %v8638_v12 = vcombine.low %v3449_v8, %v3457_v9  ;;  %v8640_v13 = vcombine.low %v3450_v63, %v3458_v11  ;;  %v10745_v9 = vld [vmem:[#allocation12 + $0x848] sm:$0xff] }
 0x423   :  { %6465 = vmatprep.subr.bf16.mxu0 %v8527_v14  ;;  %6547 = vmatprep.subr.bf16.mxu1 %v8529_v15  ;;  %v8641_v14 = vcombine.high %v3450_v63, %v3458_v11  ;;  %v3465_v15 = vld [vmem:[#allocation12 + $0x500] sm:$0xff] }
 0x424   :  { %v8655_v23 = vcombine.high %v3465_v15, %v3473_v16 }
 0x426   :  { %6466 = vmatpush1.bf16.msra.mxu0 %v8526_v25  ;;  %6548 = vmatpush1.bf16.msra.mxu1 %v8528_v26  ;;  %v8654_v25 = vcombine.low %v3465_v15, %v3473_v16  ;;  %v8656_v26 = vcombine.low %v3466_v17, %v3474_v24 }
 0x427   :  { %6467 = vmatprep.subr.bf16.mxu0 %v8543_v27  ;;  %6549 = vmatprep.subr.bf16.mxu1 %v8545_v28  ;;  %v8657_v27 = vcombine.high %v3466_v17, %v3474_v24  ;;  %v3481_v28 = vld [vmem:[#allocation12 + $0x580] sm:$0xff] }
 0x428   :  { %v8671_v33 = vcombine.high %v3481_v28, %v3489_v29 }
 0x42a   :  { %6468 = vmatpush1.bf16.msra.mxu0 %v8542_v35  ;;  %6550 = vmatpush1.bf16.msra.mxu1 %v8544_v36  ;;  %v8670_v35 = vcombine.low %v3481_v28, %v3489_v29  ;;  %v8672_v36 = vcombine.low %v3482_v31, %v3490_v34 }
 0x42b   :  { %6469 = vmatprep.subr.bf16.mxu0 %v8559_v37  ;;  %6551 = vmatprep.subr.bf16.mxu1 %v8561_v38  ;;  %v8673_v37 = vcombine.high %v3482_v31, %v3490_v34  ;;  %v3497_v38 = vld [vmem:[#allocation12 + $0x600] sm:$0xff] }
 0x42c   :  { %v8687_v41 = vcombine.high %v3497_v38, %v3505_v39 }
 0x42e   :  { %6470 = vmatpush1.bf16.msra.mxu0 %v8558_v43  ;;  %6552 = vmatpush1.bf16.msra.mxu1 %v8560_v44  ;;  %v8686_v43 = vcombine.low %v3497_v38, %v3505_v39  ;;  %v8688_v44 = vcombine.low %v3498_v40, %v3506_v42 }
 0x42f   :  { %6471 = vmatprep.subr.bf16.mxu0 %v8575_v45  ;;  %6553 = vmatprep.subr.bf16.mxu1 %v8577_v46  ;;  %v8689_v45 = vcombine.high %v3498_v40, %v3506_v42  ;;  %v3513_v46 = vld [vmem:[#allocation12 + $0x680] sm:$0xff] }
 0x430   :  { %v8703_v48 = vcombine.high %v3513_v46, %v3521_v47 }
 0x432   :  { %6472 = vmatpush1.bf16.msra.mxu0 %v8574_v30  ;;  %6554 = vmatpush1.bf16.msra.mxu1 %v8576_v51  ;;  %v8702_v30 = vcombine.low %v3513_v46, %v3521_v47  ;;  %v8704_v51 = vcombine.low %v3514_v20, %v3522_v49 }
 0x433   :  { %6473 = vmatprep.subr.bf16.mxu0 %v8591_v52  ;;  %6555 = vmatprep.subr.bf16.mxu1 %v8593_v53  ;;  %v8705_v52 = vcombine.high %v3514_v20, %v3522_v49  ;;  %v3529_v53 = vld [vmem:[#allocation12 + $0x700] sm:$0xff] }
 0x434   :  { %v8719_v57 = vcombine.high %v3529_v53, %v3537_v55 }
 0x436   :  { %6474 = vmatpush1.bf16.msra.mxu0 %v8590_v60  ;;  %6556 = vmatpush1.bf16.msra.mxu1 %v8592_v61  ;;  %v8718_v60 = vcombine.low %v3529_v53, %v3537_v55  ;;  %v8720_v61 = vcombine.low %v3530_v56, %v3538_v58 }
 0x437   :  { %6475 = vmatprep.subr.bf16.mxu0 %v8607_v62  ;;  %6557 = vmatprep.subr.bf16.mxu1 %v8609_v50  ;;  %v8721_v62 = vcombine.high %v3530_v56, %v3538_v58  ;;  %v3545_v50 = vld [vmem:[#allocation12 + $0x780] sm:$0xff] }
 0x438   :  { %v8735_v54 = vcombine.high %v3545_v50, %v3553_v0 }
 0x43a   :  { %6476 = vmatpush1.bf16.msra.mxu0 %v8606_v4  ;;  %6558 = vmatpush1.bf16.msra.mxu1 %v8608_v5  ;;  %v8734_v4 = vcombine.low %v3545_v50, %v3553_v0  ;;  %v8736_v5 = vcombine.low %v3546_v1, %v3554_v3  ;;  %v3585_v50 = vld [vmem:[#allocation12 + $0x8c0] sm:$0xff]  ;;  %v3578_v0 = vld [vmem:[#allocation12 + $0x888] sm:$0xff] }
 0x43b   :  { %6477 = vmatprep.subr.bf16.mxu0 %v8623_v6  ;;  %6559 = vmatprep.subr.bf16.mxu1 %v8625_v59  ;;  %v8737_v6 = vcombine.high %v3546_v1, %v3554_v3  ;;  %v10737_v59 = vld [vmem:[#allocation12 + $0x800] sm:$0xff]  ;;  %v3586_v1 = vld [vmem:[#allocation12 + $0x8c8] sm:$0xff] }
 0x43e   :  { %6478 = vmatpush1.bf16.msra.mxu0 %v8622_v7  ;;  %6560 = vmatpush1.bf16.msra.mxu1 %v8624_v2  ;;  %v10739_v7 = vld [vmem:[#allocation12 + $0x840] sm:$0xff]  ;;  %v10741_v2 = vld [vmem:[#allocation12 + $0x808] sm:$0xff] }
 0x43f   :  { %6479 = vmatprep.subr.bf16.mxu0 %v8639_v10  ;;  %6561 = vmatprep.subr.bf16.mxu1 %v8641_v14  ;;  %v8751_v8 = vcombine.high %v10737_v59, %v10739_v7  ;;  %v8750_v63 = vcombine.low %v10737_v59, %v10739_v7  ;;  %v8752_v10 = vcombine.low %v10741_v2, %v10745_v9 }
 0x440   :  { %v8753_v11 = vcombine.high %v10741_v2, %v10745_v9 }
 0x442   :  { %6480 = vmatpush1.bf16.msra.mxu0 %v8638_v12  ;;  %6562 = vmatpush1.bf16.msra.mxu1 %v8640_v13  ;;  %v10753_v12 = vld [vmem:[#allocation11 + $0x8] sm:$0xf] }
 0x443   :  { %6481 = vmatprep.subr.bf16.mxu0 %v8655_v23  ;;  %6563 = vmatprep.subr.bf16.mxu1 %v8657_v27  ;;  %v2444_v13 = vrot.slane %v10753_v12, %v10673_v19  ;;  %v2448_v14 = vrot.slane %v10753_v12, %v10678_v21  ;;  %v2456_v15 = vrot.slane %v10753_v12, %v10681_v22 }
 0x446   :  { %6482 = vmatpush1.bf16.msra.mxu0 %v8654_v25  ;;  %6564 = vmatpush1.bf16.msra.mxu1 %v8656_v26 }
 0x447   :  { %6483 = vmatprep.subr.bf16.mxu0 %v8671_v33  ;;  %6565 = vmatprep.subr.bf16.mxu1 %v8673_v37 }
 0x44a   :  { %6484 = vmatpush1.bf16.msra.mxu0 %v8670_v35  ;;  %6566 = vmatpush1.bf16.msra.mxu1 %v8672_v36 }
 0x44b   :  { %6485 = vmatprep.subr.bf16.mxu0 %v8687_v41  ;;  %6567 = vmatprep.subr.bf16.mxu1 %v8689_v45 }
 0x44e   :  { %6486 = vmatpush1.bf16.msra.mxu0 %v8686_v43  ;;  %6568 = vmatpush1.bf16.msra.mxu1 %v8688_v44 }
 0x44f   :  { %6487 = vmatprep.subr.bf16.mxu0 %v8703_v48  ;;  %6569 = vmatprep.subr.bf16.mxu1 %v8705_v52 }
 0x452   :  { %6488 = vmatpush1.bf16.msra.mxu0 %v8702_v30  ;;  %6570 = vmatpush1.bf16.msra.mxu1 %v8704_v51 }
 0x453   :  { %6489 = vmatprep.subr.bf16.mxu0 %v8719_v57  ;;  %6571 = vmatprep.subr.bf16.mxu1 %v8721_v62 }
 0x456   :  { %6490 = vmatpush1.bf16.msra.mxu0 %v8718_v60  ;;  %6572 = vmatpush1.bf16.msra.mxu1 %v8720_v61  ;;  %v3577_v61 = vld [vmem:[#allocation12 + $0x880] sm:$0xff] }
 0x457   :  { %6491 = vmatprep.subr.bf16.mxu0 %v8735_v54  ;;  %6573 = vmatprep.subr.bf16.mxu1 %v8737_v6  ;;  %v8769_v6 = vcombine.high %v3578_v0, %v3586_v1 }
 0x45a   :  { %6492 = vmatpush1.bf16.msra.mxu0 %v8734_v4  ;;  %6574 = vmatpush1.bf16.msra.mxu1 %v8736_v5  ;;  %v3593_v4 = vld [vmem:[#allocation12 + $0x900] sm:$0xff]  ;;  %v8767_v5 = vcombine.high %v3577_v61, %v3585_v50 }
 0x45b   :  { %6502 = vmatprep.subr.bf16.mxu0 %v8751_v8  ;;  %6584 = vmatprep.subr.bf16.mxu1 %v8753_v11  ;;  %v3601_v8 = vld [vmem:[#allocation12 + $0x940] sm:$0xff]  ;;  %v3594_v11 = vld [vmem:[#allocation12 + $0x908] sm:$0xff] }
 0x45c   :  { %v8782_v59 = vcombine.low %v3593_v4, %v3601_v8 }
 0x4f0   :  { %v3176_v16 = vpop.f32.mrb[12].mxu0  ;;  %v10761_v17 = vpop.f32.mrb[12].mxu1 }
 0x4f1   :  { %v9559_v23 = vadd.f32 %v3176_v16, %v2444_v13  ;;  %v3178_v24 = vpop.f32.mrb[13].mxu0  ;;  %v3260_v25 = vpop.f32.mrb[13].mxu1  ;;  %v3602_v13 = vld [vmem:[#allocation12 + $0x948] sm:$0xff]  ;;  %v8768_v16 = vcombine.low %v3578_v0, %v3586_v1  ;;  %v3697_v0 = vld [vmem:[#allocation12 + $0xc40] sm:$0xff] }
 0x4f2   :  { %v9560_v26 = vadd.f32 %v3178_v24, %v2448_v14  ;;  %v9562_v27 = vadd.f32 %v3260_v25, %v2456_v15  ;;  %v3180_v28 = vpop.f32.mrb[14].mxu0  ;;  %v3262_v29 = vpop.f32.mrb[14].mxu1  ;;  %v8766_v15 = vcombine.low %v3577_v61, %v3585_v50  ;;  %v8785_v24 = vcombine.high %v3594_v11, %v3602_v13  ;;  %v3609_v25 = vld [vmem:[#allocation12 + $0x980] sm:$0xff]  ;;  %v3690_v1 = vld [vmem:[#allocation12 + $0xc08] sm:$0xff] }
 0x4f3   :  { %v3269_v31 = vmul.f32 %v9559_v23, %v9559_v23  ;;  %v3181_v33 = vpop.f32.mrb[15].mxu0  ;;  %v3263_v34 = vpop.f32.mrb[15].mxu1  ;;  %v3265_v51 = vmul.f32 0.5, %v9559_v23  ;;  %v3618_v28 = vld [vmem:[#allocation12 + $0x9c8] sm:$0xff]  ;;  %v8784_v7 = vcombine.low %v3594_v11, %v3602_v13  ;;  %v3689_v50 = vld [vmem:[#allocation12 + $0xc00] sm:$0xff] }
 0x4f4   :  { %v3270_v35 = vmul.f32 %v9560_v26, %v9560_v26  ;;  %v3272_v36 = vmul.f32 %v9562_v27, %v9562_v27  ;;  %v3266_v53 = vmul.f32 0.5, %v9560_v26  ;;  %v3268_v57 = vmul.f32 0.5, %v9562_v27  ;;  %v3626_v29 = vld [vmem:[#allocation12 + $0xa08] sm:$0xff] }
 0x4f5   :  { %v3273_v37 = vmul.f32 %v9559_v23, %v3269_v31  ;;  %v3634_v31 = vld [vmem:[#allocation12 + $0xa48] sm:$0xff]  ;;  %v8879_v11 = vcombine.high %v3689_v50, %v3697_v0 }
 0x4f6   :  { %v3274_v38 = vmul.f32 %v9560_v26, %v3270_v35  ;;  %v3276_v39 = vmul.f32 %v9562_v27, %v3272_v36  ;;  %v8817_v36 = vcombine.high %v3626_v29, %v3634_v31 }
 0x4f7   :  { %v3277_v40 = vmul.f32 0.044715, %v3273_v37  ;;  %v3641_v37 = vld [vmem:[#allocation12 + $0xa80] sm:$0xff] }
 0x4f8   :  { %v3278_v41 = vmul.f32 0.044715, %v3274_v38  ;;  %v3280_v42 = vmul.f32 0.044715, %v3276_v39  ;;  %v3649_v38 = vld [vmem:[#allocation12 + $0xac0] sm:$0xff]  ;;  %v3642_v39 = vld [vmem:[#allocation12 + $0xa88] sm:$0xff] }
 0x4f9   :  { %v3281_v43 = vadd.f32 %v9559_v23, %v3277_v40  ;;  %v8783_v23 = vcombine.high %v3593_v4, %v3601_v8  ;;  %v3650_v40 = vld [vmem:[#allocation12 + $0xac8] sm:$0xff] }
 0x4fa   :  { %v3282_v44 = vadd.f32 %v9560_v26, %v3278_v41  ;;  %v3284_v45 = vadd.f32 %v9562_v27, %v3280_v42  ;;  %v3617_v26 = vld [vmem:[#allocation12 + $0x9c0] sm:$0xff]  ;;  %v3610_v27 = vld [vmem:[#allocation12 + $0x988] sm:$0xff]  ;;  %v2452_v41 = vrot.slane %v10753_v12, %v10692_v32 }
 0x4fb   :  { %v3285_v46 = vmul.f32 0.7978846, %v3281_v43  ;;  %v8799_v2 = vcombine.high %v3609_v25, %v3617_v26  ;;  %v8801_v9 = vcombine.high %v3610_v27, %v3618_v28  ;;  %v8798_v33 = vcombine.low %v3609_v25, %v3617_v26  ;;  %v3698_v4 = vld [vmem:[#allocation12 + $0xc48] sm:$0xff] }
 0x4fc   :  { %v3286_v47 = vmul.f32 0.7978846, %v3282_v44  ;;  %v3288_v20 = vmul.f32 0.7978846, %v3284_v45  ;;  %v8800_v34 = vcombine.low %v3610_v27, %v3618_v28  ;;  %v8816_v43 = vcombine.low %v3626_v29, %v3634_v31 }
 0x4fd   :  { %10248 = vtanh.f32 %v3285_v46  ;;  %v8831_v44 = vcombine.high %v3641_v37, %v3649_v38  ;;  %v8833_v45 = vcombine.high %v3642_v39, %v3650_v40  ;;  %v3657_v46 = vld [vmem:[#allocation12 + $0xb00] sm:$0xff]  ;;  %v8881_v13 = vcombine.high %v3690_v1, %v3698_v4 }
 0x4fe   :  { %10250 = vtanh.f32 %v3286_v47  ;;  %v3665_v47 = vld [vmem:[#allocation12 + $0xb40] sm:$0xff]  ;;  %v8878_v26 = vcombine.low %v3689_v50, %v3697_v0  ;;  %v8880_v27 = vcombine.low %v3690_v1, %v3698_v4  ;;  %v3794_v50 = vld [vmem:[#allocation12 + $0xf48] sm:$0xff] }
 0x4ff   :  { %10252 = vtanh.f32 %v3288_v20  ;;  %v3658_v20 = vld [vmem:[#allocation12 + $0xb08] sm:$0xff]  ;;  %v8847_v12 = vcombine.high %v3657_v46, %v3665_v47 }
 0x507   :  { %v10249_v48 = vpop.eup %10248 }
 0x508   :  { %v3293_v49 = vadd.f32 1.0, %v10249_v48  ;;  %v10251_v30 = vpop.eup %10250  ;;  %v3666_v48 = vld [vmem:[#allocation12 + $0xb48] sm:$0xff] }
 0x509   :  { %v10253_v52 = vpop.eup %10252  ;;  %v3294_v55 = vadd.f32 1.0, %v10251_v30  ;;  %v8830_v30 = vcombine.low %v3641_v37, %v3649_v38  ;;  %v3738_v37 = vld [vmem:[#allocation12 + $0xd88] sm:$0xff] }
 0x50a   :  { %v3297_v56 = vmul.f32 %v3293_v49, %v3265_v51  ;;  %v3296_v58 = vadd.f32 1.0, %v10253_v52  ;;  %v10784_v49 = vadd.f32 %v10761_v17, %v2452_v41  ;;  %v8832_v51 = vcombine.low %v3642_v39, %v3650_v40  ;;  %v3746_v38 = vld [vmem:[#allocation12 + $0xdc8] sm:$0xff] }
 0x50b   :  { %v3298_v60 = vmul.f32 %v3294_v55, %v3266_v53  ;;  %v8849_v52 = vcombine.high %v3658_v20, %v3666_v48  ;;  %v3673_v53 = vld [vmem:[#allocation12 + $0xb80] sm:$0xff]  ;;  %v8848_v17 = vcombine.low %v3658_v20, %v3666_v48  ;;  %v8928_v48 = vcombine.low %v3738_v37, %v3746_v38 }
 0x50c   :  { %v3300_v62 = vmul.f32 %v3296_v58, %v3268_v57  ;;  %v10765_v3 = vpack.c.bf16 %v3297_v56, %v3297_v56  ;;  %v3681_v55 = vld [vmem:[#allocation12 + $0xbc0] sm:$0xff]  ;;  %v3674_v56 = vld [vmem:[#allocation12 + $0xb88] sm:$0xff]  ;;  %v3271_v58 = vmul.f32 %v10784_v49, %v10784_v49 }
 0x50d   :  { %v10763_v54 = vpack.c.bf16 %v3298_v60, %v3298_v60  ;;  %v3682_v57 = vld [vmem:[#allocation12 + $0xbc8] sm:$0xff]  ;;  %v8846_v60 = vcombine.low %v3657_v46, %v3665_v47  ;;  %v8863_v61 = vcombine.high %v3673_v53, %v3681_v55 }
 0x50e   :  { %v10769_v14 = vpack.c.bf16 %v3300_v62, %v3300_v62  ;;  %v8865_v62 = vcombine.high %v3674_v56, %v3682_v57  ;;  %v8864_v8 = vcombine.low %v3674_v56, %v3682_v57  ;;  %v3754_v46 = vld [vmem:[#allocation12 + $0xe08] sm:$0xff] }
 0x50f   :  { %6493 = vmatprep.mubr.bf16.mxu0 %v10763_v54  ;;  %6575 = vmatprep.mubr.bf16.mxu1 %v10763_v54  ;;  %v3762_v47 = vld [vmem:[#allocation12 + $0xe48] sm:$0xff] }
 0x510   :  { %6494 = vmatmul.mubr.bf16.vlgmr.msra.gmra.mrb[16].mxu0 %v10765_v3  ;;  %6576 = vmatmul.mubr.bf16.vlgmr.msra.gmra.mrb[16].mxu1 %v10765_v3  ;;  %v8944_v57 = vcombine.low %v3754_v46, %v3762_v47 }
 0x511   :  { %6503 = vmatpush1.bf16.msra.mxu0 %v8750_v63  ;;  %6585 = vmatpush1.bf16.msra.mxu1 %v8752_v10  ;;  %v3625_v63 = vld [vmem:[#allocation12 + $0xa00] sm:$0xff] }
 0x512   :  { %6534 = vmatprep.mubr.bf16.mxu0 %v10769_v14  ;;  %6616 = vmatprep.mubr.bf16.mxu1 %v10769_v14  ;;  %v3633_v10 = vld [vmem:[#allocation12 + $0xa40] sm:$0xff] }
 0x513   :  { %6504 = vmatprep.subr.bf16.mxu0 %v8767_v5  ;;  %6586 = vmatprep.subr.bf16.mxu1 %v8769_v6  ;;  %v8815_v35 = vcombine.high %v3625_v63, %v3633_v10  ;;  %v8814_v42 = vcombine.low %v3625_v63, %v3633_v10  ;;  %v3275_v5 = vmul.f32 %v10784_v49, %v3271_v58  ;;  %v3730_v63 = vld [vmem:[#allocation12 + $0xd48] sm:$0xff] }
 0x514   :  { %v8862_v6 = vcombine.low %v3673_v53, %v3681_v55  ;;  %v3770_v53 = vld [vmem:[#allocation12 + $0xe88] sm:$0xff] }
 0x515   :  { %6505 = vmatpush1.bf16.msra.mxu0 %v8766_v15  ;;  %6587 = vmatpush1.bf16.msra.mxu1 %v8768_v16  ;;  %v3705_v15 = vld [vmem:[#allocation12 + $0xc80] sm:$0xff]  ;;  %v3279_v25 = vmul.f32 0.044715, %v3275_v5  ;;  %v3778_v55 = vld [vmem:[#allocation12 + $0xec8] sm:$0xff] }
 0x516   :  { %6506 = vmatprep.subr.bf16.mxu0 %v8783_v23  ;;  %6588 = vmatprep.subr.bf16.mxu1 %v8785_v24  ;;  %v3713_v16 = vld [vmem:[#allocation12 + $0xcc0] sm:$0xff]  ;;  %v3706_v23 = vld [vmem:[#allocation12 + $0xc88] sm:$0xff]  ;;  %v8960_v1 = vcombine.low %v3770_v53, %v3778_v55 }
 0x517   :  { %v3714_v24 = vld [vmem:[#allocation12 + $0xcc8] sm:$0xff]  ;;  %v8895_v28 = vcombine.high %v3705_v15, %v3713_v16  ;;  %v3283_v10 = vadd.f32 %v10784_v49, %v3279_v25  ;;  %v8894_v29 = vcombine.low %v3705_v15, %v3713_v16 }
 0x518   :  { %v8896_v31 = vcombine.low %v3706_v23, %v3714_v24  ;;  %v3810_v15 = vld [vmem:[#allocation12 + $0xfc8] sm:$0xff] }
 0x519   :  { %6507 = vmatpush1.bf16.msra.mxu0 %v8782_v59  ;;  %6589 = vmatpush1.bf16.msra.mxu1 %v8784_v7  ;;  %v8897_v59 = vcombine.high %v3706_v23, %v3714_v24  ;;  %v3721_v7 = vld [vmem:[#allocation12 + $0xd00] sm:$0xff]  ;;  %v3287_v39 = vmul.f32 0.7978846, %v3283_v10 }
 0x51a   :  { %6508 = vmatprep.subr.bf16.mxu0 %v8799_v2  ;;  %6590 = vmatprep.subr.bf16.mxu1 %v8801_v9  ;;  %v3729_v2 = vld [vmem:[#allocation12 + $0xd40] sm:$0xff]  ;;  %v3722_v9 = vld [vmem:[#allocation12 + $0xd08] sm:$0xff] }
 0x51b   :  { %v8910_v40 = vcombine.low %v3721_v7, %v3729_v2  ;;  %v8912_v41 = vcombine.low %v3722_v9, %v3730_v63  ;;  %10254 = vtanh.f32 %v3287_v39 }
 0x51d   :  { %6509 = vmatpush1.bf16.msra.mxu0 %v8798_v33  ;;  %6591 = vmatpush1.bf16.msra.mxu1 %v8800_v34  ;;  %v8911_v33 = vcombine.high %v3721_v7, %v3729_v2  ;;  %v8913_v34 = vcombine.high %v3722_v9, %v3730_v63  ;;  %v3316_v7 = vld [vmem:[#allocation12 + $0x58] sm:$0xff]  ;;  %v3267_v2 = vmul.f32 0.5, %v10784_v49 }
 0x51e   :  { %6510 = vmatprep.subr.bf16.mxu0 %v8815_v35  ;;  %6592 = vmatprep.subr.bf16.mxu1 %v8817_v36  ;;  %v3737_v35 = vld [vmem:[#allocation12 + $0xd80] sm:$0xff] }
 0x51f   :  { %v3745_v36 = vld [vmem:[#allocation12 + $0xdc0] sm:$0xff] }
 0x520   :  { %v8926_v20 = vcombine.low %v3737_v35, %v3745_v36 }
 0x521   :  { %6511 = vmatpush1.bf16.msra.mxu0 %v8814_v42  ;;  %6593 = vmatpush1.bf16.msra.mxu1 %v8816_v43  ;;  %v8927_v42 = vcombine.high %v3737_v35, %v3745_v36  ;;  %v8929_v43 = vcombine.high %v3738_v37, %v3746_v38  ;;  %v3324_v35 = vld [vmem:[#allocation12 + $0x98] sm:$0xff] }
 0x522   :  { %6512 = vmatprep.subr.bf16.mxu0 %v8831_v44  ;;  %6594 = vmatprep.subr.bf16.mxu1 %v8833_v45  ;;  %v3753_v44 = vld [vmem:[#allocation12 + $0xe00] sm:$0xff]  ;;  %v3332_v36 = vld [vmem:[#allocation12 + $0xd8] sm:$0xff] }
 0x523   :  { %v3761_v45 = vld [vmem:[#allocation12 + $0xe40] sm:$0xff] }
 0x524   :  { %v8942_v56 = vcombine.low %v3753_v44, %v3761_v45 }
 0x525   :  { %6513 = vmatpush1.bf16.msra.mxu0 %v8830_v30  ;;  %6595 = vmatpush1.bf16.msra.mxu1 %v8832_v51  ;;  %v8943_v30 = vcombine.high %v3753_v44, %v3761_v45  ;;  %v8945_v51 = vcombine.high %v3754_v46, %v3762_v47  ;;  %v3348_v44 = vld [vmem:[#allocation12 + $0x158] sm:$0xff]  ;;  %v8516_v46 = vcombine.low %v3324_v35, %v3332_v36 }
 0x526   :  { %6514 = vmatprep.subr.bf16.mxu0 %v8847_v12  ;;  %6596 = vmatprep.subr.bf16.mxu1 %v8849_v52  ;;  %v3769_v12 = vld [vmem:[#allocation12 + $0xe80] sm:$0xff] }
 0x527   :  { %v3777_v52 = vld [vmem:[#allocation12 + $0xec0] sm:$0xff] }
 0x528   :  { %v8959_v58 = vcombine.high %v3769_v12, %v3777_v52  ;;  %v8958_v0 = vcombine.low %v3769_v12, %v3777_v52  ;;  %v3364_v12 = vld [vmem:[#allocation12 + $0x1d8] sm:$0xff] }
 0x529   :  { %6515 = vmatpush1.bf16.msra.mxu0 %v8846_v60  ;;  %6597 = vmatpush1.bf16.msra.mxu1 %v8848_v17  ;;  %v8961_v60 = vcombine.high %v3770_v53, %v3778_v55  ;;  %v3785_v17 = vld [vmem:[#allocation12 + $0xf00] sm:$0xff] }
 0x52a   :  { %6516 = vmatprep.subr.bf16.mxu0 %v8863_v61  ;;  %6598 = vmatprep.subr.bf16.mxu1 %v8865_v62  ;;  %v3793_v61 = vld [vmem:[#allocation12 + $0xf40] sm:$0xff]  ;;  %v3786_v62 = vld [vmem:[#allocation12 + $0xf08] sm:$0xff] }
 0x52b   :  { %v8975_v4 = vcombine.high %v3785_v17, %v3793_v61  ;;  %v8977_v5 = vcombine.high %v3786_v62, %v3794_v50  ;;  %v8974_v16 = vcombine.low %v3785_v17, %v3793_v61  ;;  %v8976_v23 = vcombine.low %v3786_v62, %v3794_v50  ;;  %v3380_v17 = vld [vmem:[#allocation12 + $0x258] sm:$0xff] }
 0x52d   :  { %6517 = vmatpush1.bf16.msra.mxu0 %v8862_v6  ;;  %6599 = vmatpush1.bf16.msra.mxu1 %v8864_v8  ;;  %v3801_v6 = vld [vmem:[#allocation12 + $0xf80] sm:$0xff]  ;;  %v10255_v8 = vpop.eup %10254 }
 0x52e   :  { %6518 = vmatprep.subr.bf16.mxu0 %v8879_v11  ;;  %6600 = vmatprep.subr.bf16.mxu1 %v8881_v13  ;;  %v3809_v11 = vld [vmem:[#allocation12 + $0xfc0] sm:$0xff]  ;;  %v3802_v13 = vld [vmem:[#allocation12 + $0xf88] sm:$0xff]  ;;  %v3295_v24 = vadd.f32 1.0, %v10255_v8 }
 0x52f   :  { %v8991_v25 = vcombine.high %v3801_v6, %v3809_v11  ;;  %v8990_v9 = vcombine.low %v3801_v6, %v3809_v11  ;;  %v8992_v63 = vcombine.low %v3802_v13, %v3810_v15  ;;  %v3396_v6 = vld [vmem:[#allocation12 + $0x2d8] sm:$0xff] }
 0x530   :  { %v3299_v10 = vmul.f32 %v3295_v24, %v3267_v2  ;;  %v3404_v24 = vld [vmem:[#allocation12 + $0x318] sm:$0xff]  ;;  %v3427_v2 = vld [vmem:[#allocation12 + $0x3d0] sm:$0xff] }
 0x531   :  { %6519 = vmatpush1.bf16.msra.mxu0 %v8878_v26  ;;  %6601 = vmatpush1.bf16.msra.mxu1 %v8880_v27  ;;  %v8993_v26 = vcombine.high %v3802_v13, %v3810_v15  ;;  %v3307_v27 = vld [vmem:[#allocation12 + $0x10] sm:$0xff] }
 0x532   :  { %6520 = vmatprep.subr.bf16.mxu0 %v8895_v28  ;;  %6602 = vmatprep.subr.bf16.mxu1 %v8897_v59  ;;  %v3315_v28 = vld [vmem:[#allocation12 + $0x50] sm:$0xff]  ;;  %v3308_v59 = vld [vmem:[#allocation12 + $0x18] sm:$0xff]  ;;  %v10791_v38 = vpack.c.bf16 %v3299_v10, %v3299_v10 }
 0x533   :  { %v8498_v37 = vcombine.low %v3307_v27, %v3315_v28  ;;  %v8500_v49 = vcombine.low %v3308_v59, %v3316_v7 }
 0x535   :  { %6521 = vmatpush1.bf16.msra.mxu0 %v8894_v29  ;;  %6603 = vmatpush1.bf16.msra.mxu1 %v8896_v31  ;;  %v8499_v29 = vcombine.high %v3307_v27, %v3315_v28  ;;  %v8501_v31 = vcombine.high %v3308_v59, %v3316_v7  ;;  %v3419_v7 = vld [vmem:[#allocation12 + $0x390] sm:$0xff] }
 0x536   :  { %6522 = vmatprep.subr.bf16.mxu0 %v8911_v33  ;;  %6604 = vmatprep.subr.bf16.mxu1 %v8913_v34  ;;  %v3323_v33 = vld [vmem:[#allocation12 + $0x90] sm:$0xff] }
 0x537   :  { %v3331_v34 = vld [vmem:[#allocation12 + $0xd0] sm:$0xff] }
 0x538   :  { %v8515_v39 = vcombine.high %v3323_v33, %v3331_v34  ;;  %v8514_v45 = vcombine.low %v3323_v33, %v3331_v34  ;;  %v3435_v34 = vld [vmem:[#allocation12 + $0x410] sm:$0xff] }
 0x539   :  { %6523 = vmatpush1.bf16.msra.mxu0 %v8910_v40  ;;  %6605 = vmatpush1.bf16.msra.mxu1 %v8912_v41  ;;  %v8517_v40 = vcombine.high %v3324_v35, %v3332_v36  ;;  %v3339_v41 = vld [vmem:[#allocation12 + $0x110] sm:$0xff]  ;;  %v3436_v36 = vld [vmem:[#allocation12 + $0x418] sm:$0xff] }
 0x53a   :  { %6524 = vmatprep.subr.bf16.mxu0 %v8927_v42  ;;  %6606 = vmatprep.subr.bf16.mxu1 %v8929_v43  ;;  %v3347_v42 = vld [vmem:[#allocation12 + $0x150] sm:$0xff]  ;;  %v3340_v43 = vld [vmem:[#allocation12 + $0x118] sm:$0xff] }
 0x53b   :  { %v8531_v47 = vcombine.high %v3339_v41, %v3347_v42  ;;  %v8530_v52 = vcombine.low %v3339_v41, %v3347_v42  ;;  %v8532_v53 = vcombine.low %v3340_v43, %v3348_v44  ;;  %v3443_v35 = vld [vmem:[#allocation12 + $0x450] sm:$0xff] }
 0x53c   :  { %v3451_v42 = vld [vmem:[#allocation12 + $0x490] sm:$0xff] }
 0x53d   :  { %6525 = vmatpush1.bf16.msra.mxu0 %v8926_v20  ;;  %6607 = vmatpush1.bf16.msra.mxu1 %v8928_v48  ;;  %v8533_v20 = vcombine.high %v3340_v43, %v3348_v44  ;;  %v3355_v48 = vld [vmem:[#allocation12 + $0x190] sm:$0xff]  ;;  %v3452_v44 = vld [vmem:[#allocation12 + $0x498] sm:$0xff] }
 0x53e   :  { %6526 = vmatprep.subr.bf16.mxu0 %v8943_v30  ;;  %6608 = vmatprep.subr.bf16.mxu1 %v8945_v51  ;;  %v3363_v30 = vld [vmem:[#allocation12 + $0x1d0] sm:$0xff]  ;;  %v3356_v51 = vld [vmem:[#allocation12 + $0x198] sm:$0xff] }
 0x53f   :  { %v8547_v55 = vcombine.high %v3355_v48, %v3363_v30  ;;  %v8546_v61 = vcombine.low %v3355_v48, %v3363_v30  ;;  %v8548_v62 = vcombine.low %v3356_v51, %v3364_v12  ;;  %v3459_v43 = vld [vmem:[#allocation12 + $0x4d0] sm:$0xff] }
 0x540   :  { %v3467_v30 = vld [vmem:[#allocation12 + $0x510] sm:$0xff] }
 0x541   :  { %6527 = vmatpush1.bf16.msra.mxu0 %v8942_v56  ;;  %6609 = vmatpush1.bf16.msra.mxu1 %v8944_v57  ;;  %v8549_v56 = vcombine.high %v3356_v51, %v3364_v12  ;;  %v3371_v57 = vld [vmem:[#allocation12 + $0x210] sm:$0xff]  ;;  %v3468_v12 = vld [vmem:[#allocation12 + $0x518] sm:$0xff] }
 0x542   :  { %6528 = vmatprep.subr.bf16.mxu0 %v8959_v58  ;;  %6610 = vmatprep.subr.bf16.mxu1 %v8961_v60  ;;  %v3379_v58 = vld [vmem:[#allocation12 + $0x250] sm:$0xff]  ;;  %v3372_v60 = vld [vmem:[#allocation12 + $0x218] sm:$0xff] }
 0x543   :  { %v8563_v50 = vcombine.high %v3371_v57, %v3379_v58  ;;  %v8562_v8 = vcombine.low %v3371_v57, %v3379_v58  ;;  %v8564_v11 = vcombine.low %v3372_v60, %v3380_v17  ;;  %v3475_v51 = vld [vmem:[#allocation12 + $0x550] sm:$0xff] }
 0x544   :  { %v3483_v58 = vld [vmem:[#allocation12 + $0x590] sm:$0xff] }
 0x545   :  { %6529 = vmatpush1.bf16.msra.mxu0 %v8958_v0  ;;  %6611 = vmatpush1.bf16.msra.mxu1 %v8960_v1  ;;  %v8565_v0 = vcombine.high %v3372_v60, %v3380_v17  ;;  %v3387_v1 = vld [vmem:[#allocation12 + $0x290] sm:$0xff]  ;;  %v3484_v17 = vld [vmem:[#allocation12 + $0x598] sm:$0xff] }
 0x546   :  { %6530 = vmatprep.subr.bf16.mxu0 %v8975_v4  ;;  %6612 = vmatprep.subr.bf16.mxu1 %v8977_v5  ;;  %v3395_v4 = vld [vmem:[#allocation12 + $0x2d0] sm:$0xff]  ;;  %v3388_v5 = vld [vmem:[#allocation12 + $0x298] sm:$0xff] }
 0x547   :  { %v8579_v13 = vcombine.high %v3387_v1, %v3395_v4  ;;  %v8581_v15 = vcombine.high %v3388_v5, %v3396_v6  ;;  %v8580_v27 = vcombine.low %v3388_v5, %v3396_v6  ;;  %v3491_v60 = vld [vmem:[#allocation12 + $0x5d0] sm:$0xff]  ;;  %v3500_v6 = vld [vmem:[#allocation12 + $0x618] sm:$0xff] }
 0x548   :  { %v3507_v5 = vld [vmem:[#allocation12 + $0x650] sm:$0xff] }
 0x549   :  { %6531 = vmatpush1.bf16.msra.mxu0 %v8974_v16  ;;  %6613 = vmatpush1.bf16.msra.mxu1 %v8976_v23  ;;  %v3403_v16 = vld [vmem:[#allocation12 + $0x310] sm:$0xff] }
 0x54a   :  { %6532 = vmatprep.subr.bf16.mxu0 %v8991_v25  ;;  %6614 = vmatprep.subr.bf16.mxu1 %v8993_v26  ;;  %v3411_v23 = vld [vmem:[#allocation12 + $0x350] sm:$0xff]  ;;  %v3412_v25 = vld [vmem:[#allocation12 + $0x358] sm:$0xff]  ;;  %v8578_v26 = vcombine.low %v3387_v1, %v3395_v4 }
 0x54b   :  { %v8595_v28 = vcombine.high %v3403_v16, %v3411_v23  ;;  %v8597_v59 = vcombine.high %v3404_v24, %v3412_v25  ;;  %v8594_v10 = vcombine.low %v3403_v16, %v3411_v23  ;;  %v3499_v4 = vld [vmem:[#allocation12 + $0x610] sm:$0xff] }
 0x54c   :  { %v3515_v23 = vld [vmem:[#allocation12 + $0x690] sm:$0xff] }
 0x54d   :  { %6533 = vmatpush1.bf16.msra.mxu0 %v8990_v9  ;;  %6615 = vmatpush1.bf16.msra.mxu1 %v8992_v63  ;;  %v3420_v9 = vld [vmem:[#allocation12 + $0x398] sm:$0xff] }
 0x54e   :  { %6625 = vmatprep.subr.bf16.mxu0 %v8499_v29  ;;  %6707 = vmatprep.subr.bf16.mxu1 %v8501_v31  ;;  %v3428_v63 = vld [vmem:[#allocation12 + $0x3d8] sm:$0xff]  ;;  %v8596_v29 = vcombine.low %v3404_v24, %v3412_v25  ;;  %v8611_v31 = vcombine.high %v3419_v7, %v3427_v2  ;;  %v3523_v24 = vld [vmem:[#allocation12 + $0x6d0] sm:$0xff] }
 0x54f   :  { %v8613_v33 = vcombine.high %v3420_v9, %v3428_v63  ;;  %v3516_v25 = vld [vmem:[#allocation12 + $0x698] sm:$0xff] }
 0x550   :  { %6535 = vmatmul.mubr.bf16.vlgmr.msra.gmra.mrb[16].mxu0 %v10791_v38  ;;  %6617 = vmatmul.mubr.bf16.vlgmr.msra.gmra.mrb[16].mxu1 %v10791_v38 }
 0x551   :  { %6626 = vmatpush1.bf16.msra.mxu0 %v8498_v37  ;;  %6657 = vmatprep.mubr.bf16.mxu0 %v10763_v54  ;;  %v3444_v37 = vld [vmem:[#allocation12 + $0x458] sm:$0xff] }
 0x552   :  { %6708 = vmatpush1.bf16.msra.mxu1 %v8500_v49  ;;  %6739 = vmatprep.mubr.bf16.mxu1 %v10763_v54  ;;  %v8610_v49 = vcombine.low %v3419_v7, %v3427_v2  ;;  %v8629_v41 = vcombine.high %v3436_v36, %v3444_v37  ;;  %v3531_v2 = vld [vmem:[#allocation12 + $0x710] sm:$0xff] }
 0x553   :  { %6627 = vmatprep.subr.bf16.mxu0 %v8515_v39  ;;  %6709 = vmatprep.subr.bf16.mxu1 %v8517_v40  ;;  %v8612_v39 = vcombine.low %v3420_v9, %v3428_v63  ;;  %v8627_v40 = vcombine.high %v3435_v34, %v3443_v35  ;;  %v3539_v9 = vld [vmem:[#allocation12 + $0x750] sm:$0xff]  ;;  %v3532_v63 = vld [vmem:[#allocation12 + $0x718] sm:$0xff] }
 0x555   :  { %6628 = vmatpush1.bf16.msra.mxu0 %v8514_v45  ;;  %v3460_v45 = vld [vmem:[#allocation12 + $0x4d8] sm:$0xff] }
 0x556   :  { %6710 = vmatpush1.bf16.msra.mxu1 %v8516_v46  ;;  %6629 = vmatprep.subr.bf16.mxu0 %v8531_v47  ;;  %v8626_v46 = vcombine.low %v3435_v34, %v3443_v35  ;;  %v8628_v47 = vcombine.low %v3436_v36, %v3444_v37  ;;  %v8645_v48 = vcombine.high %v3452_v44, %v3460_v45  ;;  %v3547_v35 = vld [vmem:[#allocation12 + $0x790] sm:$0xff]  ;;  %v3548_v37 = vld [vmem:[#allocation12 + $0x798] sm:$0xff] }
 0x557   :  { %6711 = vmatprep.subr.bf16.mxu1 %v8533_v20  ;;  %v8643_v20 = vcombine.high %v3451_v42, %v3459_v43  ;;  %v3555_v36 = vld [vmem:[#allocation12 + $0x7d0] sm:$0xff] }
 0x559   :  { %6630 = vmatpush1.bf16.msra.mxu0 %v8530_v52  ;;  %v3476_v52 = vld [vmem:[#allocation12 + $0x558] sm:$0xff] }
 0x55a   :  { %6712 = vmatpush1.bf16.msra.mxu1 %v8532_v53  ;;  %6631 = vmatprep.subr.bf16.mxu0 %v8547_v55  ;;  %v8642_v53 = vcombine.low %v3451_v42, %v3459_v43  ;;  %v8644_v55 = vcombine.low %v3452_v44, %v3460_v45  ;;  %v8661_v57 = vcombine.high %v3468_v12, %v3476_v52  ;;  %v3563_v43 = vld [vmem:[#allocation12 + $0x810] sm:$0xff]  ;;  %v3564_v45 = vld [vmem:[#allocation12 + $0x818] sm:$0xff] }
 0x55b   :  { %6713 = vmatprep.subr.bf16.mxu1 %v8549_v56  ;;  %v8659_v56 = vcombine.high %v3467_v30, %v3475_v51  ;;  %v3571_v44 = vld [vmem:[#allocation12 + $0x850] sm:$0xff] }
 0x55d   :  { %6632 = vmatpush1.bf16.msra.mxu0 %v8546_v61  ;;  %v3492_v61 = vld [vmem:[#allocation12 + $0x5d8] sm:$0xff] }
 0x55e   :  { %6714 = vmatpush1.bf16.msra.mxu1 %v8548_v62  ;;  %6633 = vmatprep.subr.bf16.mxu0 %v8563_v50  ;;  %v8658_v62 = vcombine.low %v3467_v30, %v3475_v51  ;;  %v8660_v50 = vcombine.low %v3468_v12, %v3476_v52  ;;  %v8677_v1 = vcombine.high %v3484_v17, %v3492_v61  ;;  %v3579_v51 = vld [vmem:[#allocation12 + $0x890] sm:$0xff] }
 0x55f   :  { %6715 = vmatprep.subr.bf16.mxu1 %v8565_v0  ;;  %v8675_v0 = vcombine.high %v3483_v58, %v3491_v60  ;;  %v3587_v12 = vld [vmem:[#allocation12 + $0x8d0] sm:$0xff]  ;;  %v8754_v52 = vcombine.low %v3563_v43, %v3571_v44 }
 0x561   :  { %6634 = vmatpush1.bf16.msra.mxu0 %v8562_v8  ;;  %v3508_v8 = vld [vmem:[#allocation12 + $0x658] sm:$0xff] }
 0x562   :  { %6716 = vmatpush1.bf16.msra.mxu1 %v8564_v11  ;;  %6635 = vmatprep.subr.bf16.mxu0 %v8579_v13  ;;  %v8674_v11 = vcombine.low %v3483_v58, %v3491_v60  ;;  %v8676_v13 = vcombine.low %v3484_v17, %v3492_v61  ;;  %v8693_v16 = vcombine.high %v3500_v6, %v3508_v8  ;;  %v3595_v58 = vld [vmem:[#allocation12 + $0x910] sm:$0xff]  ;;  %v3596_v61 = vld [vmem:[#allocation12 + $0x918] sm:$0xff] }
 0x563   :  { %6717 = vmatprep.subr.bf16.mxu1 %v8581_v15  ;;  %v8691_v15 = vcombine.high %v3499_v4, %v3507_v5  ;;  %v3603_v60 = vld [vmem:[#allocation12 + $0x950] sm:$0xff] }
 0x565   :  { %6636 = vmatpush1.bf16.msra.mxu0 %v8578_v26  ;;  %v3524_v26 = vld [vmem:[#allocation12 + $0x6d8] sm:$0xff] }
 0x566   :  { %6718 = vmatpush1.bf16.msra.mxu1 %v8580_v27  ;;  %6637 = vmatprep.subr.bf16.mxu0 %v8595_v28  ;;  %v8690_v27 = vcombine.low %v3499_v4, %v3507_v5  ;;  %v8692_v28 = vcombine.low %v3500_v6, %v3508_v8  ;;  %v8709_v7 = vcombine.high %v3516_v25, %v3524_v26  ;;  %v3611_v5 = vld [vmem:[#allocation12 + $0x990] sm:$0xff]  ;;  %v3612_v8 = vld [vmem:[#allocation12 + $0x998] sm:$0xff] }
 0x567   :  { %6719 = vmatprep.subr.bf16.mxu1 %v8597_v59  ;;  %v8707_v59 = vcombine.high %v3515_v23, %v3523_v24  ;;  %v3619_v6 = vld [vmem:[#allocation12 + $0x9d0] sm:$0xff] }
 0x569   :  { %6638 = vmatpush1.bf16.msra.mxu0 %v8594_v10  ;;  %v3540_v10 = vld [vmem:[#allocation12 + $0x758] sm:$0xff] }
 0x56a   :  { %6720 = vmatpush1.bf16.msra.mxu1 %v8596_v29  ;;  %6639 = vmatprep.subr.bf16.mxu0 %v8611_v31  ;;  %v8706_v29 = vcombine.low %v3515_v23, %v3523_v24  ;;  %v8708_v31 = vcombine.low %v3516_v25, %v3524_v26  ;;  %v8725_v34 = vcombine.high %v3532_v63, %v3540_v10  ;;  %v3627_v24 = vld [vmem:[#allocation12 + $0xa10] sm:$0xff]  ;;  %v3628_v26 = vld [vmem:[#allocation12 + $0xa18] sm:$0xff] }
 0x56b   :  { %6721 = vmatprep.subr.bf16.mxu1 %v8613_v33  ;;  %v8723_v33 = vcombine.high %v3531_v2, %v3539_v9  ;;  %v3635_v25 = vld [vmem:[#allocation12 + $0xa50] sm:$0xff] }
 0x56d   :  { %6640 = vmatpush1.bf16.msra.mxu0 %v8610_v49  ;;  %v3556_v49 = vld [vmem:[#allocation12 + $0x7d8] sm:$0xff] }
 0x56e   :  { %6722 = vmatpush1.bf16.msra.mxu1 %v8612_v39  ;;  %6641 = vmatprep.subr.bf16.mxu0 %v8627_v40  ;;  %v8722_v39 = vcombine.low %v3531_v2, %v3539_v9  ;;  %v8724_v40 = vcombine.low %v3532_v63, %v3540_v10  ;;  %v8741_v42 = vcombine.high %v3548_v37, %v3556_v49  ;;  %v3643_v9 = vld [vmem:[#allocation12 + $0xa90] sm:$0xff]  ;;  %v3644_v10 = vld [vmem:[#allocation12 + $0xa98] sm:$0xff] }
 0x56f   :  { %6723 = vmatprep.subr.bf16.mxu1 %v8629_v41  ;;  %v8739_v41 = vcombine.high %v3547_v35, %v3555_v36  ;;  %v3651_v63 = vld [vmem:[#allocation12 + $0xad0] sm:$0xff] }
 0x571   :  { %6642 = vmatpush1.bf16.msra.mxu0 %v8626_v46  ;;  %v3572_v46 = vld [vmem:[#allocation12 + $0x858] sm:$0xff] }
 0x572   :  { %6724 = vmatpush1.bf16.msra.mxu1 %v8628_v47  ;;  %6643 = vmatprep.subr.bf16.mxu0 %v8643_v20  ;;  %v8738_v47 = vcombine.low %v3547_v35, %v3555_v36  ;;  %v8740_v20 = vcombine.low %v3548_v37, %v3556_v49  ;;  %v8757_v30 = vcombine.high %v3564_v45, %v3572_v46  ;;  %v3659_v36 = vld [vmem:[#allocation12 + $0xb10] sm:$0xff]  ;;  %v3660_v49 = vld [vmem:[#allocation12 + $0xb18] sm:$0xff] }
 0x573   :  { %6725 = vmatprep.subr.bf16.mxu1 %v8645_v48  ;;  %v8755_v48 = vcombine.high %v3563_v43, %v3571_v44  ;;  %v3667_v37 = vld [vmem:[#allocation12 + $0xb50] sm:$0xff] }
 0x574   :  { %v3675_v44 = vld [vmem:[#allocation12 + $0xb90] sm:$0xff] }
 0x575   :  { %6644 = vmatpush1.bf16.msra.mxu0 %v8642_v53  ;;  %v3580_v53 = vld [vmem:[#allocation12 + $0x898] sm:$0xff] }
 0x576   :  { %6726 = vmatpush1.bf16.msra.mxu1 %v8644_v55  ;;  %6645 = vmatprep.subr.bf16.mxu0 %v8659_v56  ;;  %v3588_v55 = vld [vmem:[#allocation12 + $0x8d8] sm:$0xff]  ;;  %v8756_v56 = vcombine.low %v3564_v45, %v3572_v46  ;;  %v3683_v45 = vld [vmem:[#allocation12 + $0xbd0] sm:$0xff] }
 0x577   :  { %6727 = vmatprep.subr.bf16.mxu1 %v8661_v57  ;;  %v8771_v57 = vcombine.high %v3579_v51, %v3587_v12  ;;  %v8773_v17 = vcombine.high %v3580_v53, %v3588_v55  ;;  %v3676_v46 = vld [vmem:[#allocation12 + $0xb98] sm:$0xff] }
 0x579   :  { %6646 = vmatpush1.bf16.msra.mxu0 %v8658_v62  ;;  %v3604_v62 = vld [vmem:[#allocation12 + $0x958] sm:$0xff] }
 0x57a   :  { %6728 = vmatpush1.bf16.msra.mxu1 %v8660_v50  ;;  %6647 = vmatprep.subr.bf16.mxu0 %v8675_v0  ;;  %v8770_v50 = vcombine.low %v3579_v51, %v3587_v12  ;;  %v8772_v0 = vcombine.low %v3580_v53, %v3588_v55  ;;  %v8789_v4 = vcombine.high %v3596_v61, %v3604_v62  ;;  %v3691_v12 = vld [vmem:[#allocation12 + $0xc10] sm:$0xff]  ;;  %v3692_v53 = vld [vmem:[#allocation12 + $0xc18] sm:$0xff] }
 0x57b   :  { %6729 = vmatprep.subr.bf16.mxu1 %v8677_v1  ;;  %v8787_v1 = vcombine.high %v3595_v58, %v3603_v60  ;;  %v3700_v55 = vld [vmem:[#allocation12 + $0xc58] sm:$0xff] }
 0x57d   :  { %6648 = vmatpush1.bf16.msra.mxu0 %v8674_v11  ;;  %v3620_v11 = vld [vmem:[#allocation12 + $0x9d8] sm:$0xff] }
 0x57e   :  { %6730 = vmatpush1.bf16.msra.mxu1 %v8676_v13  ;;  %6649 = vmatprep.subr.bf16.mxu0 %v8691_v15  ;;  %v8786_v13 = vcombine.low %v3595_v58, %v3603_v60  ;;  %v8788_v15 = vcombine.low %v3596_v61, %v3604_v62  ;;  %v8805_v23 = vcombine.high %v3612_v8, %v3620_v11  ;;  %v3715_v61 = vld [vmem:[#allocation12 + $0xcd0] sm:$0xff]  ;;  %v3708_v62 = vld [vmem:[#allocation12 + $0xc98] sm:$0xff] }
 0x57f   :  { %6731 = vmatprep.subr.bf16.mxu1 %v8693_v16  ;;  %v8803_v16 = vcombine.high %v3611_v5, %v3619_v6  ;;  %v8885_v60 = vcombine.high %v3692_v53, %v3700_v55 }
 0x581   :  { %6650 = vmatpush1.bf16.msra.mxu0 %v8690_v27  ;;  %v3636_v27 = vld [vmem:[#allocation12 + $0xa58] sm:$0xff] }
 0x582   :  { %6732 = vmatpush1.bf16.msra.mxu1 %v8692_v28  ;;  %6651 = vmatprep.subr.bf16.mxu0 %v8707_v59  ;;  %v8802_v28 = vcombine.low %v3611_v5, %v3619_v6  ;;  %v8804_v59 = vcombine.low %v3612_v8, %v3620_v11  ;;  %v8821_v2 = vcombine.high %v3628_v26, %v3636_v27  ;;  %v3723_v6 = vld [vmem:[#allocation12 + $0xd10] sm:$0xff]  ;;  %v3724_v11 = vld [vmem:[#allocation12 + $0xd18] sm:$0xff] }
 0x583   :  { %6733 = vmatprep.subr.bf16.mxu1 %v8709_v7  ;;  %v8819_v7 = vcombine.high %v3627_v24, %v3635_v25  ;;  %v3731_v8 = vld [vmem:[#allocation12 + $0xd50] sm:$0xff] }
 0x585   :  { %6652 = vmatpush1.bf16.msra.mxu0 %v8706_v29  ;;  %v3652_v29 = vld [vmem:[#allocation12 + $0xad8] sm:$0xff] }
 0x586   :  { %6734 = vmatpush1.bf16.msra.mxu1 %v8708_v31  ;;  %6653 = vmatprep.subr.bf16.mxu0 %v8723_v33  ;;  %v8818_v31 = vcombine.low %v3627_v24, %v3635_v25  ;;  %v8820_v33 = vcombine.low %v3628_v26, %v3636_v27  ;;  %v8837_v35 = vcombine.high %v3644_v10, %v3652_v29  ;;  %v3739_v25 = vld [vmem:[#allocation12 + $0xd90] sm:$0xff]  ;;  %v3740_v27 = vld [vmem:[#allocation12 + $0xd98] sm:$0xff] }
 0x587   :  { %6735 = vmatprep.subr.bf16.mxu1 %v8725_v34  ;;  %v8835_v34 = vcombine.high %v3643_v9, %v3651_v63  ;;  %v3747_v26 = vld [vmem:[#allocation12 + $0xdd0] sm:$0xff] }
 0x589   :  { %6654 = vmatpush1.bf16.msra.mxu0 %v8722_v39  ;;  %v3668_v39 = vld [vmem:[#allocation12 + $0xb58] sm:$0xff] }
 0x58a   :  { %6736 = vmatpush1.bf16.msra.mxu1 %v8724_v40  ;;  %6655 = vmatprep.subr.bf16.mxu0 %v8739_v41  ;;  %v8834_v40 = vcombine.low %v3643_v9, %v3651_v63  ;;  %v8836_v41 = vcombine.low %v3644_v10, %v3652_v29  ;;  %v8853_v43 = vcombine.high %v3660_v49, %v3668_v39  ;;  %v3755_v63 = vld [vmem:[#allocation12 + $0xe10] sm:$0xff]  ;;  %v3756_v29 = vld [vmem:[#allocation12 + $0xe18] sm:$0xff] }
 0x58b   :  { %6737 = vmatprep.subr.bf16.mxu1 %v8741_v42  ;;  %v8851_v42 = vcombine.high %v3659_v36, %v3667_v37  ;;  %v3763_v10 = vld [vmem:[#allocation12 + $0xe50] sm:$0xff] }
 0x58d   :  { %6656 = vmatpush1.bf16.msra.mxu0 %v8738_v47  ;;  %v3684_v47 = vld [vmem:[#allocation12 + $0xbd8] sm:$0xff] }
 0x58e   :  { %6738 = vmatpush1.bf16.msra.mxu1 %v8740_v20  ;;  %6666 = vmatprep.subr.bf16.mxu0 %v8755_v48  ;;  %v8850_v20 = vcombine.low %v3659_v36, %v3667_v37  ;;  %v8852_v48 = vcombine.low %v3660_v49, %v3668_v39  ;;  %v8869_v51 = vcombine.high %v3676_v46, %v3684_v47  ;;  %v3771_v37 = vld [vmem:[#allocation12 + $0xe90] sm:$0xff]  ;;  %v3772_v39 = vld [vmem:[#allocation12 + $0xe98] sm:$0xff] }
 0x58f   :  { %6748 = vmatprep.subr.bf16.mxu1 %v8757_v30  ;;  %v8867_v30 = vcombine.high %v3675_v44, %v3683_v45  ;;  %v3779_v49 = vld [vmem:[#allocation12 + $0xed0] sm:$0xff] }
 0x590   :  { %6658 = vmatmul.mubr.bf16.vlgmr.msra.gmra.mrb[20].mxu0 %v10765_v3 }
 0x591   :  { %6740 = vmatmul.mubr.bf16.vlgmr.msra.gmra.mrb[20].mxu1 %v10765_v3  ;;  %6667 = vmatpush1.bf16.msra.mxu0 %v8754_v52  ;;  %v3699_v52 = vld [vmem:[#allocation12 + $0xc50] sm:$0xff] }
 0x592   :  { %6698 = vmatprep.mubr.bf16.mxu0 %v10769_v14  ;;  %6749 = vmatpush1.bf16.msra.mxu1 %v8756_v56  ;;  %v8866_v56 = vcombine.low %v3675_v44, %v3683_v45  ;;  %v8883_v58 = vcombine.high %v3691_v12, %v3699_v52  ;;  %v3787_v45 = vld [vmem:[#allocation12 + $0xf10] sm:$0xff] }
 0x593   :  { %6780 = vmatprep.mubr.bf16.mxu1 %v10769_v14  ;;  %6668 = vmatprep.subr.bf16.mxu0 %v8771_v57  ;;  %v8868_v57 = vcombine.low %v3676_v46, %v3684_v47  ;;  %v3795_v46 = vld [vmem:[#allocation12 + $0xf50] sm:$0xff]  ;;  %v3788_v47 = vld [vmem:[#allocation12 + $0xf18] sm:$0xff] }
 0x594   :  { %6750 = vmatprep.subr.bf16.mxu1 %v8773_v17  ;;  %v3707_v17 = vld [vmem:[#allocation12 + $0xc90] sm:$0xff] }
 0x595   :  { %6669 = vmatpush1.bf16.msra.mxu0 %v8770_v50  ;;  %v3716_v50 = vld [vmem:[#allocation12 + $0xcd8] sm:$0xff] }
 0x596   :  { %6751 = vmatpush1.bf16.msra.mxu1 %v8772_v0  ;;  %6670 = vmatprep.subr.bf16.mxu0 %v8787_v1  ;;  %v8882_v0 = vcombine.low %v3691_v12, %v3699_v52  ;;  %v8884_v1 = vcombine.low %v3692_v53, %v3700_v55  ;;  %v8901_v5 = vcombine.high %v3708_v62, %v3716_v50  ;;  %v3803_v52 = vld [vmem:[#allocation12 + $0xf90] sm:$0xff]  ;;  %v3804_v55 = vld [vmem:[#allocation12 + $0xf98] sm:$0xff] }
 0x597   :  { %6752 = vmatprep.subr.bf16.mxu1 %v8789_v4  ;;  %v8899_v4 = vcombine.high %v3707_v17, %v3715_v61  ;;  %v3811_v53 = vld [vmem:[#allocation12 + $0xfd0] sm:$0xff] }
 0x599   :  { %6671 = vmatpush1.bf16.msra.mxu0 %v8786_v13  ;;  %v3732_v13 = vld [vmem:[#allocation12 + $0xd58] sm:$0xff] }
 0x59a   :  { %6753 = vmatpush1.bf16.msra.mxu1 %v8788_v15  ;;  %6672 = vmatprep.subr.bf16.mxu0 %v8803_v16  ;;  %v8898_v15 = vcombine.low %v3707_v17, %v3715_v61  ;;  %v8900_v16 = vcombine.low %v3708_v62, %v3716_v50  ;;  %v8917_v24 = vcombine.high %v3724_v11, %v3732_v13  ;;  %v3309_v61 = vld [vmem:[#allocation12 + $0x20] sm:$0xff]  ;;  %v3310_v50 = vld [vmem:[#allocation12 + $0x28] sm:$0xff] }
 0x59b   :  { %6754 = vmatprep.subr.bf16.mxu1 %v8805_v23  ;;  %v8915_v23 = vcombine.high %v3723_v6, %v3731_v8  ;;  %v3317_v62 = vld [vmem:[#allocation12 + $0x60] sm:$0xff] }
 0x59d   :  { %6673 = vmatpush1.bf16.msra.mxu0 %v8802_v28  ;;  %v3748_v28 = vld [vmem:[#allocation12 + $0xdd8] sm:$0xff] }
 0x59e   :  { %6755 = vmatpush1.bf16.msra.mxu1 %v8804_v59  ;;  %6674 = vmatprep.subr.bf16.mxu0 %v8819_v7  ;;  %v8914_v59 = vcombine.low %v3723_v6, %v3731_v8  ;;  %v8916_v7 = vcombine.low %v3724_v11, %v3732_v13  ;;  %v8933_v9 = vcombine.high %v3740_v27, %v3748_v28  ;;  %v3325_v8 = vld [vmem:[#allocation12 + $0xa0] sm:$0xff] }
 0x59f   :  { %6756 = vmatprep.subr.bf16.mxu1 %v8821_v2  ;;  %v8931_v2 = vcombine.high %v3739_v25, %v3747_v26  ;;  %v3333_v11 = vld [vmem:[#allocation12 + $0xe0] sm:$0xff]  ;;  %v8502_v13 = vcombine.low %v3309_v61, %v3317_v62 }
 0x5a1   :  { %6675 = vmatpush1.bf16.msra.mxu0 %v8818_v31  ;;  %v3764_v31 = vld [vmem:[#allocation12 + $0xe58] sm:$0xff] }
 0x5a2   :  { %6757 = vmatpush1.bf16.msra.mxu1 %v8820_v33  ;;  %6676 = vmatprep.subr.bf16.mxu0 %v8835_v34  ;;  %v8930_v33 = vcombine.low %v3739_v25, %v3747_v26  ;;  %v8932_v34 = vcombine.low %v3740_v27, %v3748_v28  ;;  %v8949_v36 = vcombine.high %v3756_v29, %v3764_v31  ;;  %v3341_v25 = vld [vmem:[#allocation12 + $0x120] sm:$0xff]  ;;  %v3342_v28 = vld [vmem:[#allocation12 + $0x128] sm:$0xff] }
 0x5a3   :  { %6758 = vmatprep.subr.bf16.mxu1 %v8837_v35  ;;  %v8947_v35 = vcombine.high %v3755_v63, %v3763_v10  ;;  %v3349_v26 = vld [vmem:[#allocation12 + $0x160] sm:$0xff] }
 0x5a5   :  { %6677 = vmatpush1.bf16.msra.mxu0 %v8834_v40  ;;  %v3780_v40 = vld [vmem:[#allocation12 + $0xed8] sm:$0xff] }
 0x5a6   :  { %6759 = vmatpush1.bf16.msra.mxu1 %v8836_v41  ;;  %6678 = vmatprep.subr.bf16.mxu0 %v8851_v42  ;;  %v8946_v41 = vcombine.low %v3755_v63, %v3763_v10  ;;  %v8948_v42 = vcombine.low %v3756_v29, %v3764_v31  ;;  %v8965_v44 = vcombine.high %v3772_v39, %v3780_v40  ;;  %v3357_v10 = vld [vmem:[#allocation12 + $0x1a0] sm:$0xff]  ;;  %v3358_v31 = vld [vmem:[#allocation12 + $0x1a8] sm:$0xff] }
 0x5a7   :  { %6760 = vmatprep.subr.bf16.mxu1 %v8853_v43  ;;  %v8963_v43 = vcombine.high %v3771_v37, %v3779_v49  ;;  %v3365_v29 = vld [vmem:[#allocation12 + $0x1e0] sm:$0xff] }
 0x5a9   :  { %6679 = vmatpush1.bf16.msra.mxu0 %v8850_v20  ;;  %v3796_v20 = vld [vmem:[#allocation12 + $0xf58] sm:$0xff] }
 0x5aa   :  { %6761 = vmatpush1.bf16.msra.mxu1 %v8852_v48  ;;  %6680 = vmatprep.subr.bf16.mxu0 %v8867_v30  ;;  %v8962_v48 = vcombine.low %v3771_v37, %v3779_v49  ;;  %v8964_v30 = vcombine.low %v3772_v39, %v3780_v40  ;;  %v8981_v12 = vcombine.high %v3788_v47, %v3796_v20  ;;  %v3373_v49 = vld [vmem:[#allocation12 + $0x220] sm:$0xff]  ;;  %v3374_v40 = vld [vmem:[#allocation12 + $0x228] sm:$0xff] }
 0x5ab   :  { %6762 = vmatprep.subr.bf16.mxu1 %v8869_v51  ;;  %v8979_v51 = vcombine.high %v3787_v45, %v3795_v46  ;;  %v3381_v39 = vld [vmem:[#allocation12 + $0x260] sm:$0xff] }
 0x5ad   :  { %6681 = vmatpush1.bf16.msra.mxu0 %v8866_v56  ;;  %v3812_v56 = vld [vmem:[#allocation12 + $0xfd8] sm:$0xff] }
 0x5ae   :  { %6763 = vmatpush1.bf16.msra.mxu1 %v8868_v57  ;;  %6682 = vmatprep.subr.bf16.mxu0 %v8883_v58  ;;  %v8978_v57 = vcombine.low %v3787_v45, %v3795_v46  ;;  %v8980_v58 = vcombine.low %v3788_v47, %v3796_v20  ;;  %v8997_v17 = vcombine.high %v3804_v55, %v3812_v56  ;;  %v3389_v46 = vld [vmem:[#allocation12 + $0x2a0] sm:$0xff]  ;;  %v3390_v20 = vld [vmem:[#allocation12 + $0x2a8] sm:$0xff] }
 0x5af   :  { %6764 = vmatprep.subr.bf16.mxu1 %v8885_v60  ;;  %v8995_v60 = vcombine.high %v3803_v52, %v3811_v53  ;;  %v3397_v47 = vld [vmem:[#allocation12 + $0x2e0] sm:$0xff] }
 0x5b1   :  { %6683 = vmatpush1.bf16.msra.mxu0 %v8882_v0  ;;  %v3318_v0 = vld [vmem:[#allocation12 + $0x68] sm:$0xff] }
 0x5b2   :  { %6765 = vmatpush1.bf16.msra.mxu1 %v8884_v1  ;;  %6684 = vmatprep.subr.bf16.mxu0 %v8899_v4  ;;  %v8994_v1 = vcombine.low %v3803_v52, %v3811_v53  ;;  %v8996_v4 = vcombine.low %v3804_v55, %v3812_v56  ;;  %v8505_v6 = vcombine.high %v3310_v50, %v3318_v0  ;;  %v3405_v53 = vld [vmem:[#allocation12 + $0x320] sm:$0xff]  ;;  %v3406_v56 = vld [vmem:[#allocation12 + $0x328] sm:$0xff] }
 0x5b3   :  { %6766 = vmatprep.subr.bf16.mxu1 %v8901_v5  ;;  %v8503_v5 = vcombine.high %v3309_v61, %v3317_v62  ;;  %v3413_v55 = vld [vmem:[#allocation12 + $0x360] sm:$0xff] }
 0x5b4   :  { %v3421_v62 = vld [vmem:[#allocation12 + $0x3a0] sm:$0xff] }
 0x5b5   :  { %6685 = vmatpush1.bf16.msra.mxu0 %v8898_v15  ;;  %v3326_v15 = vld [vmem:[#allocation12 + $0xa8] sm:$0xff] }
 0x5b6   :  { %6767 = vmatpush1.bf16.msra.mxu1 %v8900_v16  ;;  %6686 = vmatprep.subr.bf16.mxu0 %v8915_v23  ;;  %v3334_v16 = vld [vmem:[#allocation12 + $0xe8] sm:$0xff]  ;;  %v8504_v23 = vcombine.low %v3310_v50, %v3318_v0  ;;  %v3429_v50 = vld [vmem:[#allocation12 + $0x3e0] sm:$0xff] }
 0x5b7   :  { %6768 = vmatprep.subr.bf16.mxu1 %v8917_v24  ;;  %v8519_v24 = vcombine.high %v3325_v8, %v3333_v11  ;;  %v8521_v27 = vcombine.high %v3326_v15, %v3334_v16  ;;  %v3422_v0 = vld [vmem:[#allocation12 + $0x3a8] sm:$0xff] }
 0x5b9   :  { %6687 = vmatpush1.bf16.msra.mxu0 %v8914_v59  ;;  %v3350_v59 = vld [vmem:[#allocation12 + $0x168] sm:$0xff] }
 0x5ba   :  { %6769 = vmatpush1.bf16.msra.mxu1 %v8916_v7  ;;  %6688 = vmatprep.subr.bf16.mxu0 %v8931_v2  ;;  %v8518_v7 = vcombine.low %v3325_v8, %v3333_v11  ;;  %v8520_v2 = vcombine.low %v3326_v15, %v3334_v16  ;;  %v8537_v63 = vcombine.high %v3342_v28, %v3350_v59  ;;  %v3437_v11 = vld [vmem:[#allocation12 + $0x420] sm:$0xff]  ;;  %v3438_v15 = vld [vmem:[#allocation12 + $0x428] sm:$0xff] }
 0x5bb   :  { %6770 = vmatprep.subr.bf16.mxu1 %v8933_v9  ;;  %v8535_v9 = vcombine.high %v3341_v25, %v3349_v26  ;;  %v3446_v16 = vld [vmem:[#allocation12 + $0x468] sm:$0xff] }
 0x5bd   :  { %6689 = vmatpush1.bf16.msra.mxu0 %v8930_v33  ;;  %v3366_v33 = vld [vmem:[#allocation12 + $0x1e8] sm:$0xff] }
 0x5be   :  { %6771 = vmatpush1.bf16.msra.mxu1 %v8932_v34  ;;  %6690 = vmatprep.subr.bf16.mxu0 %v8947_v35  ;;  %v8534_v34 = vcombine.low %v3341_v25, %v3349_v26  ;;  %v8536_v35 = vcombine.low %v3342_v28, %v3350_v59  ;;  %v8553_v37 = vcombine.high %v3358_v31, %v3366_v33  ;;  %v3461_v28 = vld [vmem:[#allocation12 + $0x4e0] sm:$0xff]  ;;  %v3454_v59 = vld [vmem:[#allocation12 + $0x4a8] sm:$0xff] }
 0x5bf   :  { %6772 = vmatprep.subr.bf16.mxu1 %v8949_v36  ;;  %v8551_v36 = vcombine.high %v3357_v10, %v3365_v29  ;;  %v8633_v26 = vcombine.high %v3438_v15, %v3446_v16 }
 0x5c1   :  { %6691 = vmatpush1.bf16.msra.mxu0 %v8946_v41  ;;  %v3382_v41 = vld [vmem:[#allocation12 + $0x268] sm:$0xff] }
 0x5c2   :  { %6773 = vmatpush1.bf16.msra.mxu1 %v8948_v42  ;;  %6692 = vmatprep.subr.bf16.mxu0 %v8963_v43  ;;  %v8550_v42 = vcombine.low %v3357_v10, %v3365_v29  ;;  %v8552_v43 = vcombine.low %v3358_v31, %v3366_v33  ;;  %v8569_v45 = vcombine.high %v3374_v40, %v3382_v41  ;;  %v3469_v29 = vld [vmem:[#allocation12 + $0x520] sm:$0xff]  ;;  %v3470_v33 = vld [vmem:[#allocation12 + $0x528] sm:$0xff] }
 0x5c3   :  { %6774 = vmatprep.subr.bf16.mxu1 %v8965_v44  ;;  %v8567_v44 = vcombine.high %v3373_v49, %v3381_v39  ;;  %v3477_v31 = vld [vmem:[#allocation12 + $0x560] sm:$0xff] }
 0x5c5   :  { %6693 = vmatpush1.bf16.msra.mxu0 %v8962_v48  ;;  %v3398_v48 = vld [vmem:[#allocation12 + $0x2e8] sm:$0xff] }
 0x5c6   :  { %6775 = vmatpush1.bf16.msra.mxu1 %v8964_v30  ;;  %6694 = vmatprep.subr.bf16.mxu0 %v8979_v51  ;;  %v8566_v30 = vcombine.low %v3373_v49, %v3381_v39  ;;  %v8568_v51 = vcombine.low %v3374_v40, %v3382_v41  ;;  %v8585_v52 = vcombine.high %v3390_v20, %v3398_v48  ;;  %v3485_v39 = vld [vmem:[#allocation12 + $0x5a0] sm:$0xff]  ;;  %v3486_v41 = vld [vmem:[#allocation12 + $0x5a8] sm:$0xff] }
 0x5c7   :  { %6776 = vmatprep.subr.bf16.mxu1 %v8981_v12  ;;  %v8583_v12 = vcombine.high %v3389_v46, %v3397_v47  ;;  %v3493_v40 = vld [vmem:[#allocation12 + $0x5e0] sm:$0xff] }
 0x5c9   :  { %6695 = vmatpush1.bf16.msra.mxu0 %v8978_v57  ;;  %v3414_v57 = vld [vmem:[#allocation12 + $0x368] sm:$0xff] }
 0x5ca   :  { %6777 = vmatpush1.bf16.msra.mxu1 %v8980_v58  ;;  %6696 = vmatprep.subr.bf16.mxu0 %v8995_v60  ;;  %v8582_v58 = vcombine.low %v3389_v46, %v3397_v47  ;;  %v8584_v60 = vcombine.low %v3390_v20, %v3398_v48  ;;  %v8601_v61 = vcombine.high %v3406_v56, %v3414_v57  ;;  %v3501_v47 = vld [vmem:[#allocation12 + $0x620] sm:$0xff]  ;;  %v3502_v48 = vld [vmem:[#allocation12 + $0x628] sm:$0xff] }
 0x5cb   :  { %6778 = vmatprep.subr.bf16.mxu1 %v8997_v17  ;;  %v8599_v17 = vcombine.high %v3405_v53, %v3413_v55  ;;  %v3509_v20 = vld [vmem:[#allocation12 + $0x660] sm:$0xff] }
 0x5cd   :  { %6697 = vmatpush1.bf16.msra.mxu0 %v8994_v1  ;;  %v3430_v1 = vld [vmem:[#allocation12 + $0x3e8] sm:$0xff] }
 0x5ce   :  { %6779 = vmatpush1.bf16.msra.mxu1 %v8996_v4  ;;  %6789 = vmatprep.subr.bf16.mxu0 %v8503_v5  ;;  %v8598_v4 = vcombine.low %v3405_v53, %v3413_v55  ;;  %v8600_v5 = vcombine.low %v3406_v56, %v3414_v57  ;;  %v8617_v8 = vcombine.high %v3422_v0, %v3430_v1  ;;  %v3517_v55 = vld [vmem:[#allocation12 + $0x6a0] sm:$0xff]  ;;  %v3518_v57 = vld [vmem:[#allocation12 + $0x6a8] sm:$0xff] }
 0x5cf   :  { %6871 = vmatprep.subr.bf16.mxu1 %v8505_v6  ;;  %v8615_v6 = vcombine.high %v3421_v62, %v3429_v50  ;;  %v3525_v56 = vld [vmem:[#allocation12 + $0x6e0] sm:$0xff] }
 0x5d0   :  { %6699 = vmatmul.mubr.bf16.vlgmr.msra.gmra.mrb[20].mxu0 %v10791_v38 }
 0x5d1   :  { %6781 = vmatmul.mubr.bf16.vlgmr.msra.gmra.mrb[20].mxu1 %v10791_v38  ;;  %6790 = vmatpush1.bf16.msra.mxu0 %v8502_v13  ;;  %v3445_v13 = vld [vmem:[#allocation12 + $0x460] sm:$0xff] }
 0x5d2   :  { %6821 = vmatprep.mubr.bf16.mxu0 %v10763_v54  ;;  %6872 = vmatpush1.bf16.msra.mxu1 %v8504_v23  ;;  %v8614_v23 = vcombine.low %v3421_v62, %v3429_v50  ;;  %v8631_v25 = vcombine.high %v3437_v11, %v3445_v13  ;;  %v3533_v50 = vld [vmem:[#allocation12 + $0x720] sm:$0xff] }
 0x5d3   :  { %6903 = vmatprep.mubr.bf16.mxu1 %v10763_v54  ;;  %6791 = vmatprep.subr.bf16.mxu0 %v8519_v24  ;;  %v8616_v24 = vcombine.low %v3422_v0, %v3430_v1  ;;  %v3541_v0 = vld [vmem:[#allocation12 + $0x760] sm:$0xff]  ;;  %v3534_v1 = vld [vmem:[#allocation12 + $0x728] sm:$0xff] }
 0x5d4   :  { %6873 = vmatprep.subr.bf16.mxu1 %v8521_v27  ;;  %v3453_v27 = vld [vmem:[#allocation12 + $0x4a0] sm:$0xff] }
 0x5d5   :  { %6792 = vmatpush1.bf16.msra.mxu0 %v8518_v7  ;;  %v3462_v7 = vld [vmem:[#allocation12 + $0x4e8] sm:$0xff] }
 0x5d6   :  { %6874 = vmatpush1.bf16.msra.mxu1 %v8520_v2  ;;  %6793 = vmatprep.subr.bf16.mxu0 %v8535_v9  ;;  %v8630_v2 = vcombine.low %v3437_v11, %v3445_v13  ;;  %v8632_v9 = vcombine.low %v3438_v15, %v3446_v16  ;;  %v8649_v10 = vcombine.high %v3454_v59, %v3462_v7  ;;  %v3549_v13 = vld [vmem:[#allocation12 + $0x7a0] sm:$0xff]  ;;  %v3550_v16 = vld [vmem:[#allocation12 + $0x7a8] sm:$0xff] }
 0x5d7   :  { %6875 = vmatprep.subr.bf16.mxu1 %v8537_v63  ;;  %v8647_v63 = vcombine.high %v3453_v27, %v3461_v28  ;;  %v3557_v15 = vld [vmem:[#allocation12 + $0x7e0] sm:$0xff] }
 0x5d9   :  { %6794 = vmatpush1.bf16.msra.mxu0 %v8534_v34  ;;  %v3478_v34 = vld [vmem:[#allocation12 + $0x568] sm:$0xff] }
 0x5da   :  { %6876 = vmatpush1.bf16.msra.mxu1 %v8536_v35  ;;  %6795 = vmatprep.subr.bf16.mxu0 %v8551_v36  ;;  %v8646_v35 = vcombine.low %v3453_v27, %v3461_v28  ;;  %v8648_v36 = vcombine.low %v3454_v59, %v3462_v7  ;;  %v8665_v49 = vcombine.high %v3470_v33, %v3478_v34  ;;  %v3565_v28 = vld [vmem:[#allocation12 + $0x820] sm:$0xff]  ;;  %v3566_v7 = vld [vmem:[#allocation12 + $0x828] sm:$0xff] }
 0x5db   :  { %6877 = vmatprep.subr.bf16.mxu1 %v8553_v37  ;;  %v8663_v37 = vcombine.high %v3469_v29, %v3477_v31  ;;  %v3573_v59 = vld [vmem:[#allocation12 + $0x860] sm:$0xff] }
 0x5dd   :  { %6796 = vmatpush1.bf16.msra.mxu0 %v8550_v42  ;;  %v3494_v42 = vld [vmem:[#allocation12 + $0x5e8] sm:$0xff] }
 0x5de   :  { %6878 = vmatpush1.bf16.msra.mxu1 %v8552_v43  ;;  %6797 = vmatprep.subr.bf16.mxu0 %v8567_v44  ;;  %v8662_v43 = vcombine.low %v3469_v29, %v3477_v31  ;;  %v8664_v44 = vcombine.low %v3470_v33, %v3478_v34  ;;  %v8681_v46 = vcombine.high %v3486_v41, %v3494_v42  ;;  %v3581_v31 = vld [vmem:[#allocation12 + $0x8a0] sm:$0xff] }
 0x5df   :  { %6879 = vmatprep.subr.bf16.mxu1 %v8569_v45  ;;  %v8679_v45 = vcombine.high %v3485_v39, %v3493_v40  ;;  %v3589_v33 = vld [vmem:[#allocation12 + $0x8e0] sm:$0xff]  ;;  %v8758_v34 = vcombine.low %v3565_v28, %v3573_v59 }
 0x5e1   :  { %6798 = vmatpush1.bf16.msra.mxu0 %v8566_v30  ;;  %v3510_v30 = vld [vmem:[#allocation12 + $0x668] sm:$0xff] }
 0x5e2   :  { %6880 = vmatpush1.bf16.msra.mxu1 %v8568_v51  ;;  %6799 = vmatprep.subr.bf16.mxu0 %v8583_v12  ;;  %v8678_v51 = vcombine.low %v3485_v39, %v3493_v40  ;;  %v8680_v12 = vcombine.low %v3486_v41, %v3494_v42  ;;  %v8697_v53 = vcombine.high %v3502_v48, %v3510_v30  ;;  %v3597_v39 = vld [vmem:[#allocation12 + $0x920] sm:$0xff]  ;;  %v3598_v42 = vld [vmem:[#allocation12 + $0x928] sm:$0xff] }
 0x5e3   :  { %6881 = vmatprep.subr.bf16.mxu1 %v8585_v52  ;;  %v8695_v52 = vcombine.high %v3501_v47, %v3509_v20  ;;  %v3605_v40 = vld [vmem:[#allocation12 + $0x960] sm:$0xff] }
 0x5e5   :  { %6800 = vmatpush1.bf16.msra.mxu0 %v8582_v58  ;;  %v3526_v58 = vld [vmem:[#allocation12 + $0x6e8] sm:$0xff] }
 0x5e6   :  { %6882 = vmatpush1.bf16.msra.mxu1 %v8584_v60  ;;  %6801 = vmatprep.subr.bf16.mxu0 %v8599_v17  ;;  %v8694_v60 = vcombine.low %v3501_v47, %v3509_v20  ;;  %v8696_v17 = vcombine.low %v3502_v48, %v3510_v30  ;;  %v8713_v62 = vcombine.high %v3518_v57, %v3526_v58  ;;  %v3613_v20 = vld [vmem:[#allocation12 + $0x9a0] sm:$0xff]  ;;  %v3614_v30 = vld [vmem:[#allocation12 + $0x9a8] sm:$0xff] }
 0x5e7   :  { %6883 = vmatprep.subr.bf16.mxu1 %v8601_v61  ;;  %v8711_v61 = vcombine.high %v3517_v55, %v3525_v56  ;;  %v3621_v48 = vld [vmem:[#allocation12 + $0x9e0] sm:$0xff] }
 0x5e9   :  { %6802 = vmatpush1.bf16.msra.mxu0 %v8598_v4  ;;  %v3542_v4 = vld [vmem:[#allocation12 + $0x768] sm:$0xff] }
 0x5ea   :  { %6884 = vmatpush1.bf16.msra.mxu1 %v8600_v5  ;;  %6803 = vmatprep.subr.bf16.mxu0 %v8615_v6  ;;  %v8710_v5 = vcombine.low %v3517_v55, %v3525_v56  ;;  %v8712_v6 = vcombine.low %v3518_v57, %v3526_v58  ;;  %v8729_v11 = vcombine.high %v3534_v1, %v3542_v4  ;;  %v3629_v56 = vld [vmem:[#allocation12 + $0xa20] sm:$0xff]  ;;  %v3630_v58 = vld [vmem:[#allocation12 + $0xa28] sm:$0xff] }
 0x5eb   :  { %6885 = vmatprep.subr.bf16.mxu1 %v8617_v8  ;;  %v8727_v8 = vcombine.high %v3533_v50, %v3541_v0  ;;  %v3637_v57 = vld [vmem:[#allocation12 + $0xa60] sm:$0xff] }
 0x5ed   :  { %6804 = vmatpush1.bf16.msra.mxu0 %v8614_v23  ;;  %v3558_v23 = vld [vmem:[#allocation12 + $0x7e8] sm:$0xff] }
 0x5ee   :  { %6886 = vmatpush1.bf16.msra.mxu1 %v8616_v24  ;;  %6805 = vmatprep.subr.bf16.mxu0 %v8631_v25  ;;  %v8726_v24 = vcombine.low %v3533_v50, %v3541_v0  ;;  %v8728_v25 = vcombine.low %v3534_v1, %v3542_v4  ;;  %v8745_v27 = vcombine.high %v3550_v16, %v3558_v23  ;;  %v3645_v0 = vld [vmem:[#allocation12 + $0xaa0] sm:$0xff]  ;;  %v3646_v4 = vld [vmem:[#allocation12 + $0xaa8] sm:$0xff] }
 0x5ef   :  { %6887 = vmatprep.subr.bf16.mxu1 %v8633_v26  ;;  %v8743_v26 = vcombine.high %v3549_v13, %v3557_v15  ;;  %v3653_v1 = vld [vmem:[#allocation12 + $0xae0] sm:$0xff] }
 0x5f1   :  { %6806 = vmatpush1.bf16.msra.mxu0 %v8630_v2  ;;  %v3574_v2 = vld [vmem:[#allocation12 + $0x868] sm:$0xff] }
 0x5f2   :  { %6888 = vmatpush1.bf16.msra.mxu1 %v8632_v9  ;;  %6807 = vmatprep.subr.bf16.mxu0 %v8647_v63  ;;  %v8742_v9 = vcombine.low %v3549_v13, %v3557_v15  ;;  %v8744_v63 = vcombine.low %v3550_v16, %v3558_v23  ;;  %v8761_v29 = vcombine.high %v3566_v7, %v3574_v2  ;;  %v3661_v15 = vld [vmem:[#allocation12 + $0xb20] sm:$0xff]  ;;  %v3662_v23 = vld [vmem:[#allocation12 + $0xb28] sm:$0xff] }
 0x5f3   :  { %6889 = vmatprep.subr.bf16.mxu1 %v8649_v10  ;;  %v8759_v10 = vcombine.high %v3565_v28, %v3573_v59  ;;  %v3669_v16 = vld [vmem:[#allocation12 + $0xb60] sm:$0xff] }
 0x5f5   :  { %6808 = vmatpush1.bf16.msra.mxu0 %v8646_v35  ;;  %v3582_v35 = vld [vmem:[#allocation12 + $0x8a8] sm:$0xff] }
 0x5f6   :  { %6890 = vmatpush1.bf16.msra.mxu1 %v8648_v36  ;;  %6809 = vmatprep.subr.bf16.mxu0 %v8663_v37  ;;  %v3590_v36 = vld [vmem:[#allocation12 + $0x8e8] sm:$0xff]  ;;  %v8760_v37 = vcombine.low %v3566_v7, %v3574_v2  ;;  %v3677_v2 = vld [vmem:[#allocation12 + $0xba0] sm:$0xff] }
 0x5f7   :  { %6891 = vmatprep.subr.bf16.mxu1 %v8665_v49  ;;  %v8775_v49 = vcombine.high %v3581_v31, %v3589_v33  ;;  %v8777_v41 = vcombine.high %v3582_v35, %v3590_v36 }
 0x5f9   :  { %6810 = vmatpush1.bf16.msra.mxu0 %v8662_v43  ;;  %v3606_v43 = vld [vmem:[#allocation12 + $0x968] sm:$0xff] }
 0x5fa   :  { %6892 = vmatpush1.bf16.msra.mxu1 %v8664_v44  ;;  %6811 = vmatprep.subr.bf16.mxu0 %v8679_v45  ;;  %v8774_v44 = vcombine.low %v3581_v31, %v3589_v33  ;;  %v8776_v45 = vcombine.low %v3582_v35, %v3590_v36  ;;  %v8793_v47 = vcombine.high %v3598_v42, %v3606_v43  ;;  %v3686_v31 = vld [vmem:[#allocation12 + $0xbe8] sm:$0xff] }
 0x5fb   :  { %6893 = vmatprep.subr.bf16.mxu1 %v8681_v46  ;;  %v8791_v46 = vcombine.high %v3597_v39, %v3605_v40  ;;  %v8854_v35 = vcombine.low %v3661_v15, %v3669_v16 }
 0x5fd   :  { %6812 = vmatpush1.bf16.msra.mxu0 %v8678_v51  ;;  %v3622_v51 = vld [vmem:[#allocation12 + $0x9e8] sm:$0xff] }
 0x5fe   :  { %6894 = vmatpush1.bf16.msra.mxu1 %v8680_v12  ;;  %6813 = vmatprep.subr.bf16.mxu0 %v8695_v52  ;;  %v8790_v12 = vcombine.low %v3597_v39, %v3605_v40  ;;  %v8792_v52 = vcombine.low %v3598_v42, %v3606_v43  ;;  %v8809_v55 = vcombine.high %v3614_v30, %v3622_v51  ;;  %v3701_v42 = vld [vmem:[#allocation12 + $0xc60] sm:$0xff]  ;;  %v3694_v43 = vld [vmem:[#allocation12 + $0xc28] sm:$0xff] }
 0x5ff   :  { %6895 = vmatprep.subr.bf16.mxu1 %v8697_v53  ;;  %v8807_v53 = vcombine.high %v3613_v20, %v3621_v48 }
 0x601   :  { %6814 = vmatpush1.bf16.msra.mxu0 %v8694_v60  ;;  %v3638_v60 = vld [vmem:[#allocation12 + $0xa68] sm:$0xff] }
 0x602   :  { %6896 = vmatpush1.bf16.msra.mxu1 %v8696_v17  ;;  %6815 = vmatprep.subr.bf16.mxu0 %v8711_v61  ;;  %v8806_v17 = vcombine.low %v3613_v20, %v3621_v48  ;;  %v8808_v61 = vcombine.low %v3614_v30, %v3622_v51  ;;  %v8825_v50 = vcombine.high %v3630_v58, %v3638_v60  ;;  %v3709_v48 = vld [vmem:[#allocation12 + $0xca0] sm:$0xff]  ;;  %v3710_v51 = vld [vmem:[#allocation12 + $0xca8] sm:$0xff] }
 0x603   :  { %6897 = vmatprep.subr.bf16.mxu1 %v8713_v62  ;;  %v8823_v62 = vcombine.high %v3629_v56, %v3637_v57  ;;  %v3717_v30 = vld [vmem:[#allocation12 + $0xce0] sm:$0xff] }
 0x605   :  { %6816 = vmatpush1.bf16.msra.mxu0 %v8710_v5  ;;  %v3654_v5 = vld [vmem:[#allocation12 + $0xae8] sm:$0xff] }
 0x606   :  { %6898 = vmatpush1.bf16.msra.mxu1 %v8712_v6  ;;  %6817 = vmatprep.subr.bf16.mxu0 %v8727_v8  ;;  %v8822_v6 = vcombine.low %v3629_v56, %v3637_v57  ;;  %v8824_v8 = vcombine.low %v3630_v58, %v3638_v60  ;;  %v8841_v13 = vcombine.high %v3646_v4, %v3654_v5  ;;  %v3725_v57 = vld [vmem:[#allocation12 + $0xd20] sm:$0xff]  ;;  %v3726_v60 = vld [vmem:[#allocation12 + $0xd28] sm:$0xff] }
 0x607   :  { %6899 = vmatprep.subr.bf16.mxu1 %v8729_v11  ;;  %v8839_v11 = vcombine.high %v3645_v0, %v3653_v1  ;;  %v3733_v58 = vld [vmem:[#allocation12 + $0xd60] sm:$0xff] }
 0x609   :  { %6818 = vmatpush1.bf16.msra.mxu0 %v8726_v24  ;;  %v3670_v24 = vld [vmem:[#allocation12 + $0xb68] sm:$0xff] }
 0x60a   :  { %6900 = vmatpush1.bf16.msra.mxu1 %v8728_v25  ;;  %6819 = vmatprep.subr.bf16.mxu0 %v8743_v26  ;;  %v8838_v25 = vcombine.low %v3645_v0, %v3653_v1  ;;  %v8840_v26 = vcombine.low %v3646_v4, %v3654_v5  ;;  %v8857_v7 = vcombine.high %v3662_v23, %v3670_v24  ;;  %v3741_v1 = vld [vmem:[#allocation12 + $0xda0] sm:$0xff]  ;;  %v3742_v5 = vld [vmem:[#allocation12 + $0xda8] sm:$0xff] }
 0x60b   :  { %6901 = vmatprep.subr.bf16.mxu1 %v8745_v27  ;;  %v8855_v27 = vcombine.high %v3661_v15, %v3669_v16  ;;  %v3749_v4 = vld [vmem:[#allocation12 + $0xde0] sm:$0xff] }
 0x60c   :  { %v3757_v16 = vld [vmem:[#allocation12 + $0xe20] sm:$0xff] }
 0x60d   :  { %6820 = vmatpush1.bf16.msra.mxu0 %v8742_v9  ;;  %v3685_v9 = vld [vmem:[#allocation12 + $0xbe0] sm:$0xff] }
 0x60e   :  { %6902 = vmatpush1.bf16.msra.mxu1 %v8744_v63  ;;  %6830 = vmatprep.subr.bf16.mxu0 %v8759_v10  ;;  %v8871_v39 = vcombine.high %v3677_v2, %v3685_v9 }
 0x60f   :  { %6912 = vmatprep.subr.bf16.mxu1 %v8761_v29  ;;  %v3678_v29 = vld [vmem:[#allocation12 + $0xba8] sm:$0xff] }
 0x610   :  { %6822 = vmatmul.mubr.bf16.vlgmr.msra.gmra.mrb[24].mxu0 %v10765_v3  ;;  %v8873_v40 = vcombine.high %v3678_v29, %v3686_v31 }
 0x611   :  { %6904 = vmatmul.mubr.bf16.vlgmr.msra.gmra.mrb[24].mxu1 %v10765_v3  ;;  %6831 = vmatpush1.bf16.msra.mxu0 %v8758_v34 }
 0x612   :  { %6862 = vmatprep.mubr.bf16.mxu0 %v10769_v14  ;;  %6913 = vmatpush1.bf16.msra.mxu1 %v8760_v37 }
 0x613   :  { %6944 = vmatprep.mubr.bf16.mxu1 %v10769_v14  ;;  %6832 = vmatprep.subr.bf16.mxu0 %v8775_v49  ;;  %v8856_v49 = vcombine.low %v3662_v23, %v3670_v24  ;;  %v3765_v23 = vld [vmem:[#allocation12 + $0xe60] sm:$0xff]  ;;  %v3758_v24 = vld [vmem:[#allocation12 + $0xe28] sm:$0xff] }
 0x614   :  { %6914 = vmatprep.subr.bf16.mxu1 %v8777_v41  ;;  %v3693_v41 = vld [vmem:[#allocation12 + $0xc20] sm:$0xff] }
 0x615   :  { %6833 = vmatpush1.bf16.msra.mxu0 %v8774_v44  ;;  %v3702_v44 = vld [vmem:[#allocation12 + $0xc68] sm:$0xff] }
 0x616   :  { %6915 = vmatpush1.bf16.msra.mxu1 %v8776_v45  ;;  %6834 = vmatprep.subr.bf16.mxu0 %v8791_v46  ;;  %v8870_v45 = vcombine.low %v3677_v2, %v3685_v9  ;;  %v8872_v46 = vcombine.low %v3678_v29, %v3686_v31  ;;  %v8889_v20 = vcombine.high %v3694_v43, %v3702_v44  ;;  %v3773_v9 = vld [vmem:[#allocation12 + $0xea0] sm:$0xff]  ;;  %v3774_v31 = vld [vmem:[#allocation12 + $0xea8] sm:$0xff] }
 0x617   :  { %6916 = vmatprep.subr.bf16.mxu1 %v8793_v47  ;;  %v8887_v47 = vcombine.high %v3693_v41, %v3701_v42  ;;  %v3781_v29 = vld [vmem:[#allocation12 + $0xee0] sm:$0xff] }
 0x619   :  { %6835 = vmatpush1.bf16.msra.mxu0 %v8790_v12  ;;  %v3718_v12 = vld [vmem:[#allocation12 + $0xce8] sm:$0xff] }
 0x61a   :  { %6917 = vmatpush1.bf16.msra.mxu1 %v8792_v52  ;;  %6836 = vmatprep.subr.bf16.mxu0 %v8807_v53  ;;  %v8886_v52 = vcombine.low %v3693_v41, %v3701_v42  ;;  %v8888_v53 = vcombine.low %v3694_v43, %v3702_v44  ;;  %v8905_v56 = vcombine.high %v3710_v51, %v3718_v12  ;;  %v3798_v41 = vld [vmem:[#allocation12 + $0xf68] sm:$0xff] }
 0x61b   :  { %6918 = vmatprep.subr.bf16.mxu1 %v8809_v55  ;;  %v8903_v55 = vcombine.high %v3709_v48, %v3717_v30  ;;  %v8966_v42 = vcombine.low %v3773_v9, %v3781_v29 }
 0x61d   :  { %6837 = vmatpush1.bf16.msra.mxu0 %v8806_v17  ;;  %v3734_v17 = vld [vmem:[#allocation12 + $0xd68] sm:$0xff] }
 0x61e   :  { %6919 = vmatpush1.bf16.msra.mxu1 %v8808_v61  ;;  %6838 = vmatprep.subr.bf16.mxu0 %v8823_v62  ;;  %v8902_v61 = vcombine.low %v3709_v48, %v3717_v30  ;;  %v8904_v62 = vcombine.low %v3710_v51, %v3718_v12  ;;  %v8921_v0 = vcombine.high %v3726_v60, %v3734_v17  ;;  %v3814_v48 = vld [vmem:[#allocation12 + $0xfe8] sm:$0xff] }
 0x61f   :  { %6920 = vmatprep.subr.bf16.mxu1 %v8825_v50  ;;  %v8919_v50 = vcombine.high %v3725_v57, %v3733_v58 }
 0x621   :  { %6839 = vmatpush1.bf16.msra.mxu0 %v8822_v6  ;;  %v3750_v6 = vld [vmem:[#allocation12 + $0xde8] sm:$0xff] }
 0x622   :  { %6921 = vmatpush1.bf16.msra.mxu1 %v8824_v8  ;;  %6840 = vmatprep.subr.bf16.mxu0 %v8839_v11  ;;  %v8918_v8 = vcombine.low %v3725_v57, %v3733_v58  ;;  %v8920_v11 = vcombine.low %v3726_v60, %v3734_v17  ;;  %v8937_v15 = vcombine.high %v3742_v5, %v3750_v6  ;;  %v3320_v57 = vld [vmem:[#allocation12 + $0x78] sm:$0xff] }
 0x623   :  { %v10809_v28 = vpop.f32.mrb[16].mxu0  ;;  %v10811_v59 = vpop.f32.mrb[16].mxu1  ;;  %6922 = vmatprep.subr.bf16.mxu1 %v8841_v13  ;;  %v8935_v13 = vcombine.high %v3741_v1, %v3749_v4 }
 0x624   :  { %v10813_v63 = vpop.f32.mrb[17].mxu0  ;;  %v10815_v10 = vpop.f32.mrb[17].mxu1 }
 0x625   :  { %v6540_v33 = vpop.f32.mrb[18].mxu0  ;;  %v6622_v34 = vpop.f32.mrb[18].mxu1  ;;  %6841 = vmatpush1.bf16.msra.mxu0 %v8838_v25  ;;  %v3766_v25 = vld [vmem:[#allocation12 + $0xe68] sm:$0xff] }
 0x626   :  { %6923 = vmatpush1.bf16.msra.mxu1 %v8840_v26  ;;  %v6541_v36 = vpop.f32.mrb[19].mxu0  ;;  %v6623_v37 = vpop.f32.mrb[19].mxu1  ;;  %6842 = vmatprep.subr.bf16.mxu0 %v8855_v27  ;;  %v8934_v26 = vcombine.low %v3741_v1, %v3749_v4  ;;  %v8936_v27 = vcombine.low %v3742_v5, %v3750_v6  ;;  %v8953_v2 = vcombine.high %v3758_v24, %v3766_v25  ;;  %v3782_v33 = vld [vmem:[#allocation12 + $0xee8] sm:$0xff]  ;;  %v3328_v1 = vld [vmem:[#allocation12 + $0xb8] sm:$0xff] }
 0x627   :  { %6924 = vmatprep.subr.bf16.mxu1 %v8857_v7  ;;  %v8951_v7 = vcombine.high %v3757_v16, %v3765_v23  ;;  %v8950_v34 = vcombine.low %v3757_v16, %v3765_v23  ;;  %v8967_v36 = vcombine.high %v3773_v9, %v3781_v29  ;;  %v8969_v37 = vcombine.high %v3774_v31, %v3782_v33  ;;  %v3336_v4 = vld [vmem:[#allocation12 + $0xf8] sm:$0xff] }
 0x628   :  { %v8968_v43 = vcombine.low %v3774_v31, %v3782_v33  ;;  %v3352_v16 = vld [vmem:[#allocation12 + $0x178] sm:$0xff] }
 0x629   :  { %6843 = vmatpush1.bf16.msra.mxu0 %v8854_v35  ;;  %v8952_v35 = vcombine.low %v3758_v24, %v3766_v25  ;;  %v8524_v24 = vcombine.low %v3328_v1, %v3336_v4  ;;  %v3368_v9 = vld [vmem:[#allocation12 + $0x1f8] sm:$0xff] }
 0x62a   :  { %6925 = vmatpush1.bf16.msra.mxu1 %v8856_v49  ;;  %6844 = vmatprep.subr.bf16.mxu0 %v8871_v39  ;;  %v3789_v49 = vld [vmem:[#allocation12 + $0xf20] sm:$0xff] }
 0x62b   :  { %6926 = vmatprep.subr.bf16.mxu1 %v8873_v40  ;;  %v3797_v39 = vld [vmem:[#allocation12 + $0xf60] sm:$0xff]  ;;  %v3790_v40 = vld [vmem:[#allocation12 + $0xf28] sm:$0xff] }
 0x62c   :  { %v8983_v44 = vcombine.high %v3789_v49, %v3797_v39  ;;  %v8982_v30 = vcombine.low %v3789_v49, %v3797_v39  ;;  %v8984_v51 = vcombine.low %v3790_v40, %v3798_v41  ;;  %v3384_v49 = vld [vmem:[#allocation12 + $0x278] sm:$0xff] }
 0x62d   :  { %6845 = vmatpush1.bf16.msra.mxu0 %v8870_v45  ;;  %v8985_v45 = vcombine.high %v3790_v40, %v3798_v41 }
 0x62e   :  { %6927 = vmatpush1.bf16.msra.mxu1 %v8872_v46  ;;  %6846 = vmatprep.subr.bf16.mxu0 %v8887_v47  ;;  %v3805_v46 = vld [vmem:[#allocation12 + $0xfa0] sm:$0xff] }
 0x62f   :  { %6928 = vmatprep.subr.bf16.mxu1 %v8889_v20  ;;  %v3813_v47 = vld [vmem:[#allocation12 + $0xfe0] sm:$0xff]  ;;  %v3806_v20 = vld [vmem:[#allocation12 + $0xfa8] sm:$0xff] }
 0x630   :  { %v8999_v12 = vcombine.high %v3805_v46, %v3813_v47  ;;  %v8998_v58 = vcombine.low %v3805_v46, %v3813_v47  ;;  %v9000_v60 = vcombine.low %v3806_v20, %v3814_v48 }
 0x631   :  { %6847 = vmatpush1.bf16.msra.mxu0 %v8886_v52  ;;  %v9001_v52 = vcombine.high %v3806_v20, %v3814_v48 }
 0x632   :  { %6929 = vmatpush1.bf16.msra.mxu1 %v8888_v53  ;;  %6848 = vmatprep.subr.bf16.mxu0 %v8903_v55  ;;  %v3311_v53 = vld [vmem:[#allocation12 + $0x30] sm:$0xff] }
 0x633   :  { %6930 = vmatprep.subr.bf16.mxu1 %v8905_v56  ;;  %v3319_v55 = vld [vmem:[#allocation12 + $0x70] sm:$0xff]  ;;  %v3312_v56 = vld [vmem:[#allocation12 + $0x38] sm:$0xff] }
 0x634   :  { %v8507_v17 = vcombine.high %v3311_v53, %v3319_v55  ;;  %v8508_v5 = vcombine.low %v3312_v56, %v3320_v57 }
 0x635   :  { %6849 = vmatpush1.bf16.msra.mxu0 %v8902_v61  ;;  %v8509_v61 = vcombine.high %v3312_v56, %v3320_v57 }
 0x636   :  { %6931 = vmatpush1.bf16.msra.mxu1 %v8904_v62  ;;  %6850 = vmatprep.subr.bf16.mxu0 %v8919_v50  ;;  %v3327_v62 = vld [vmem:[#allocation12 + $0xb0] sm:$0xff] }
 0x637   :  { %6932 = vmatprep.subr.bf16.mxu1 %v8921_v0  ;;  %v3335_v50 = vld [vmem:[#allocation12 + $0xf0] sm:$0xff]  ;;  %v8506_v0 = vcombine.low %v3311_v53, %v3319_v55 }
 0x638   :  { %v8523_v6 = vcombine.high %v3327_v62, %v3335_v50  ;;  %v8522_v23 = vcombine.low %v3327_v62, %v3335_v50 }
 0x639   :  { %6851 = vmatpush1.bf16.msra.mxu0 %v8918_v8  ;;  %v3343_v8 = vld [vmem:[#allocation12 + $0x130] sm:$0xff] }
 0x63a   :  { %6933 = vmatpush1.bf16.msra.mxu1 %v8920_v11  ;;  %6852 = vmatprep.subr.bf16.mxu0 %v8935_v13  ;;  %v3351_v11 = vld [vmem:[#allocation12 + $0x170] sm:$0xff]  ;;  %v8525_v13 = vcombine.high %v3328_v1, %v3336_v4 }
 0x63b   :  { %6934 = vmatprep.subr.bf16.mxu1 %v8937_v15  ;;  %v3344_v15 = vld [vmem:[#allocation12 + $0x138] sm:$0xff]  ;;  %v8539_v25 = vcombine.high %v3343_v8, %v3351_v11  ;;  %v8538_v29 = vcombine.low %v3343_v8, %v3351_v11  ;;  %v3439_v4 = vld [vmem:[#allocation12 + $0x430] sm:$0xff] }
 0x63c   :  { %v8540_v31 = vcombine.low %v3344_v15, %v3352_v16  ;;  %v3448_v8 = vld [vmem:[#allocation12 + $0x478] sm:$0xff] }
 0x63d   :  { %6853 = vmatpush1.bf16.msra.mxu0 %v8934_v26  ;;  %v8541_v26 = vcombine.high %v3344_v15, %v3352_v16 }
 0x63e   :  { %6935 = vmatpush1.bf16.msra.mxu1 %v8936_v27  ;;  %6854 = vmatprep.subr.bf16.mxu0 %v8951_v7  ;;  %v3359_v27 = vld [vmem:[#allocation12 + $0x1b0] sm:$0xff] }
 0x63f   :  { %6936 = vmatprep.subr.bf16.mxu1 %v8953_v2  ;;  %v3367_v7 = vld [vmem:[#allocation12 + $0x1f0] sm:$0xff]  ;;  %v3360_v2 = vld [vmem:[#allocation12 + $0x1b8] sm:$0xff] }
 0x640   :  { %v8555_v33 = vcombine.high %v3359_v27, %v3367_v7  ;;  %v8556_v39 = vcombine.low %v3360_v2, %v3368_v9 }
 0x641   :  { %6855 = vmatpush1.bf16.msra.mxu0 %v8950_v34  ;;  %v8557_v34 = vcombine.high %v3360_v2, %v3368_v9 }
 0x642   :  { %6937 = vmatpush1.bf16.msra.mxu1 %v8952_v35  ;;  %6856 = vmatprep.subr.bf16.mxu0 %v8967_v36  ;;  %v3375_v35 = vld [vmem:[#allocation12 + $0x230] sm:$0xff] }
 0x643   :  { %6938 = vmatprep.subr.bf16.mxu1 %v8969_v37  ;;  %v3383_v36 = vld [vmem:[#allocation12 + $0x270] sm:$0xff]  ;;  %v3376_v37 = vld [vmem:[#allocation12 + $0x238] sm:$0xff] }
 0x644   :  { %v8571_v40 = vcombine.high %v3375_v35, %v3383_v36  ;;  %v8573_v41 = vcombine.high %v3376_v37, %v3384_v49  ;;  %v8570_v46 = vcombine.low %v3375_v35, %v3383_v36  ;;  %v8572_v47 = vcombine.low %v3376_v37, %v3384_v49 }
 0x645   :  { %6857 = vmatpush1.bf16.msra.mxu0 %v8966_v42  ;;  %v3391_v42 = vld [vmem:[#allocation12 + $0x2b0] sm:$0xff] }
 0x646   :  { %6939 = vmatpush1.bf16.msra.mxu1 %v8968_v43  ;;  %6858 = vmatprep.subr.bf16.mxu0 %v8983_v44  ;;  %v3399_v43 = vld [vmem:[#allocation12 + $0x2f0] sm:$0xff]  ;;  %v3392_v44 = vld [vmem:[#allocation12 + $0x2b8] sm:$0xff] }
 0x647   :  { %6940 = vmatprep.subr.bf16.mxu1 %v8985_v45  ;;  %v3400_v45 = vld [vmem:[#allocation12 + $0x2f8] sm:$0xff]  ;;  %v8587_v20 = vcombine.high %v3391_v42, %v3399_v43  ;;  %v8586_v53 = vcombine.low %v3391_v42, %v3399_v43 }
 0x648   :  { %v8589_v48 = vcombine.high %v3392_v44, %v3400_v45  ;;  %v8588_v55 = vcombine.low %v3392_v44, %v3400_v45 }
 0x649   :  { %6859 = vmatpush1.bf16.msra.mxu0 %v8982_v30  ;;  %v3407_v30 = vld [vmem:[#allocation12 + $0x330] sm:$0xff] }
 0x64a   :  { %6941 = vmatpush1.bf16.msra.mxu1 %v8984_v51  ;;  %6860 = vmatprep.subr.bf16.mxu0 %v8999_v12  ;;  %v3415_v51 = vld [vmem:[#allocation12 + $0x370] sm:$0xff]  ;;  %v3408_v12 = vld [vmem:[#allocation12 + $0x338] sm:$0xff] }
 0x64b   :  { %6942 = vmatprep.subr.bf16.mxu1 %v9001_v52  ;;  %v3416_v52 = vld [vmem:[#allocation12 + $0x378] sm:$0xff]  ;;  %v8603_v56 = vcombine.high %v3407_v30, %v3415_v51  ;;  %v8602_v62 = vcombine.low %v3407_v30, %v3415_v51 }
 0x64c   :  { %v8605_v57 = vcombine.high %v3408_v12, %v3416_v52  ;;  %v8604_v50 = vcombine.low %v3408_v12, %v3416_v52 }
 0x64d   :  { %6861 = vmatpush1.bf16.msra.mxu0 %v8998_v58  ;;  %v3423_v58 = vld [vmem:[#allocation12 + $0x3b0] sm:$0xff] }
 0x64e   :  { %6943 = vmatpush1.bf16.msra.mxu1 %v9000_v60  ;;  %6953 = vmatprep.subr.bf16.mxu0 %v8507_v17  ;;  %v3431_v60 = vld [vmem:[#allocation12 + $0x3f0] sm:$0xff]  ;;  %v3424_v17 = vld [vmem:[#allocation12 + $0x3b8] sm:$0xff] }
 0x64f   :  { %7035 = vmatprep.subr.bf16.mxu1 %v8509_v61  ;;  %v3432_v61 = vld [vmem:[#allocation12 + $0x3f8] sm:$0xff]  ;;  %v8618_v11 = vcombine.low %v3423_v58, %v3431_v60 }
 0x650   :  { %6863 = vmatmul.mubr.bf16.vlgmr.msra.gmra.mrb[24].mxu0 %v10791_v38  ;;  %v8621_v1 = vcombine.high %v3424_v17, %v3432_v61 }
 0x651   :  { %6945 = vmatmul.mubr.bf16.vlgmr.msra.gmra.mrb[24].mxu1 %v10791_v38  ;;  %6954 = vmatpush1.bf16.msra.mxu0 %v8506_v0  ;;  %v8619_v0 = vcombine.high %v3423_v58, %v3431_v60 }
 0x652   :  { %6985 = vmatprep.mubr.bf16.mxu0 %v10763_v54  ;;  %7036 = vmatpush1.bf16.msra.mxu1 %v8508_v5  ;;  %v3447_v5 = vld [vmem:[#allocation12 + $0x470] sm:$0xff] }
 0x653   :  { %7067 = vmatprep.mubr.bf16.mxu1 %v10763_v54  ;;  %6955 = vmatprep.subr.bf16.mxu0 %v8523_v6  ;;  %v8554_v54 = vcombine.low %v3359_v27, %v3367_v7  ;;  %v3440_v6 = vld [vmem:[#allocation12 + $0x438] sm:$0xff]  ;;  %v8635_v15 = vcombine.high %v3439_v4, %v3447_v5  ;;  %v8634_v27 = vcombine.low %v3439_v4, %v3447_v5 }
 0x654   :  { %7037 = vmatprep.subr.bf16.mxu1 %v8525_v13  ;;  %v8620_v13 = vcombine.low %v3424_v17, %v3432_v61  ;;  %v8637_v16 = vcombine.high %v3440_v6, %v3448_v8  ;;  %v8636_v7 = vcombine.low %v3440_v6, %v3448_v8 }
 0x655   :  { %6956 = vmatpush1.bf16.msra.mxu0 %v8522_v23  ;;  %v3455_v23 = vld [vmem:[#allocation12 + $0x4b0] sm:$0xff] }
 0x656   :  { %7038 = vmatpush1.bf16.msra.mxu1 %v8524_v24  ;;  %6957 = vmatprep.subr.bf16.mxu0 %v8539_v25  ;;  %v3463_v24 = vld [vmem:[#allocation12 + $0x4f0] sm:$0xff]  ;;  %v3456_v25 = vld [vmem:[#allocation12 + $0x4b8] sm:$0xff] }
 0x657   :  { %7039 = vmatprep.subr.bf16.mxu1 %v8541_v26  ;;  %v3464_v26 = vld [vmem:[#allocation12 + $0x4f8] sm:$0xff]  ;;  %v8651_v2 = vcombine.high %v3455_v23, %v3463_v24  ;;  %v8650_v35 = vcombine.low %v3455_v23, %v3463_v24 }
 0x658   :  { %v8653_v9 = vcombine.high %v3456_v25, %v3464_v26  ;;  %v8652_v36 = vcombine.low %v3456_v25, %v3464_v26 }
 0x659   :  { %6958 = vmatpush1.bf16.msra.mxu0 %v8538_v29  ;;  %v3471_v29 = vld [vmem:[#allocation12 + $0x530] sm:$0xff] }
 0x65a   :  { %7040 = vmatpush1.bf16.msra.mxu1 %v8540_v31  ;;  %6959 = vmatprep.subr.bf16.mxu0 %v8555_v33  ;;  %v3479_v31 = vld [vmem:[#allocation12 + $0x570] sm:$0xff]  ;;  %v3472_v33 = vld [vmem:[#allocation12 + $0x538] sm:$0xff] }
 0x65b   :  { %7041 = vmatprep.subr.bf16.mxu1 %v8557_v34  ;;  %v3480_v34 = vld [vmem:[#allocation12 + $0x578] sm:$0xff]  ;;  %v8667_v37 = vcombine.high %v3471_v29, %v3479_v31  ;;  %v8666_v42 = vcombine.low %v3471_v29, %v3479_v31 }
 0x65c   :  { %v8669_v49 = vcombine.high %v3472_v33, %v3480_v34  ;;  %v8668_v43 = vcombine.low %v3472_v33, %v3480_v34 }
 0x65d   :  { %6960 = vmatpush1.bf16.msra.mxu0 %v8554_v54  ;;  %v3487_v54 = vld [vmem:[#allocation12 + $0x5b0] sm:$0xff] }
 0x65e   :  { %7042 = vmatpush1.bf16.msra.mxu1 %v8556_v39  ;;  %6961 = vmatprep.subr.bf16.mxu0 %v8571_v40  ;;  %v3495_v39 = vld [vmem:[#allocation12 + $0x5f0] sm:$0xff]  ;;  %v3488_v40 = vld [vmem:[#allocation12 + $0x5b8] sm:$0xff] }
 0x65f   :  { %7043 = vmatprep.subr.bf16.mxu1 %v8573_v41  ;;  %v3496_v41 = vld [vmem:[#allocation12 + $0x5f8] sm:$0xff]  ;;  %v8683_v44 = vcombine.high %v3487_v54, %v3495_v39  ;;  %v8682_v30 = vcombine.low %v3487_v54, %v3495_v39 }
 0x660   :  { %v8685_v45 = vcombine.high %v3488_v40, %v3496_v41  ;;  %v8684_v51 = vcombine.low %v3488_v40, %v3496_v41  ;;  %v3592_v54 = vld [vmem:[#allocation12 + $0x8f8] sm:$0xff]  ;;  %v3599_v41 = vld [vmem:[#allocation12 + $0x930] sm:$0xff] }
 0x661   :  { %6962 = vmatpush1.bf16.msra.mxu0 %v8570_v46  ;;  %v3503_v46 = vld [vmem:[#allocation12 + $0x630] sm:$0xff] }
 0x662   :  { %7044 = vmatpush1.bf16.msra.mxu1 %v8572_v47  ;;  %6963 = vmatprep.subr.bf16.mxu0 %v8587_v20  ;;  %v3511_v47 = vld [vmem:[#allocation12 + $0x670] sm:$0xff]  ;;  %v3504_v20 = vld [vmem:[#allocation12 + $0x638] sm:$0xff] }
 0x663   :  { %7045 = vmatprep.subr.bf16.mxu1 %v8589_v48  ;;  %v3512_v48 = vld [vmem:[#allocation12 + $0x678] sm:$0xff]  ;;  %v8699_v12 = vcombine.high %v3503_v46, %v3511_v47  ;;  %v8698_v58 = vcombine.low %v3503_v46, %v3511_v47 }
 0x664   :  { %v8701_v52 = vcombine.high %v3504_v20, %v3512_v48  ;;  %v8700_v60 = vcombine.low %v3504_v20, %v3512_v48 }
 0x665   :  { %6964 = vmatpush1.bf16.msra.mxu0 %v8586_v53  ;;  %v3519_v53 = vld [vmem:[#allocation12 + $0x6b0] sm:$0xff] }
 0x666   :  { %7046 = vmatpush1.bf16.msra.mxu1 %v8588_v55  ;;  %6965 = vmatprep.subr.bf16.mxu0 %v8603_v56  ;;  %v3527_v55 = vld [vmem:[#allocation12 + $0x6f0] sm:$0xff]  ;;  %v3520_v56 = vld [vmem:[#allocation12 + $0x6b8] sm:$0xff] }
 0x667   :  { %7047 = vmatprep.subr.bf16.mxu1 %v8605_v57  ;;  %v3528_v57 = vld [vmem:[#allocation12 + $0x6f8] sm:$0xff]  ;;  %v8715_v17 = vcombine.high %v3519_v53, %v3527_v55  ;;  %v8714_v4 = vcombine.low %v3519_v53, %v3527_v55 }
 0x668   :  { %v8717_v61 = vcombine.high %v3520_v56, %v3528_v57  ;;  %v8716_v5 = vcombine.low %v3520_v56, %v3528_v57  ;;  %v3631_v57 = vld [vmem:[#allocation12 + $0xa30] sm:$0xff] }
 0x669   :  { %6966 = vmatpush1.bf16.msra.mxu0 %v8602_v62  ;;  %v3535_v62 = vld [vmem:[#allocation12 + $0x730] sm:$0xff] }
 0x66a   :  { %7048 = vmatpush1.bf16.msra.mxu1 %v8604_v50  ;;  %6967 = vmatprep.subr.bf16.mxu0 %v8619_v0  ;;  %v3543_v50 = vld [vmem:[#allocation12 + $0x770] sm:$0xff]  ;;  %v3536_v0 = vld [vmem:[#allocation12 + $0x738] sm:$0xff] }
 0x66b   :  { %7049 = vmatprep.subr.bf16.mxu1 %v8621_v1  ;;  %v3544_v1 = vld [vmem:[#allocation12 + $0x778] sm:$0xff]  ;;  %v8731_v6 = vcombine.high %v3535_v62, %v3543_v50  ;;  %v8730_v23 = vcombine.low %v3535_v62, %v3543_v50 }
 0x66c   :  { %v8733_v8 = vcombine.high %v3536_v0, %v3544_v1  ;;  %v8732_v24 = vcombine.low %v3536_v0, %v3544_v1  ;;  %v3647_v0 = vld [vmem:[#allocation12 + $0xab0] sm:$0xff] }
 0x66d   :  { %6968 = vmatpush1.bf16.msra.mxu0 %v8618_v11  ;;  %v3551_v11 = vld [vmem:[#allocation12 + $0x7b0] sm:$0xff] }
 0x66e   :  { %7050 = vmatpush1.bf16.msra.mxu1 %v8620_v13  ;;  %6969 = vmatprep.subr.bf16.mxu0 %v8635_v15  ;;  %v3559_v13 = vld [vmem:[#allocation12 + $0x7f0] sm:$0xff]  ;;  %v3552_v15 = vld [vmem:[#allocation12 + $0x7b8] sm:$0xff] }
 0x66f   :  { %7051 = vmatprep.subr.bf16.mxu1 %v8637_v16  ;;  %v3560_v16 = vld [vmem:[#allocation12 + $0x7f8] sm:$0xff]  ;;  %v8747_v25 = vcombine.high %v3551_v11, %v3559_v13  ;;  %v8746_v29 = vcombine.low %v3551_v11, %v3559_v13  ;;  %v3655_v1 = vld [vmem:[#allocation12 + $0xaf0] sm:$0xff] }
 0x670   :  { %v8749_v26 = vcombine.high %v3552_v15, %v3560_v16  ;;  %v8748_v31 = vcombine.low %v3552_v15, %v3560_v16  ;;  %v8843_v11 = vcombine.high %v3647_v0, %v3655_v1  ;;  %v3663_v15 = vld [vmem:[#allocation12 + $0xb30] sm:$0xff] }
 0x671   :  { %6970 = vmatpush1.bf16.msra.mxu0 %v8634_v27  ;;  %v3567_v27 = vld [vmem:[#allocation12 + $0x830] sm:$0xff] }
 0x672   :  { %7052 = vmatpush1.bf16.msra.mxu1 %v8636_v7  ;;  %6971 = vmatprep.subr.bf16.mxu0 %v8651_v2  ;;  %v3575_v7 = vld [vmem:[#allocation12 + $0x870] sm:$0xff]  ;;  %v3568_v2 = vld [vmem:[#allocation12 + $0x838] sm:$0xff] }
 0x673   :  { %7053 = vmatprep.subr.bf16.mxu1 %v8653_v9  ;;  %v3576_v9 = vld [vmem:[#allocation12 + $0x878] sm:$0xff]  ;;  %v8763_v33 = vcombine.high %v3567_v27, %v3575_v7  ;;  %v3671_v16 = vld [vmem:[#allocation12 + $0xb70] sm:$0xff] }
 0x674   :  { %v8765_v34 = vcombine.high %v3568_v2, %v3576_v9  ;;  %v8764_v39 = vcombine.low %v3568_v2, %v3576_v9 }
 0x675   :  { %6972 = vmatpush1.bf16.msra.mxu0 %v8650_v35  ;;  %v3583_v35 = vld [vmem:[#allocation12 + $0x8b0] sm:$0xff] }
 0x676   :  { %7054 = vmatpush1.bf16.msra.mxu1 %v8652_v36  ;;  %6973 = vmatprep.subr.bf16.mxu0 %v8667_v37  ;;  %v3591_v36 = vld [vmem:[#allocation12 + $0x8f0] sm:$0xff]  ;;  %v8762_v37 = vcombine.low %v3567_v27, %v3575_v7  ;;  %v8859_v7 = vcombine.high %v3663_v15, %v3671_v16 }
 0x677   :  { %7055 = vmatprep.subr.bf16.mxu1 %v8669_v49  ;;  %v3584_v49 = vld [vmem:[#allocation12 + $0x8b8] sm:$0xff]  ;;  %v8779_v40 = vcombine.high %v3583_v35, %v3591_v36  ;;  %v8778_v46 = vcombine.low %v3583_v35, %v3591_v36 }
 0x678   :  { %v8780_v47 = vcombine.low %v3584_v49, %v3592_v54 }
 0x679   :  { %6974 = vmatpush1.bf16.msra.mxu0 %v8666_v42  ;;  %v3607_v42 = vld [vmem:[#allocation12 + $0x970] sm:$0xff] }
 0x67a   :  { %7056 = vmatpush1.bf16.msra.mxu1 %v8668_v43  ;;  %6975 = vmatprep.subr.bf16.mxu0 %v8683_v44  ;;  %v8781_v43 = vcombine.high %v3584_v49, %v3592_v54  ;;  %v3600_v44 = vld [vmem:[#allocation12 + $0x938] sm:$0xff]  ;;  %v8795_v20 = vcombine.high %v3599_v41, %v3607_v42  ;;  %v8794_v53 = vcombine.low %v3599_v41, %v3607_v42 }
 0x67b   :  { %7057 = vmatprep.subr.bf16.mxu1 %v8685_v45  ;;  %v3608_v45 = vld [vmem:[#allocation12 + $0x978] sm:$0xff] }
 0x67c   :  { %v8797_v48 = vcombine.high %v3600_v44, %v3608_v45  ;;  %v3688_v49 = vld [vmem:[#allocation12 + $0xbf8] sm:$0xff] }
 0x67d   :  { %6976 = vmatpush1.bf16.msra.mxu0 %v8682_v30  ;;  %v3615_v30 = vld [vmem:[#allocation12 + $0x9b0] sm:$0xff] }
 0x67e   :  { %7058 = vmatpush1.bf16.msra.mxu1 %v8684_v51  ;;  %6977 = vmatprep.subr.bf16.mxu0 %v8699_v12  ;;  %v3623_v51 = vld [vmem:[#allocation12 + $0x9f0] sm:$0xff]  ;;  %v3616_v12 = vld [vmem:[#allocation12 + $0x9b8] sm:$0xff] }
 0x67f   :  { %7059 = vmatprep.subr.bf16.mxu1 %v8701_v52  ;;  %v3624_v52 = vld [vmem:[#allocation12 + $0x9f8] sm:$0xff]  ;;  %v8811_v55 = vcombine.high %v3615_v30, %v3623_v51 }
 0x680   :  { %v8813_v56 = vcombine.high %v3616_v12, %v3624_v52 }
 0x681   :  { %6978 = vmatpush1.bf16.msra.mxu0 %v8698_v58  ;;  %v3639_v58 = vld [vmem:[#allocation12 + $0xa70] sm:$0xff] }
 0x682   :  { %7060 = vmatpush1.bf16.msra.mxu1 %v8700_v60  ;;  %6979 = vmatprep.subr.bf16.mxu0 %v8715_v17  ;;  %v3632_v60 = vld [vmem:[#allocation12 + $0xa38] sm:$0xff]  ;;  %v8827_v62 = vcombine.high %v3631_v57, %v3639_v58 }
 0x683   :  { %7061 = vmatprep.subr.bf16.mxu1 %v8717_v61  ;;  %v3640_v17 = vld [vmem:[#allocation12 + $0xa78] sm:$0xff]  ;;  %v8812_v61 = vcombine.low %v3616_v12, %v3624_v52 }
 0x684   :  { %v8829_v50 = vcombine.high %v3632_v60, %v3640_v17  ;;  %v3704_v12 = vld [vmem:[#allocation12 + $0xc78] sm:$0xff] }
 0x685   :  { %6980 = vmatpush1.bf16.msra.mxu0 %v8714_v4  ;;  %v3648_v4 = vld [vmem:[#allocation12 + $0xab8] sm:$0xff] }
 0x686   :  { %7062 = vmatpush1.bf16.msra.mxu1 %v8716_v5  ;;  %6981 = vmatprep.subr.bf16.mxu0 %v8731_v6  ;;  %v3656_v5 = vld [vmem:[#allocation12 + $0xaf8] sm:$0xff]  ;;  %v8826_v6 = vcombine.low %v3631_v57, %v3639_v58  ;;  %v3719_v57 = vld [vmem:[#allocation12 + $0xcf0] sm:$0xff] }
 0x687   :  { %7063 = vmatprep.subr.bf16.mxu1 %v8733_v8  ;;  %v8828_v8 = vcombine.low %v3632_v60, %v3640_v17  ;;  %v8845_v13 = vcombine.high %v3648_v4, %v3656_v5  ;;  %v8844_v27 = vcombine.low %v3648_v4, %v3656_v5  ;;  %v3720_v60 = vld [vmem:[#allocation12 + $0xcf8] sm:$0xff] }
 0x688   :  { %v3728_v5 = vld [vmem:[#allocation12 + $0xd38] sm:$0xff] }
 0x689   :  { %6982 = vmatpush1.bf16.msra.mxu0 %v8730_v23  ;;  %v10825_v23 = vld [vmem:[#allocation14] sm:$0xff] }
 0x68a   :  { %7064 = vmatpush1.bf16.msra.mxu1 %v8732_v24  ;;  %6983 = vmatprep.subr.bf16.mxu0 %v8747_v25  ;;  %v3664_v24 = vld [vmem:[#allocation12 + $0xb38] sm:$0xff]  ;;  %v3828_v2 = vrot.slane %v10825_v23, %v10678_v21 }
 0x68b   :  { %7065 = vmatprep.subr.bf16.mxu1 %v8749_v26  ;;  %v3672_v25 = vld [vmem:[#allocation12 + $0xb78] sm:$0xff]  ;;  %v8842_v26 = vcombine.low %v3647_v0, %v3655_v1  ;;  %v3727_v0 = vld [vmem:[#allocation12 + $0xd30] sm:$0xff] }
 0x68c   :  { %v3735_v1 = vld [vmem:[#allocation12 + $0xd70] sm:$0xff] }
 0x68d   :  { %6984 = vmatpush1.bf16.msra.mxu0 %v8746_v29  ;;  %v8861_v29 = vcombine.high %v3664_v24, %v3672_v25 }
 0x68e   :  { %7066 = vmatpush1.bf16.msra.mxu1 %v8748_v31  ;;  %6994 = vmatprep.subr.bf16.mxu0 %v8763_v33  ;;  %v3679_v31 = vld [vmem:[#allocation12 + $0xbb0] sm:$0xff] }
 0x68f   :  { %7076 = vmatprep.subr.bf16.mxu1 %v8765_v34  ;;  %v3687_v33 = vld [vmem:[#allocation12 + $0xbf0] sm:$0xff]  ;;  %v3836_v34 = vrot.slane %v10825_v23, %v10681_v22 }
 0x690   :  { %6986 = vmatmul.mubr.bf16.vlgmr.msra.gmra.mrb[28].mxu0 %v10765_v3  ;;  %v8874_v52 = vcombine.low %v3679_v31, %v3687_v33 }
 0x691   :  { %7068 = vmatmul.mubr.bf16.vlgmr.msra.gmra.mrb[28].mxu1 %v10765_v3  ;;  %6995 = vmatpush1.bf16.msra.mxu0 %v8762_v37  ;;  %v8796_v3 = vcombine.low %v3600_v44, %v3608_v45  ;;  %v3680_v37 = vld [vmem:[#allocation12 + $0xbb8] sm:$0xff]  ;;  %v8875_v44 = vcombine.high %v3679_v31, %v3687_v33  ;;  %v10840_v45 = vadd.f32 %v10813_v63, %v3828_v2 }
 0x692   :  { %7026 = vmatprep.mubr.bf16.mxu0 %v10769_v14  ;;  %7077 = vmatpush1.bf16.msra.mxu1 %v8764_v39  ;;  %v8922_v2 = vcombine.low %v3727_v0, %v3735_v1 }
 0x693   :  { %7108 = vmatprep.mubr.bf16.mxu1 %v10769_v14  ;;  %6996 = vmatprep.subr.bf16.mxu0 %v8779_v40  ;;  %v8810_v14 = vcombine.low %v3615_v30, %v3623_v51  ;;  %v8858_v40 = vcombine.low %v3663_v15, %v3671_v16  ;;  %v10843_v30 = vadd.f32 %v10815_v10, %v3836_v34  ;;  %v3696_v51 = vld [vmem:[#allocation12 + $0xc38] sm:$0xff] }
 0x694   :  { %7078 = vmatprep.subr.bf16.mxu1 %v8781_v43  ;;  %v8860_v43 = vcombine.low %v3664_v24, %v3672_v25  ;;  %v7134_v63 = vmul.f32 %v10840_v45, %v10840_v45  ;;  %v3712_v10 = vld [vmem:[#allocation12 + $0xcb8] sm:$0xff]  ;;  %v3743_v24 = vld [vmem:[#allocation12 + $0xdb0] sm:$0xff] }
 0x695   :  { %6997 = vmatpush1.bf16.msra.mxu0 %v8778_v46  ;;  %v7136_v58 = vmul.f32 %v10843_v30, %v10843_v30  ;;  %v3751_v25 = vld [vmem:[#allocation12 + $0xdf0] sm:$0xff] }
 0x696   :  { %7079 = vmatpush1.bf16.msra.mxu1 %v8780_v47  ;;  %6998 = vmatprep.subr.bf16.mxu0 %v8795_v20  ;;  %v8877_v47 = vcombine.high %v3680_v37, %v3688_v49  ;;  %v3695_v20 = vld [vmem:[#allocation12 + $0xc30] sm:$0xff]  ;;  %v8939_v31 = vcombine.high %v3743_v24, %v3751_v25 }
 0x697   :  { %7080 = vmatprep.subr.bf16.mxu1 %v8797_v48  ;;  %v3703_v48 = vld [vmem:[#allocation12 + $0xc70] sm:$0xff]  ;;  %v7152_v4 = vmul.f32 %v10843_v30, %v7136_v58 }
 0x698   :  { %v8890_v17 = vcombine.low %v3695_v20, %v3703_v48  ;;  %v3799_v58 = vld [vmem:[#allocation12 + $0xf70] sm:$0xff] }
 0x699   :  { %6999 = vmatpush1.bf16.msra.mxu0 %v8794_v53  ;;  %v8876_v53 = vcombine.low %v3680_v37, %v3688_v49  ;;  %v3759_v37 = vld [vmem:[#allocation12 + $0xe30] sm:$0xff] }
 0x69a   :  { %7081 = vmatpush1.bf16.msra.mxu1 %v8796_v3  ;;  %7000 = vmatprep.subr.bf16.mxu0 %v8811_v55  ;;  %v8891_v3 = vcombine.high %v3695_v20, %v3703_v48  ;;  %v8893_v55 = vcombine.high %v3696_v51, %v3704_v12  ;;  %v3767_v49 = vld [vmem:[#allocation12 + $0xe70] sm:$0xff] }
 0x69b   :  { %7082 = vmatprep.subr.bf16.mxu1 %v8813_v56  ;;  %v3711_v56 = vld [vmem:[#allocation12 + $0xcb0] sm:$0xff] }
 0x69c   :  { %v3775_v20 = vld [vmem:[#allocation12 + $0xeb0] sm:$0xff] }
 0x69d   :  { %7001 = vmatpush1.bf16.msra.mxu0 %v8810_v14  ;;  %v8892_v14 = vcombine.low %v3696_v51, %v3704_v12  ;;  %v3783_v48 = vld [vmem:[#allocation12 + $0xef0] sm:$0xff]  ;;  %v3776_v12 = vld [vmem:[#allocation12 + $0xeb8] sm:$0xff] }
 0x69e   :  { %7083 = vmatpush1.bf16.msra.mxu1 %v8812_v61  ;;  %7002 = vmatprep.subr.bf16.mxu0 %v8827_v62  ;;  %v8907_v61 = vcombine.high %v3711_v56, %v3719_v57  ;;  %v7150_v62 = vmul.f32 %v10840_v45, %v7134_v63  ;;  %v8971_v63 = vcombine.high %v3775_v20, %v3783_v48 }
 0x69f   :  { %7084 = vmatprep.subr.bf16.mxu1 %v8829_v50  ;;  %v8909_v50 = vcombine.high %v3712_v10, %v3720_v60 }
 0x6a0   :  { %v7166_v15 = vmul.f32 0.044715, %v7150_v62  ;;  %v3832_v62 = vrot.slane %v10825_v23, %v10692_v32 }
 0x6a1   :  { %7003 = vmatpush1.bf16.msra.mxu0 %v8826_v6  ;;  %v3736_v6 = vld [vmem:[#allocation12 + $0xd78] sm:$0xff] }
 0x6a2   :  { %7085 = vmatpush1.bf16.msra.mxu1 %v8828_v8  ;;  %7004 = vmatprep.subr.bf16.mxu0 %v8843_v11  ;;  %v8906_v8 = vcombine.low %v3711_v56, %v3719_v57  ;;  %v8908_v11 = vcombine.low %v3712_v10, %v3720_v60  ;;  %v8925_v16 = vcombine.high %v3728_v5, %v3736_v6  ;;  %v3791_v57 = vld [vmem:[#allocation12 + $0xf30] sm:$0xff]  ;;  %v3851_v10 = vsub.s32 7, %v10670_v18  ;;  %v3792_v60 = vld [vmem:[#allocation12 + $0xf38] sm:$0xff] }
 0x6a3   :  { %v10829_v9 = vpop.f32.mrb[20].mxu0  ;;  %7086 = vmatprep.subr.bf16.mxu1 %v8845_v13  ;;  %v8923_v13 = vcombine.high %v3727_v0, %v3735_v1  ;;  %v7182_v33 = vadd.f32 %v10840_v45, %v7166_v15  ;;  %v8987_v0 = vcombine.high %v3791_v57, %v3799_v58  ;;  %v3816_v15 = vld [vmem:[#allocation12 + $0xff8] sm:$0xff] }
 0x6a4   :  { %v10833_v35 = vpop.f32.mrb[20].mxu1  ;;  %v10835_v36 = vpop.f32.mrb[21].mxu0 }
 0x6a5   :  { %v10837_v54 = vpop.f32.mrb[21].mxu1  ;;  %v6704_v39 = vpop.f32.mrb[22].mxu0  ;;  %7005 = vmatpush1.bf16.msra.mxu0 %v8842_v26  ;;  %v7168_v26 = vmul.f32 0.044715, %v7152_v4 }
 0x6a6   :  { %v6786_v41 = vpop.f32.mrb[22].mxu1  ;;  %7087 = vmatpush1.bf16.msra.mxu1 %v8844_v27  ;;  %v6705_v42 = vpop.f32.mrb[23].mxu0  ;;  %7006 = vmatprep.subr.bf16.mxu0 %v8859_v7  ;;  %v3744_v27 = vld [vmem:[#allocation12 + $0xdb8] sm:$0xff] }
 0x6a7   :  { %v6787_v46 = vpop.f32.mrb[23].mxu1  ;;  %7088 = vmatprep.subr.bf16.mxu1 %v8861_v29  ;;  %v3752_v7 = vld [vmem:[#allocation12 + $0xdf8] sm:$0xff]  ;;  %v8924_v29 = vcombine.low %v3728_v5, %v3736_v6  ;;  %v7184_v39 = vadd.f32 %v10843_v30, %v7168_v26  ;;  %v8938_v42 = vcombine.low %v3743_v24, %v3751_v25  ;;  %v3807_v5 = vld [vmem:[#allocation12 + $0xfb0] sm:$0xff]  ;;  %v8986_v25 = vcombine.low %v3791_v57, %v3799_v58  ;;  %v7312_v57 = vld [vmem:[#allocation15 + $0x198] sm:$0xff] }
 0x6a8   :  { %v8941_v34 = vcombine.high %v3744_v27, %v3752_v7  ;;  %v3768_v41 = vld [vmem:[#allocation12 + $0xe78] sm:$0xff]  ;;  %v7198_v46 = vmul.f32 0.7978846, %v7182_v33  ;;  %v3815_v6 = vld [vmem:[#allocation12 + $0xff0] sm:$0xff]  ;;  %v10869_v26 = vadd.f32 %v10811_v59, %v3832_v62  ;;  %v7295_v62 = vld [vmem:[#allocation15 + $0x110] sm:$0xff] }
 0x6a9   :  { %7007 = vmatpush1.bf16.msra.mxu0 %v8858_v40  ;;  %v3760_v40 = vld [vmem:[#allocation12 + $0xe38] sm:$0xff]  ;;  %v7200_v51 = vmul.f32 0.7978846, %v7184_v39  ;;  %v9002_v39 = vcombine.low %v3807_v5, %v3815_v6 }
 0x6aa   :  { %7089 = vmatpush1.bf16.msra.mxu1 %v8860_v43  ;;  %7008 = vmatprep.subr.bf16.mxu0 %v8875_v44  ;;  %v8940_v43 = vcombine.low %v3744_v27, %v3752_v7  ;;  %v8955_v44 = vcombine.high %v3759_v37, %v3767_v49  ;;  %10256 = vtanh.f32 %v7198_v46  ;;  %v9003_v7 = vcombine.high %v3807_v5, %v3815_v6  ;;  %v7278_v33 = vld [vmem:[#allocation15 + $0x88] sm:$0xff]  ;;  %v7281_v5 = vld [vmem:[#allocation15 + $0xa0] sm:$0xff] }
 0x6ab   :  { %7090 = vmatprep.subr.bf16.mxu1 %v8877_v47  ;;  %v8957_v47 = vcombine.high %v3760_v40, %v3768_v41  ;;  %10258 = vtanh.f32 %v7200_v51  ;;  %v7282_v6 = vld [vmem:[#allocation15 + $0xa8] sm:$0xff] }
 0x6ad   :  { %7009 = vmatpush1.bf16.msra.mxu0 %v8874_v52  ;;  %v3784_v52 = vld [vmem:[#allocation12 + $0xef8] sm:$0xff] }
 0x6ae   :  { %7091 = vmatpush1.bf16.msra.mxu1 %v8876_v53  ;;  %7010 = vmatprep.subr.bf16.mxu0 %v8891_v3  ;;  %v8954_v53 = vcombine.low %v3759_v37, %v3767_v49  ;;  %v8956_v3 = vcombine.low %v3760_v40, %v3768_v41  ;;  %v8973_v56 = vcombine.high %v3776_v12, %v3784_v52  ;;  %v7310_v37 = vld [vmem:[#allocation15 + $0x188] sm:$0xff] }
 0x6af   :  { %7092 = vmatprep.subr.bf16.mxu1 %v8893_v55  ;;  %v3843_v55 = vsub.s32 5, %v10670_v18 }
 0x6b1   :  { %7011 = vmatpush1.bf16.msra.mxu0 %v8890_v17  ;;  %v3800_v17 = vld [vmem:[#allocation12 + $0xf78] sm:$0xff]  ;;  %v3844_v1 = vrot.slane %v10825_v23, %v3843_v55 }
 0x6b2   :  { %7093 = vmatpush1.bf16.msra.mxu1 %v8892_v14  ;;  %7012 = vmatprep.subr.bf16.mxu0 %v8907_v61  ;;  %v3824_v14 = vrot.slane %v10825_v23, %v10673_v19  ;;  %v8970_v61 = vcombine.low %v3775_v20, %v3783_v48  ;;  %v8989_v4 = vcombine.high %v3792_v60, %v3800_v17  ;;  %v7294_v20 = vld [vmem:[#allocation15 + $0x108] sm:$0xff] }
 0x6b3   :  { %7094 = vmatprep.subr.bf16.mxu1 %v8909_v50  ;;  %v8972_v50 = vcombine.low %v3776_v12, %v3784_v52  ;;  %v8988_v27 = vcombine.low %v3792_v60, %v3800_v17  ;;  %v7279_v12 = vld [vmem:[#allocation15 + $0x90] sm:$0xff]  ;;  %v7280_v52 = vld [vmem:[#allocation15 + $0x98] sm:$0xff]  ;;  %v7118_v60 = vmul.f32 0.5, %v10840_v45  ;;  %v7313_v45 = vld [vmem:[#allocation15 + $0x1a0] sm:$0xff] }
 0x6b4   :  { %v10866_v24 = vadd.f32 %v10809_v28, %v3824_v14  ;;  %v10257_v49 = vpop.eup %10256  ;;  %v7263_v14 = vld [vmem:[#allocation15 + $0x10] sm:$0xff] }
 0x6b5   :  { %7013 = vmatpush1.bf16.msra.mxu0 %v8906_v8  ;;  %v9006_v8 = vld [vmem:[#allocation2] ss:$0 sm:$0xff]  ;;  %v10259_v40 = vpop.eup %10258  ;;  %v7230_v51 = vadd.f32 1.0, %v10257_v49 }
 0x6b6   :  { %7095 = vmatpush1.bf16.msra.mxu1 %v8908_v11  ;;  %7014 = vmatprep.subr.bf16.mxu0 %v8923_v13  ;;  %v3852_v11 = vrot.slane %v10825_v23, %v3851_v10  ;;  %v3808_v13 = vld [vmem:[#allocation12 + $0xfb8] sm:$0xff]  ;;  %v7133_v59 = vmul.f32 %v10866_v24, %v10866_v24 }
 0x6b7   :  { %7096 = vmatprep.subr.bf16.mxu1 %v8925_v16  ;;  %v10516_v16 = vmov 0   ;;  %v9004_v41 = vcombine.low %v3808_v13, %v3816_v15 }
 0x6b8   :  { %9655 = vset.pattern.permute.xlu0 %v10516_v16  ;;  %v10875_v28 = vadd.f32 %v10837_v54, %v3852_v11  ;;  %v7246_v11 = vmul.f32 %v7230_v51, %v7118_v60 }
 0x6b9   :  { %7015 = vmatpush1.bf16.msra.mxu0 %v8922_v2  ;;  %7524 = vperm.xlu0 %9655, %v9006_v8   ;;  %v10872_v2 = vadd.f32 %v10835_v36, %v3844_v1  ;;  %v7135_v36 = vmul.f32 %v10869_v26, %v10869_v26  ;;  %v9299_v1 = vpack.c.bf16 %v7280_v52, %v7279_v12  ;;  %v7300_v52 = vld [vmem:[#allocation15 + $0x138] sm:$0xff] }
 0x6ba   :  { %7097 = vmatpush1.bf16.msra.mxu1 %v8924_v29  ;;  %7016 = vmatprep.subr.bf16.mxu0 %v8939_v31  ;;  %v9005_v29 = vcombine.high %v3808_v13, %v3816_v15  ;;  %v7277_v31 = vld [vmem:[#allocation15 + $0x80] sm:$0xff]  ;;  %v7140_v48 = vmul.f32 %v10875_v28, %v10875_v28  ;;  %v7314_v15 = vld [vmem:[#allocation15 + $0x1a8] sm:$0xff] }
 0x6bb   :  { %7098 = vmatprep.subr.bf16.mxu1 %v8941_v34  ;;  %v7309_v34 = vld [vmem:[#allocation15 + $0x180] sm:$0xff]  ;;  %v7138_v54 = vmul.f32 %v10872_v2, %v10872_v2  ;;  %v7151_v58 = vmul.f32 %v10869_v26, %v7135_v36  ;;  %v9335_v49 = vpack.c.bf16 %v7314_v15, %v7313_v45  ;;  %v7320_v45 = vld [vmem:[#allocation15 + $0x1d8] sm:$0xff]  ;;  %v3839_v15 = vsub.s32 4, %v10670_v18 }
 0x6bc   :  { %v9327_v46 = vpack.c.bf16 %v7310_v37, %v7309_v34  ;;  %v7156_v8 = vmul.f32 %v10875_v28, %v7140_v48  ;;  %v7297_v34 = vld [vmem:[#allocation15 + $0x120] sm:$0xff]  ;;  %v7299_v48 = vld [vmem:[#allocation15 + $0x130] sm:$0xff] }
 0x6bd   :  { %7017 = vmatpush1.bf16.msra.mxu0 %v8938_v42  ;;  %v9295_v42 = vpack.c.bf16 %v7278_v33, %v7277_v31  ;;  %v7265_v31 = vld [vmem:[#allocation15 + $0x20] sm:$0xff]  ;;  %v7266_v33 = vld [vmem:[#allocation15 + $0x28] sm:$0xff] }
 0x6be   :  { %7099 = vmatpush1.bf16.msra.mxu1 %v8940_v43  ;;  %7018 = vmatprep.subr.bf16.mxu0 %v8955_v44  ;;  %v7261_v43 = vld [vmem:[#allocation15] sm:$0xff]  ;;  %v7262_v44 = vld [vmem:[#allocation15 + $0x8] sm:$0xff]  ;;  %v7172_v36 = vmul.f32 0.044715, %v7156_v8  ;;  %v7288_v8 = vld [vmem:[#allocation15 + $0xd8] sm:$0xff] }
 0x6bf   :  { %7100 = vmatprep.subr.bf16.mxu1 %v8957_v47  ;;  %v7293_v47 = vld [vmem:[#allocation15 + $0x100] sm:$0xff] }
 0x6c0   :  { %v9329_v17 = vpack.c.bf16 %v7294_v20, %v7293_v47  ;;  %v7267_v47 = vld [vmem:[#allocation15 + $0x30] sm:$0xff]  ;;  %v7268_v20 = vld [vmem:[#allocation15 + $0x38] sm:$0xff] }
 0x6c1   :  { %7019 = vmatpush1.bf16.msra.mxu0 %v8954_v53  ;;  %v7149_v53 = vmul.f32 %v10866_v24, %v7133_v59  ;;  %v7298_v59 = vld [vmem:[#allocation15 + $0x128] sm:$0xff]  ;;  %v9309_v60 = vpack.c.bf16 %v7268_v20, %v7267_v47  ;;  %v7291_v20 = vld [vmem:[#allocation15 + $0xf0] sm:$0xff] }
 0x6c2   :  { %7101 = vmatpush1.bf16.msra.mxu1 %v8956_v3  ;;  %7020 = vmatprep.subr.bf16.mxu0 %v8971_v63  ;;  %v9297_v3 = vpack.c.bf16 %v7262_v44, %v7261_v43  ;;  %v7232_v63 = vadd.f32 1.0, %v10259_v40  ;;  %v7284_v40 = vld [vmem:[#allocation15 + $0xb8] sm:$0xff]  ;;  %v9305_v43 = vpack.c.bf16 %v7266_v33, %v7265_v31  ;;  %v7303_v31 = vld [vmem:[#allocation15 + $0x150] sm:$0xff]  ;;  %v7306_v47 = vld [vmem:[#allocation15 + $0x168] sm:$0xff] }
 0x6c3   :  { %7102 = vmatprep.subr.bf16.mxu1 %v8973_v56  ;;  %v7311_v56 = vld [vmem:[#allocation15 + $0x190] sm:$0xff]  ;;  %v7165_v16 = vmul.f32 0.044715, %v7149_v53  ;;  %v7285_v53 = vld [vmem:[#allocation15 + $0xc0] sm:$0xff] }
 0x6c4   :  { %v9331_v13 = vpack.c.bf16 %v7312_v57, %v7311_v56  ;;  %v7317_v56 = vld [vmem:[#allocation15 + $0x1c0] sm:$0xff]  ;;  %v7318_v57 = vld [vmem:[#allocation15 + $0x1c8] sm:$0xff] }
 0x6c5   :  { %7021 = vmatpush1.bf16.msra.mxu0 %v8970_v61  ;;  %v7264_v61 = vld [vmem:[#allocation15 + $0x18] sm:$0xff] }
 0x6c6   :  { %7103 = vmatpush1.bf16.msra.mxu1 %v8972_v50  ;;  %7022 = vmatprep.subr.bf16.mxu0 %v8987_v0  ;;  %v7154_v50 = vmul.f32 %v10872_v2, %v7138_v54  ;;  %v7120_v0 = vmul.f32 0.5, %v10843_v30  ;;  %v9337_v54 = vpack.c.bf16 %v7298_v59, %v7297_v34  ;;  %v7304_v34 = vld [vmem:[#allocation15 + $0x158] sm:$0xff]  ;;  %v7321_v59 = vld [vmem:[#allocation15 + $0x1e0] sm:$0xff] }
 0x6c7   :  { %7104 = vmatprep.subr.bf16.mxu1 %v8989_v4  ;;  %v7296_v4 = vld [vmem:[#allocation15 + $0x118] sm:$0xff] }
 0x6c8   :  { %v9333_v30 = vpack.c.bf16 %v7296_v4, %v7295_v62  ;;  %v7170_v37 = vmul.f32 0.044715, %v7154_v50  ;;  %v7269_v62 = vld [vmem:[#allocation15 + $0x40] sm:$0xff]  ;;  %v7270_v50 = vld [vmem:[#allocation15 + $0x48] sm:$0xff]  ;;  %v9343_v4 = vpack.c.bf16 %v7318_v57, %v7317_v56  ;;  %v7275_v56 = vld [vmem:[#allocation15 + $0x70] sm:$0xff] }
 0x6c9   :  { %7023 = vmatpush1.bf16.msra.mxu0 %v8986_v25  ;;  %v7248_v25 = vmul.f32 %v7232_v63, %v7120_v0  ;;  %v7188_v63 = vadd.f32 %v10875_v28, %v7172_v36  ;;  %v7301_v0 = vld [vmem:[#allocation15 + $0x140] sm:$0xff]  ;;  %v7276_v57 = vld [vmem:[#allocation15 + $0x78] sm:$0xff] }
 0x6ca   :  { %7105 = vmatpush1.bf16.msra.mxu1 %v8988_v27  ;;  %7024 = vmatprep.subr.bf16.mxu0 %v9003_v7  ;;  %v9301_v27 = vpack.c.bf16 %v7264_v61, %v7263_v14  ;;  %v7167_v7 = vmul.f32 0.044715, %v7151_v58  ;;  %v7186_v51 = vadd.f32 %v10872_v2, %v7170_v37  ;;  %v9341_v14 = vpack.c.bf16 %v7300_v52, %v7299_v48  ;;  %v7289_v37 = vld [vmem:[#allocation15 + $0xe0] sm:$0xff]  ;;  %v7292_v48 = vld [vmem:[#allocation15 + $0xf8] sm:$0xff] }
 0x6cb   :  { %7106 = vmatprep.subr.bf16.mxu1 %v9005_v29  ;;  %v9303_v29 = vpack.c.bf16 %v7282_v6, %v7281_v5  ;;  %v7302_v5 = vld [vmem:[#allocation15 + $0x148] sm:$0xff]  ;;  %v7287_v6 = vld [vmem:[#allocation15 + $0xd0] sm:$0xff] }
 0x6cc   :  { %v7183_v44 = vadd.f32 %v10869_v26, %v7167_v7  ;;  %v9315_v7 = vpack.c.bf16 %v7288_v8, %v7287_v6 }
 0x6cd   :  { %7025 = vmatpush1.bf16.msra.mxu0 %v9002_v39  ;;  %v7283_v39 = vld [vmem:[#allocation15 + $0xb0] sm:$0xff] }
 0x6ce   :  { %7107 = vmatpush1.bf16.msra.mxu1 %v9004_v41  ;;  %9296 = vmatprep.subr.bf16.mxu0 %v9295_v42  ;;  %v7316_v41 = vld [vmem:[#allocation15 + $0x1b8] sm:$0xff]  ;;  %v7181_v42 = vadd.f32 %v10866_v24, %v7165_v16  ;;  %v9313_v16 = vpack.c.bf16 %v7270_v50, %v7269_v62  ;;  %v7342_v62 = vld [vmem:[#allocation15 + $0x288] sm:$0xff]  ;;  %v7373_v50 = vld [vmem:[#allocation15 + $0x380] sm:$0xff] }
 0x6cf   :  { %9328 = vmatprep.subr.bf16.mxu1 %v9327_v46  ;;  %v9307_v46 = vpack.c.bf16 %v7284_v40, %v7283_v39  ;;  %v7322_v39 = vld [vmem:[#allocation15 + $0x1e8] sm:$0xff]  ;;  %v3840_v40 = vrot.slane %v10825_v23, %v3839_v15 }
 0x6d0   :  { %7027 = vmatmul.mubr.bf16.vlgmr.msra.gmra.mrb[28].mxu0 %v10791_v38  ;;  %v7197_v58 = vmul.f32 0.7978846, %v7181_v42 }
 0x6d1   :  { %7109 = vmatmul.mubr.bf16.vlgmr.msra.gmra.mrb[28].mxu1 %v10791_v38  ;;  %9298 = vmatpush3.bf16.msra.mxu0 %v9297_v3  ;;  %v7315_v38 = vld [vmem:[#allocation15 + $0x1b0] sm:$0xff]  ;;  %v7286_v3 = vld [vmem:[#allocation15 + $0xc8] sm:$0xff]  ;;  %v10906_v52 = vadd.f32 %v10829_v9, %v3840_v40 }
 0x6d2   :  { %7591 = vmatprep.mubr.f32.mxu0 %v7246_v11  ;;  %9330 = vmatpush3.bf16.msra.mxu1 %v9329_v17  ;;  %v9339_v12 = vpack.c.bf16 %v7316_v41, %v7315_v38  ;;  %v7199_v17 = vmul.f32 0.7978846, %v7183_v44  ;;  %v9311_v61 = vpack.c.bf16 %v7286_v3, %v7285_v53  ;;  %v7204_v11 = vmul.f32 0.7978846, %v7188_v63  ;;  %v7274_v44 = vld [vmem:[#allocation15 + $0x68] sm:$0xff] }
 0x6d3   :  { %7661 = vmatprep.mubr.f32.mxu1 %v7248_v25  ;;  %9300 = vmatprep.subr.bf16.mxu0 %v9299_v1  ;;  %v7202_v1 = vmul.f32 0.7978846, %v7186_v51  ;;  %10260 = vtanh.f32 %v7197_v58  ;;  %v3847_v25 = vsub.s32 6, %v10670_v18  ;;  %v9349_v41 = vpack.c.bf16 %v7304_v34, %v7303_v31  ;;  %v7323_v51 = vld [vmem:[#allocation15 + $0x1f0] sm:$0xff] }
 0x6d4   :  { %9332 = vmatprep.subr.bf16.mxu1 %v9331_v13  ;;  %v7319_v13 = vld [vmem:[#allocation15 + $0x1d0] sm:$0xff]  ;;  %10262 = vtanh.f32 %v7199_v17  ;;  %v9323_v63 = vpack.c.bf16 %v7292_v48, %v7291_v20  ;;  %v7117_v31 = vmul.f32 0.5, %v10866_v24  ;;  %v7360_v48 = vld [vmem:[#allocation15 + $0x318] sm:$0xff] }
 0x6d5   :  { %9302 = vmatpush3.bf16.msra.mxu0 %v9301_v27  ;;  %v9345_v27 = vpack.c.bf16 %v7302_v5, %v7301_v0  ;;  %v9347_v33 = vpack.c.bf16 %v7320_v45, %v7319_v13  ;;  %10264 = vtanh.f32 %v7202_v1  ;;  %v3848_v38 = vrot.slane %v10825_v23, %v3847_v25  ;;  %v7307_v58 = vld [vmem:[#allocation15 + $0x170] sm:$0xff]  ;;  %v7374_v0 = vld [vmem:[#allocation15 + $0x388] sm:$0xff]  ;;  %v7325_v45 = vld [vmem:[#allocation15 + $0x200] sm:$0xff] }
 0x6d6   :  { %9334 = vmatpush3.bf16.msra.mxu1 %v9333_v30  ;;  %9304 = vmatprep.subr.bf16.mxu0 %v9303_v29  ;;  %v7271_v30 = vld [vmem:[#allocation15 + $0x50] sm:$0xff]  ;;  %v7272_v29 = vld [vmem:[#allocation15 + $0x58] sm:$0xff]  ;;  %10266 = vtanh.f32 %v7204_v11 }
 0x6d7   :  { %9336 = vmatprep.subr.bf16.mxu1 %v9335_v49  ;;  %v7290_v49 = vld [vmem:[#allocation15 + $0xe8] sm:$0xff]  ;;  %v9317_v36 = vpack.c.bf16 %v7272_v29, %v7271_v30  ;;  %v10909_v23 = vadd.f32 %v10833_v35, %v3848_v38  ;;  %v7137_v35 = vmul.f32 %v10906_v52, %v10906_v52  ;;  %v7357_v30 = vld [vmem:[#allocation15 + $0x300] sm:$0xff]  ;;  %v7343_v34 = vld [vmem:[#allocation15 + $0x290] sm:$0xff] }
 0x6d8   :  { %v9319_v42 = vpack.c.bf16 %v7290_v49, %v7289_v37  ;;  %v7358_v29 = vld [vmem:[#allocation15 + $0x308] sm:$0xff]  ;;  %v7344_v37 = vld [vmem:[#allocation15 + $0x298] sm:$0xff]  ;;  %v7119_v49 = vmul.f32 0.5, %v10869_v26  ;;  %v7124_v26 = vmul.f32 0.5, %v10875_v28  ;;  %v7329_v28 = vld [vmem:[#allocation15 + $0x220] sm:$0xff] }
 0x6d9   :  { %9306 = vmatpush3.bf16.msra.mxu0 %v9305_v43  ;;  %v7273_v43 = vld [vmem:[#allocation15 + $0x60] sm:$0xff]  ;;  %v7139_v6 = vmul.f32 %v10909_v23, %v10909_v23  ;;  %v7376_v38 = vld [vmem:[#allocation15 + $0x398] sm:$0xff]  ;;  %v9393_v24 = vpack.c.bf16 %v7358_v29, %v7357_v30  ;;  %v9363_v20 = vpack.c.bf16 %v7344_v37, %v7343_v34  ;;  %v7382_v34 = vld [vmem:[#allocation15 + $0x3c8] sm:$0xff] }
 0x6da   :  { %9338 = vmatpush3.bf16.msra.mxu1 %v9337_v54  ;;  %9308 = vmatprep.subr.bf16.mxu0 %v9307_v46  ;;  %v7305_v54 = vld [vmem:[#allocation15 + $0x160] sm:$0xff]  ;;  %v9351_v46 = vpack.c.bf16 %v7322_v39, %v7321_v59  ;;  %v9321_v53 = vpack.c.bf16 %v7274_v44, %v7273_v43  ;;  %v7153_v59 = vmul.f32 %v10906_v52, %v7137_v35  ;;  %v7122_v43 = vmul.f32 0.5, %v10872_v2  ;;  %v7327_v44 = vld [vmem:[#allocation15 + $0x210] sm:$0xff]  ;;  %v7364_v30 = vld [vmem:[#allocation15 + $0x338] sm:$0xff] }
 0x6db   :  { %9340 = vmatprep.subr.bf16.mxu1 %v9339_v12  ;;  %v7324_v12 = vld [vmem:[#allocation15 + $0x1f8] sm:$0xff]  ;;  %v9353_v3 = vpack.c.bf16 %v7306_v47, %v7305_v54  ;;  %v7379_v35 = vld [vmem:[#allocation15 + $0x3b0] sm:$0xff]  ;;  %v7349_v29 = vld [vmem:[#allocation15 + $0x2c0] sm:$0xff] }
 0x6dc   :  { %v9355_v17 = vpack.c.bf16 %v7324_v12, %v7323_v51  ;;  %v7328_v54 = vld [vmem:[#allocation15 + $0x218] sm:$0xff]  ;;  %v7345_v51 = vld [vmem:[#allocation15 + $0x2a0] sm:$0xff]  ;;  %v7346_v12 = vld [vmem:[#allocation15 + $0x2a8] sm:$0xff] }
 0x6dd   :  { %9310 = vmatpush3.bf16.msra.mxu0 %v9309_v60  ;;  %v10261_v60 = vpop.eup %10260 }
 0x6de   :  { %9342 = vmatpush3.bf16.msra.mxu1 %v9341_v14  ;;  %9312 = vmatprep.subr.bf16.mxu0 %v9311_v61  ;;  %v7308_v14 = vld [vmem:[#allocation15 + $0x178] sm:$0xff]  ;;  %v7341_v61 = vld [vmem:[#allocation15 + $0x280] sm:$0xff]  ;;  %v10263_v9 = vpop.eup %10262  ;;  %v7229_v11 = vadd.f32 1.0, %v10261_v60 }
 0x6df   :  { %9344 = vmatprep.subr.bf16.mxu1 %v9343_v4  ;;  %v10265_v1 = vpop.eup %10264  ;;  %v9325_v4 = vpack.c.bf16 %v7276_v57, %v7275_v56  ;;  %v9357_v8 = vpack.c.bf16 %v7308_v14, %v7307_v58  ;;  %v9359_v13 = vpack.c.bf16 %v7342_v62, %v7341_v61  ;;  %v7378_v56 = vld [vmem:[#allocation15 + $0x3a8] sm:$0xff]  ;;  %v7169_v57 = vmul.f32 0.044715, %v7153_v59  ;;  %v7361_v62 = vld [vmem:[#allocation15 + $0x320] sm:$0xff] }
 0x6e0   :  { %v10267_v5 = vpop.eup %10266  ;;  %v9365_v58 = vpack.c.bf16 %v7328_v54, %v7327_v44  ;;  %v9367_v14 = vpack.c.bf16 %v7346_v12, %v7345_v51  ;;  %v7330_v61 = vld [vmem:[#allocation15 + $0x228] sm:$0xff]  ;;  %v7352_v44 = vld [vmem:[#allocation15 + $0x2d8] sm:$0xff]  ;;  %v7383_v54 = vld [vmem:[#allocation15 + $0x3d0] sm:$0xff] }
 0x6e1   :  { %9314 = vmatpush3.bf16.msra.mxu0 %v9313_v16  ;;  %v7326_v16 = vld [vmem:[#allocation15 + $0x208] sm:$0xff]  ;;  %v7236_v40 = vadd.f32 1.0, %v10267_v5  ;;  %v7185_v5 = vadd.f32 %v10906_v52, %v7169_v57  ;;  %v7336_v51 = vld [vmem:[#allocation15 + $0x258] sm:$0xff]  ;;  %v7367_v12 = vld [vmem:[#allocation15 + $0x350] sm:$0xff] }
 0x6e2   :  { %9346 = vmatpush3.bf16.msra.mxu1 %v9345_v27  ;;  %9316 = vmatprep.subr.bf16.mxu0 %v9315_v7  ;;  %v7231_v27 = vadd.f32 1.0, %v10263_v9  ;;  %v9391_v7 = vpack.c.bf16 %v7374_v0, %v7373_v50  ;;  %v9361_v39 = vpack.c.bf16 %v7326_v16, %v7325_v45  ;;  %v7362_v50 = vld [vmem:[#allocation15 + $0x328] sm:$0xff]  ;;  %v7347_v0 = vld [vmem:[#allocation15 + $0x2b0] sm:$0xff]  ;;  %v7332_v16 = vld [vmem:[#allocation15 + $0x238] sm:$0xff] }
 0x6e3   :  { %9348 = vmatprep.subr.bf16.mxu1 %v9347_v33  ;;  %v7234_v33 = vadd.f32 1.0, %v10265_v1  ;;  %v7252_v2 = vmul.f32 %v7236_v40, %v7124_v26  ;;  %v7348_v1 = vld [vmem:[#allocation15 + $0x2b8] sm:$0xff]  ;;  %v7331_v45 = vld [vmem:[#allocation15 + $0x230] sm:$0xff]  ;;  %v7201_v37 = vmul.f32 0.7978846, %v7185_v5  ;;  %v7385_v57 = vld [vmem:[#allocation15 + $0x3e0] sm:$0xff] }
 0x6e4   :  { %v7247_v47 = vmul.f32 %v7231_v27, %v7119_v49  ;;  %v7363_v27 = vld [vmem:[#allocation15 + $0x330] sm:$0xff]  ;;  %v9373_v49 = vpack.c.bf16 %v7332_v16, %v7331_v45 }
 0x6e5   :  { %9318 = vmatpush3.bf16.msra.mxu0 %v9317_v36  ;;  %v7375_v36 = vld [vmem:[#allocation15 + $0x390] sm:$0xff]  ;;  %10268 = vtanh.f32 %v7201_v37 }
 0x6e6   :  { %9350 = vmatpush3.bf16.msra.mxu1 %v9349_v41  ;;  %9320 = vmatprep.subr.bf16.mxu0 %v9319_v42  ;;  %v7155_v41 = vmul.f32 %v10909_v23, %v7139_v6  ;;  %v7245_v42 = vmul.f32 %v7229_v11, %v7117_v31  ;;  %v9369_v6 = vpack.c.bf16 %v7330_v61, %v7329_v28  ;;  %v7350_v31 = vld [vmem:[#allocation15 + $0x2c8] sm:$0xff]  ;;  %v7369_v61 = vld [vmem:[#allocation15 + $0x360] sm:$0xff] }
 0x6e7   :  { %9352 = vmatprep.subr.bf16.mxu1 %v9351_v46  ;;  %v7359_v46 = vld [vmem:[#allocation15 + $0x310] sm:$0xff]  ;;  %v9401_v11 = vpack.c.bf16 %v7362_v50, %v7361_v62  ;;  %v9375_v40 = vpack.c.bf16 %v7350_v31, %v7349_v29  ;;  %v7338_v28 = vld [vmem:[#allocation15 + $0x268] sm:$0xff]  ;;  %v7437_v31 = vld [vmem:[#allocation15 + $0x580] sm:$0xff] }
 0x6e8   :  { %v7171_v60 = vmul.f32 0.044715, %v7155_v41  ;;  %v7365_v41 = vld [vmem:[#allocation15 + $0x340] sm:$0xff]  ;;  %v7355_v50 = vld [vmem:[#allocation15 + $0x2f0] sm:$0xff] }
 0x6e9   :  { %9322 = vmatpush3.bf16.msra.mxu0 %v9321_v53  ;;  %v7250_v53 = vmul.f32 %v7234_v33, %v7122_v43  ;;  %v7381_v33 = vld [vmem:[#allocation15 + $0x3c0] sm:$0xff]  ;;  %v7366_v43 = vld [vmem:[#allocation15 + $0x348] sm:$0xff] }
 0x6ea   :  { %9354 = vmatpush3.bf16.msra.mxu1 %v9353_v3  ;;  %9324 = vmatprep.subr.bf16.mxu0 %v9323_v63  ;;  %v9395_v3 = vpack.c.bf16 %v7376_v38, %v7375_v36  ;;  %v7377_v63 = vld [vmem:[#allocation15 + $0x3a0] sm:$0xff]  ;;  %v7334_v38 = vld [vmem:[#allocation15 + $0x248] sm:$0xff]  ;;  %v9409_v26 = vpack.c.bf16 %v7366_v43, %v7365_v41  ;;  %v7407_v43 = vld [vmem:[#allocation15 + $0x490] sm:$0xff] }
 0x6eb   :  { %9356 = vmatprep.subr.bf16.mxu1 %v9355_v17  ;;  %v9397_v17 = vpack.c.bf16 %v7360_v48, %v7359_v46  ;;  %v9399_v9 = vpack.c.bf16 %v7378_v56, %v7377_v63  ;;  %v7333_v36 = vld [vmem:[#allocation15 + $0x240] sm:$0xff]  ;;  %v7384_v46 = vld [vmem:[#allocation15 + $0x3d8] sm:$0xff]  ;;  %v7335_v48 = vld [vmem:[#allocation15 + $0x250] sm:$0xff] }
 0x6ec   :  { %v7353_v63 = vld [vmem:[#allocation15 + $0x2e0] sm:$0xff]  ;;  %v7354_v56 = vld [vmem:[#allocation15 + $0x2e8] sm:$0xff] }
 0x6ed   :  { %9326 = vmatpush3.bf16.msra.mxu0 %v9325_v4  ;;  %v7380_v4 = vld [vmem:[#allocation15 + $0x3b8] sm:$0xff] }
 0x6ee   :  { %9358 = vmatpush3.bf16.msra.mxu1 %v9357_v8  ;;  %9360 = vmatprep.subr.bf16.mxu0 %v9359_v13  ;;  %v7187_v8 = vadd.f32 %v10909_v23, %v7171_v60  ;;  %v9371_v13 = vpack.c.bf16 %v7348_v1, %v7347_v0  ;;  %v7356_v0 = vld [vmem:[#allocation15 + $0x2f8] sm:$0xff]  ;;  %v7387_v1 = vld [vmem:[#allocation15 + $0x3f0] sm:$0xff] }
 0x6ef   :  { %9392 = vmatprep.subr.bf16.mxu1 %v9391_v7  ;;  %v9403_v7 = vpack.c.bf16 %v7380_v4, %v7379_v35  ;;  %v7388_v35 = vld [vmem:[#allocation15 + $0x3f8] sm:$0xff]  ;;  %v10269_v45 = vpop.eup %10268 }
 0x6f0   :  { %7592 = vmatmul.mubr.f32.vlgmr.msra.gmra.mrb[2].mxu0 %v7245_v42  ;;  %v7203_v59 = vmul.f32 0.7978846, %v7187_v8  ;;  %v9407_v42 = vpack.c.bf16 %v7382_v34, %v7381_v33  ;;  %v7339_v8 = vld [vmem:[#allocation15 + $0x270] sm:$0xff]  ;;  %v9419_v16 = vpack.c.bf16 %v7388_v35, %v7387_v1  ;;  %v7438_v33 = vld [vmem:[#allocation15 + $0x588] sm:$0xff]  ;;  %v7412_v1 = vld [vmem:[#allocation15 + $0x4b8] sm:$0xff] }
 0x6f1   :  { %7662 = vmatmul.mubr.f32.vlgmr.msra.gmra.mrb[2].mxu1 %v7247_v47  ;;  %9362 = vmatpush3.bf16.msra.mxu0 %v9361_v39  ;;  %v9405_v39 = vpack.c.bf16 %v7364_v30, %v7363_v27  ;;  %v9377_v47 = vpack.c.bf16 %v7334_v38, %v7333_v36  ;;  %v7372_v27 = vld [vmem:[#allocation15 + $0x378] sm:$0xff]  ;;  %v7406_v30 = vld [vmem:[#allocation15 + $0x488] sm:$0xff]  ;;  %v7421_v36 = vld [vmem:[#allocation15 + $0x500] sm:$0xff]  ;;  %v9455_v41 = vpack.c.bf16 %v7438_v33, %v7437_v31 }
 0x6f2   :  { %7731 = vmatprep.mubr.f32.mxu0 %v7250_v53  ;;  %9394 = vmatpush3.bf16.msra.mxu1 %v9393_v24  ;;  %v7351_v24 = vld [vmem:[#allocation15 + $0x2d0] sm:$0xff]  ;;  %10270 = vtanh.f32 %v7203_v59  ;;  %v9411_v53 = vpack.c.bf16 %v7384_v46, %v7383_v54  ;;  %v7440_v46 = vld [vmem:[#allocation15 + $0x598] sm:$0xff]  ;;  %v7446_v31 = vld [vmem:[#allocation15 + $0x5c8] sm:$0xff] }
 0x6f3   :  { %7801 = vmatprep.mubr.f32.mxu1 %v7252_v2  ;;  %9364 = vmatprep.subr.bf16.mxu0 %v9363_v20  ;;  %v9379_v20 = vpack.c.bf16 %v7352_v44, %v7351_v24  ;;  %v7386_v2 = vld [vmem:[#allocation15 + $0x3e8] sm:$0xff]  ;;  %v7408_v24 = vld [vmem:[#allocation15 + $0x498] sm:$0xff]  ;;  %v7121_v44 = vmul.f32 0.5, %v10906_v52  ;;  %v7439_v54 = vld [vmem:[#allocation15 + $0x590] sm:$0xff] }
 0x6f4   :  { %9396 = vmatprep.subr.bf16.mxu1 %v9395_v3  ;;  %v7368_v3 = vld [vmem:[#allocation15 + $0x358] sm:$0xff]  ;;  %v9415_v62 = vpack.c.bf16 %v7386_v2, %v7385_v57  ;;  %v7409_v2 = vld [vmem:[#allocation15 + $0x4a0] sm:$0xff]  ;;  %v7410_v52 = vld [vmem:[#allocation15 + $0x4a8] sm:$0xff] }
 0x6f5   :  { %9366 = vmatpush3.bf16.msra.mxu0 %v9365_v58  ;;  %v9381_v58 = vpack.c.bf16 %v7336_v51, %v7335_v48  ;;  %v9413_v60 = vpack.c.bf16 %v7368_v3, %v7367_v12  ;;  %v9427_v51 = vpack.c.bf16 %v7408_v24, %v7407_v43  ;;  %v7391_v12 = vld [vmem:[#allocation15 + $0x410] sm:$0xff]  ;;  %v7424_v57 = vld [vmem:[#allocation15 + $0x518] sm:$0xff] }
 0x6f6   :  { %9398 = vmatpush3.bf16.msra.mxu1 %v9397_v17  ;;  %9368 = vmatprep.subr.bf16.mxu0 %v9367_v14  ;;  %v9383_v17 = vpack.c.bf16 %v7354_v56, %v7353_v63  ;;  %v7337_v14 = vld [vmem:[#allocation15 + $0x260] sm:$0xff]  ;;  %v7423_v3 = vld [vmem:[#allocation15 + $0x510] sm:$0xff]  ;;  %v9459_v56 = vpack.c.bf16 %v7440_v46, %v7439_v54  ;;  %v7448_v43 = vld [vmem:[#allocation15 + $0x5d8] sm:$0xff] }
 0x6f7   :  { %9400 = vmatprep.subr.bf16.mxu1 %v9399_v9  ;;  %v7370_v9 = vld [vmem:[#allocation15 + $0x368] sm:$0xff]  ;;  %v9385_v4 = vpack.c.bf16 %v7338_v28, %v7337_v14  ;;  %v9431_v14 = vpack.c.bf16 %v7410_v52, %v7409_v2  ;;  %v7393_v28 = vld [vmem:[#allocation15 + $0x420] sm:$0xff]  ;;  %v7443_v35 = vld [vmem:[#allocation15 + $0x5b0] sm:$0xff] }
 0x6f8   :  { %v9417_v5 = vpack.c.bf16 %v7370_v9, %v7369_v61  ;;  %v7394_v61 = vld [vmem:[#allocation15 + $0x428] sm:$0xff]  ;;  %v10925_v24 = vld [vmem:[#allocation14 + $0x8] sm:$0xff] }
 0x6f9   :  { %9370 = vmatpush3.bf16.msra.mxu0 %v9369_v6  ;;  %v9387_v6 = vpack.c.bf16 %v7356_v0, %v7355_v50  ;;  %v7426_v50 = vld [vmem:[#allocation15 + $0x528] sm:$0xff]  ;;  %v7411_v0 = vld [vmem:[#allocation15 + $0x4b0] sm:$0xff]  ;;  %v3860_v2 = vrot.slane %v10925_v24, %v10678_v21 }
 0x6fa   :  { %9402 = vmatpush3.bf16.msra.mxu1 %v9401_v11  ;;  %9372 = vmatprep.subr.bf16.mxu0 %v9371_v13  ;;  %v7340_v11 = vld [vmem:[#allocation15 + $0x278] sm:$0xff]  ;;  %v7371_v13 = vld [vmem:[#allocation15 + $0x370] sm:$0xff] }
 0x6fb   :  { %9404 = vmatprep.subr.bf16.mxu1 %v9403_v7  ;;  %v7405_v7 = vld [vmem:[#allocation15 + $0x480] sm:$0xff]  ;;  %v9389_v34 = vpack.c.bf16 %v7340_v11, %v7339_v8  ;;  %v9421_v37 = vpack.c.bf16 %v7372_v27, %v7371_v13  ;;  %v9435_v8 = vpack.c.bf16 %v7412_v1, %v7411_v0  ;;  %v7395_v11 = vld [vmem:[#allocation15 + $0x430] sm:$0xff]  ;;  %v7396_v13 = vld [vmem:[#allocation15 + $0x438] sm:$0xff] }
 0x6fc   :  { %v10271_v29 = vpop.eup %10270  ;;  %v9423_v59 = vpack.c.bf16 %v7406_v30, %v7405_v7  ;;  %v7428_v27 = vld [vmem:[#allocation15 + $0x538] sm:$0xff]  ;;  %v7413_v7 = vld [vmem:[#allocation15 + $0x4c0] sm:$0xff]  ;;  %v7414_v30 = vld [vmem:[#allocation15 + $0x4c8] sm:$0xff]  ;;  %v9437_v33 = vpack.c.bf16 %v7396_v13, %v7395_v11 }
 0x6fd   :  { %9374 = vmatpush3.bf16.msra.mxu0 %v9373_v49  ;;  %v7233_v49 = vadd.f32 1.0, %v10269_v45  ;;  %v7235_v38 = vadd.f32 1.0, %v10271_v29  ;;  %v7427_v45 = vld [vmem:[#allocation15 + $0x530] sm:$0xff]  ;;  %v7445_v29 = vld [vmem:[#allocation15 + $0x5c0] sm:$0xff] }
 0x6fe   :  { %9406 = vmatpush3.bf16.msra.mxu1 %v9405_v39  ;;  %9376 = vmatprep.subr.bf16.mxu0 %v9375_v40  ;;  %v7389_v39 = vld [vmem:[#allocation15 + $0x400] sm:$0xff]  ;;  %v7390_v40 = vld [vmem:[#allocation15 + $0x408] sm:$0xff]  ;;  %v7451_v1 = vld [vmem:[#allocation15 + $0x5f0] sm:$0xff] }
 0x6ff   :  { %9408 = vmatprep.subr.bf16.mxu1 %v9407_v42  ;;  %v7422_v42 = vld [vmem:[#allocation15 + $0x508] sm:$0xff] }
 0x700   :  { %v9457_v48 = vpack.c.bf16 %v7422_v42, %v7421_v36  ;;  %v7430_v36 = vld [vmem:[#allocation15 + $0x548] sm:$0xff]  ;;  %v7447_v42 = vld [vmem:[#allocation15 + $0x5d0] sm:$0xff] }
 0x701   :  { %9378 = vmatpush3.bf16.msra.mxu0 %v9377_v47  ;;  %v7123_v47 = vmul.f32 0.5, %v10909_v23 }
 0x702   :  { %9410 = vmatpush3.bf16.msra.mxu1 %v9409_v26  ;;  %9380 = vmatprep.subr.bf16.mxu0 %v9379_v20  ;;  %v9425_v26 = vpack.c.bf16 %v7390_v40, %v7389_v39  ;;  %v7249_v20 = vmul.f32 %v7233_v49, %v7121_v44  ;;  %v7397_v49 = vld [vmem:[#allocation15 + $0x440] sm:$0xff]  ;;  %v9471_v40 = vpack.c.bf16 %v7446_v31, %v7445_v29  ;;  %v7404_v29 = vld [vmem:[#allocation15 + $0x478] sm:$0xff]  ;;  %v7435_v31 = vld [vmem:[#allocation15 + $0x570] sm:$0xff] }
 0x703   :  { %9412 = vmatprep.subr.bf16.mxu1 %v9411_v53  ;;  %v7392_v53 = vld [vmem:[#allocation15 + $0x418] sm:$0xff]  ;;  %v7251_v63 = vmul.f32 %v7235_v38, %v7123_v47  ;;  %v7429_v39 = vld [vmem:[#allocation15 + $0x540] sm:$0xff]  ;;  %v7415_v38 = vld [vmem:[#allocation15 + $0x4d0] sm:$0xff] }
 0x704   :  { %v9429_v23 = vpack.c.bf16 %v7392_v53, %v7391_v12  ;;  %v9473_v54 = vpack.c.bf16 %v7430_v36, %v7429_v39  ;;  %v7399_v47 = vld [vmem:[#allocation15 + $0x450] sm:$0xff]  ;;  %v7417_v12 = vld [vmem:[#allocation15 + $0x4e0] sm:$0xff]  ;;  %v7418_v53 = vld [vmem:[#allocation15 + $0x4e8] sm:$0xff] }
 0x705   :  { %9382 = vmatpush3.bf16.msra.mxu0 %v9381_v58  ;;  %v7441_v58 = vld [vmem:[#allocation15 + $0x5a0] sm:$0xff] }
 0x706   :  { %9414 = vmatpush3.bf16.msra.mxu1 %v9413_v60  ;;  %9384 = vmatprep.subr.bf16.mxu0 %v9383_v17  ;;  %v7442_v60 = vld [vmem:[#allocation15 + $0x5a8] sm:$0xff]  ;;  %v9461_v17 = vpack.c.bf16 %v7424_v57, %v7423_v3  ;;  %v3856_v3 = vrot.slane %v10925_v24, %v10673_v19  ;;  %v3864_v57 = vrot.slane %v10925_v24, %v10692_v32  ;;  %v7433_v19 = vld [vmem:[#allocation15 + $0x560] sm:$0xff]  ;;  %v7419_v32 = vld [vmem:[#allocation15 + $0x4f0] sm:$0xff] }
 0x707   :  { %9416 = vmatprep.subr.bf16.mxu1 %v9415_v62  ;;  %v7425_v62 = vld [vmem:[#allocation15 + $0x520] sm:$0xff]  ;;  %v9463_v9 = vpack.c.bf16 %v7442_v60, %v7441_v58  ;;  %v3868_v60 = vrot.slane %v10925_v24, %v10681_v22 }
 0x708   :  { %v7401_v58 = vld [vmem:[#allocation15 + $0x460] sm:$0xff] }
 0x709   :  { %9386 = vmatpush3.bf16.msra.mxu0 %v9385_v4  ;;  %v7444_v4 = vld [vmem:[#allocation15 + $0x5b8] sm:$0xff]  ;;  %v7469_v39 = vld [vmem:[#allocation15 + $0x680] sm:$0xff] }
 0x70a   :  { %9418 = vmatpush3.bf16.msra.mxu1 %v9417_v5  ;;  %9388 = vmatprep.subr.bf16.mxu0 %v9387_v6  ;;  %v9433_v5 = vpack.c.bf16 %v7394_v61, %v7393_v28  ;;  %v9465_v6 = vpack.c.bf16 %v7426_v50, %v7425_v62  ;;  %v7434_v28 = vld [vmem:[#allocation15 + $0x568] sm:$0xff] }
 0x70b   :  { %9420 = vmatprep.subr.bf16.mxu1 %v9419_v16  ;;  %v9467_v16 = vpack.c.bf16 %v7444_v4, %v7443_v35  ;;  %v7452_v35 = vld [vmem:[#allocation15 + $0x5f8] sm:$0xff]  ;;  %v9481_v11 = vpack.c.bf16 %v7434_v28, %v7433_v19  ;;  %v7453_v28 = vld [vmem:[#allocation15 + $0x600] sm:$0xff] }
 0x70d   :  { %9390 = vmatpush3.bf16.msra.mxu0 %v9389_v34  ;;  %v9469_v34 = vpack.c.bf16 %v7428_v27, %v7427_v45 }
 0x70e   :  { %9422 = vmatpush3.bf16.msra.mxu1 %v9421_v37  ;;  %9424 = vmatprep.subr.bf16.mxu0 %v9423_v59  ;;  %v9439_v37 = vpack.c.bf16 %v7414_v30, %v7413_v7  ;;  %v7398_v59 = vld [vmem:[#allocation15 + $0x448] sm:$0xff]  ;;  %v7403_v30 = vld [vmem:[#allocation15 + $0x470] sm:$0xff] }
 0x70f   :  { %9456 = vmatprep.subr.bf16.mxu1 %v9455_v41  ;;  %v7416_v41 = vld [vmem:[#allocation15 + $0x4d8] sm:$0xff]  ;;  %v9441_v44 = vpack.c.bf16 %v7398_v59, %v7397_v49  ;;  %v9483_v49 = vpack.c.bf16 %v7452_v35, %v7451_v1  ;;  %v7486_v1 = vld [vmem:[#allocation15 + $0x708] sm:$0xff]  ;;  %v7471_v35 = vld [vmem:[#allocation15 + $0x690] sm:$0xff] }
 0x710   :  { %7732 = vmatmul.mubr.f32.vlgmr.msra.gmra.mrb[32].mxu0 %v7249_v20  ;;  %v9443_v46 = vpack.c.bf16 %v7416_v41, %v7415_v38  ;;  %v7431_v20 = vld [vmem:[#allocation15 + $0x550] sm:$0xff]  ;;  %v7436_v59 = vld [vmem:[#allocation15 + $0x578] sm:$0xff]  ;;  %v7501_v41 = vld [vmem:[#allocation15 + $0x780] sm:$0xff] }
 0x711   :  { %7802 = vmatmul.mubr.f32.vlgmr.msra.gmra.mrb[32].mxu1 %v7251_v63  ;;  %9426 = vmatpush3.bf16.msra.mxu0 %v9425_v26  ;;  %v7400_v26 = vld [vmem:[#allocation15 + $0x458] sm:$0xff]  ;;  %v7449_v63 = vld [vmem:[#allocation15 + $0x5e0] sm:$0xff] }
 0x712   :  { %9458 = vmatpush3.bf16.msra.mxu1 %v9457_v48  ;;  %9428 = vmatprep.subr.bf16.mxu0 %v9427_v51  ;;  %v9475_v48 = vpack.c.bf16 %v7448_v43, %v7447_v42  ;;  %v7432_v51 = vld [vmem:[#allocation15 + $0x558] sm:$0xff]  ;;  %v9445_v52 = vpack.c.bf16 %v7400_v26, %v7399_v47  ;;  %v7502_v42 = vld [vmem:[#allocation15 + $0x788] sm:$0xff]  ;;  %v9485_v26 = vpack.c.bf16 %v7436_v59, %v7435_v31 }
 0x713   :  { %9460 = vmatprep.subr.bf16.mxu1 %v9459_v56  ;;  %v7450_v56 = vld [vmem:[#allocation15 + $0x5e8] sm:$0xff] }
 0x714   :  { %v9479_v62 = vpack.c.bf16 %v7450_v56, %v7449_v63 }
 0x715   :  { %9430 = vmatpush3.bf16.msra.mxu0 %v9429_v23  ;;  %v9477_v23 = vpack.c.bf16 %v7432_v51, %v7431_v20 }
 0x716   :  { %9462 = vmatpush3.bf16.msra.mxu1 %v9461_v17  ;;  %9432 = vmatprep.subr.bf16.mxu0 %v9431_v14  ;;  %v9447_v17 = vpack.c.bf16 %v7418_v53, %v7417_v12  ;;  %v7402_v14 = vld [vmem:[#allocation15 + $0x468] sm:$0xff]  ;;  %v9519_v12 = vpack.c.bf16 %v7502_v42, %v7501_v41 }
 0x717   :  { %9464 = vmatprep.subr.bf16.mxu1 %v9463_v9  ;;  %v7420_v9 = vld [vmem:[#allocation15 + $0x4f8] sm:$0xff] }
 0x718   :  { %v9451_v7 = vpack.c.bf16 %v7420_v9, %v7419_v32 }
 0x719   :  { %9434 = vmatpush3.bf16.msra.mxu0 %v9433_v5 }
 0x71a   :  { %9466 = vmatpush3.bf16.msra.mxu1 %v9465_v6  ;;  %9436 = vmatprep.subr.bf16.mxu0 %v9435_v8  ;;  %v9449_v8 = vpack.c.bf16 %v7402_v14, %v7401_v58 }
 0x71b   :  { %9468 = vmatprep.subr.bf16.mxu1 %v9467_v16 }
 0x71d   :  { %9438 = vmatpush3.bf16.msra.mxu0 %v9437_v33 }
 0x71e   :  { %9470 = vmatpush3.bf16.msra.mxu1 %v9469_v34  ;;  %9440 = vmatprep.subr.bf16.mxu0 %v9439_v37 }
 0x71f   :  { %9472 = vmatprep.subr.bf16.mxu1 %v9471_v40  ;;  %v7470_v40 = vld [vmem:[#allocation15 + $0x688] sm:$0xff] }
 0x720   :  { %v9487_v20 = vpack.c.bf16 %v7470_v40, %v7469_v39  ;;  %v7473_v40 = vld [vmem:[#allocation15 + $0x6a0] sm:$0xff] }
 0x721   :  { %9442 = vmatpush3.bf16.msra.mxu0 %v9441_v44 }
 0x722   :  { %9474 = vmatpush3.bf16.msra.mxu1 %v9473_v54  ;;  %9444 = vmatprep.subr.bf16.mxu0 %v9443_v46  ;;  %v9453_v54 = vpack.c.bf16 %v7404_v29, %v7403_v30 }
 0x723   :  { %v6864_v61 = vpop.f32.mrb[24].mxu0  ;;  %9476 = vmatprep.subr.bf16.mxu1 %v9475_v48 }
 0x724   :  { %v10935_v50 = vadd.f32 %v6864_v61, %v3856_v3  ;;  %v6946_v21 = vpop.f32.mrb[24].mxu1  ;;  %v6866_v0 = vpop.f32.mrb[25].mxu0  ;;  %v7454_v61 = vld [vmem:[#allocation15 + $0x608] sm:$0xff] }
 0x725   :  { %v10937_v4 = vadd.f32 %v6946_v21, %v3864_v57  ;;  %v10939_v22 = vadd.f32 %v6866_v0, %v3860_v2  ;;  %v6948_v5 = vpop.f32.mrb[25].mxu1  ;;  %v6868_v6 = vpop.f32.mrb[26].mxu0  ;;  %9446 = vmatpush3.bf16.msra.mxu0 %v9445_v52  ;;  %v9489_v30 = vpack.c.bf16 %v7454_v61, %v7453_v28  ;;  %v7461_v61 = vld [vmem:[#allocation15 + $0x640] sm:$0xff] }
 0x726   :  { %v7141_v13 = vmul.f32 %v10935_v50, %v10935_v50  ;;  %v10943_v45 = vadd.f32 %v6948_v5, %v3868_v60  ;;  %v6950_v16 = vpop.f32.mrb[26].mxu1  ;;  %v6869_v27 = vpop.f32.mrb[27].mxu0  ;;  %9478 = vmatpush3.bf16.msra.mxu1 %v9477_v23  ;;  %9448 = vmatprep.subr.bf16.mxu0 %v9447_v17  ;;  %v7472_v5 = vld [vmem:[#allocation15 + $0x698] sm:$0xff]  ;;  %v7125_v6 = vmul.f32 0.5, %v10935_v50 }
 0x727   :  { %v7143_v33 = vmul.f32 %v10937_v4, %v10937_v4  ;;  %v7142_v34 = vmul.f32 %v10939_v22, %v10939_v22  ;;  %v6951_v37 = vpop.f32.mrb[27].mxu1  ;;  %9480 = vmatprep.subr.bf16.mxu1 %v9479_v62  ;;  %v7485_v62 = vld [vmem:[#allocation15 + $0x700] sm:$0xff]  ;;  %v7126_v9 = vmul.f32 0.5, %v10939_v22  ;;  %v7504_v16 = vld [vmem:[#allocation15 + $0x798] sm:$0xff]  ;;  %v7127_v27 = vmul.f32 0.5, %v10937_v4 }
 0x728   :  { %v7157_v36 = vmul.f32 %v10935_v50, %v7141_v13  ;;  %v7144_v38 = vmul.f32 %v10943_v45, %v10943_v45  ;;  %v7503_v13 = vld [vmem:[#allocation15 + $0x790] sm:$0xff]  ;;  %v7456_v37 = vld [vmem:[#allocation15 + $0x618] sm:$0xff] }
 0x729   :  { %v7159_v43 = vmul.f32 %v10937_v4, %v7143_v33  ;;  %v7158_v44 = vmul.f32 %v10939_v22, %v7142_v34  ;;  %9450 = vmatpush3.bf16.msra.mxu0 %v9449_v8  ;;  %v7128_v8 = vmul.f32 0.5, %v10943_v45  ;;  %v9521_v33 = vpack.c.bf16 %v7486_v1, %v7485_v62  ;;  %v7455_v34 = vld [vmem:[#allocation15 + $0x610] sm:$0xff]  ;;  %v7462_v62 = vld [vmem:[#allocation15 + $0x648] sm:$0xff]  ;;  %v7480_v1 = vld [vmem:[#allocation15 + $0x6d8] sm:$0xff] }
 0x72a   :  { %v7173_v46 = vmul.f32 0.044715, %v7157_v36  ;;  %v7160_v47 = vmul.f32 %v10943_v45, %v7144_v38  ;;  %9482 = vmatpush3.bf16.msra.mxu1 %v9481_v11  ;;  %9452 = vmatprep.subr.bf16.mxu0 %v9451_v7  ;;  %v9523_v39 = vpack.c.bf16 %v7504_v16, %v7503_v13  ;;  %v7505_v36 = vld [vmem:[#allocation15 + $0x7a0] sm:$0xff]  ;;  %v7506_v38 = vld [vmem:[#allocation15 + $0x7a8] sm:$0xff]  ;;  %v7463_v13 = vld [vmem:[#allocation15 + $0x650] sm:$0xff] }
 0x72b   :  { %v7175_v48 = vmul.f32 0.044715, %v7159_v43  ;;  %v7174_v51 = vmul.f32 0.044715, %v7158_v44  ;;  %9484 = vmatprep.subr.bf16.mxu1 %v9483_v49  ;;  %v7487_v49 = vld [vmem:[#allocation15 + $0x710] sm:$0xff]  ;;  %v7457_v43 = vld [vmem:[#allocation15 + $0x620] sm:$0xff] }
 0x72c   :  { %v7189_v53 = vadd.f32 %v10935_v50, %v7173_v46  ;;  %v7176_v3 = vmul.f32 0.044715, %v7160_v47  ;;  %v7488_v50 = vld [vmem:[#allocation15 + $0x718] sm:$0xff]  ;;  %v7458_v44 = vld [vmem:[#allocation15 + $0x628] sm:$0xff]  ;;  %v9527_v46 = vpack.c.bf16 %v7506_v38, %v7505_v36  ;;  %v7483_v36 = vld [vmem:[#allocation15 + $0x6f0] sm:$0xff] }
 0x72d   :  { %v7191_v63 = vadd.f32 %v10937_v4, %v7175_v48  ;;  %v7190_v56 = vadd.f32 %v10939_v22, %v7174_v51  ;;  %9454 = vmatpush3.bf16.msra.mxu0 %v9453_v54  ;;  %v9491_v22 = vpack.c.bf16 %v7472_v5, %v7471_v35  ;;  %v9493_v4 = vpack.c.bf16 %v7456_v37, %v7455_v34  ;;  %v7489_v54 = vld [vmem:[#allocation15 + $0x720] sm:$0xff]  ;;  %v7490_v47 = vld [vmem:[#allocation15 + $0x728] sm:$0xff]  ;;  %v7507_v48 = vld [vmem:[#allocation15 + $0x7b0] sm:$0xff] }
 0x72e   :  { %v7205_v57 = vmul.f32 0.7978846, %v7189_v53  ;;  %v7192_v2 = vadd.f32 %v10943_v45, %v7176_v3  ;;  %9486 = vmatpush3.bf16.msra.mxu1 %v9485_v26  ;;  %9488 = vmatprep.subr.bf16.mxu0 %v9487_v20  ;;  %v7474_v45 = vld [vmem:[#allocation15 + $0x6a8] sm:$0xff]  ;;  %v9525_v41 = vpack.c.bf16 %v7488_v50, %v7487_v49  ;;  %v7475_v26 = vld [vmem:[#allocation15 + $0x6b0] sm:$0xff]  ;;  %v7476_v20 = vld [vmem:[#allocation15 + $0x6b8] sm:$0xff]  ;;  %v9529_v53 = vpack.c.bf16 %v7490_v47, %v7489_v54 }
 0x72f   :  { %v7207_v52 = vmul.f32 0.7978846, %v7191_v63  ;;  %v7206_v58 = vmul.f32 0.7978846, %v7190_v56  ;;  %9520 = vmatprep.subr.bf16.mxu1 %v9519_v12  ;;  %v9495_v42 = vpack.c.bf16 %v7474_v45, %v7473_v40  ;;  %v7508_v51 = vld [vmem:[#allocation15 + $0x7b8] sm:$0xff]  ;;  %v9497_v12 = vpack.c.bf16 %v7458_v44, %v7457_v43  ;;  %v7459_v63 = vld [vmem:[#allocation15 + $0x630] sm:$0xff] }
 0x730   :  { %10272 = vtanh.f32 %v7205_v57  ;;  %v7208_v60 = vmul.f32 0.7978846, %v7192_v2  ;;  %v9499_v3 = vpack.c.bf16 %v7476_v20, %v7475_v26  ;;  %v7460_v56 = vld [vmem:[#allocation15 + $0x638] sm:$0xff]  ;;  %v7491_v57 = vld [vmem:[#allocation15 + $0x730] sm:$0xff]  ;;  %v9531_v2 = vpack.c.bf16 %v7508_v51, %v7507_v48  ;;  %v7497_v50 = vld [vmem:[#allocation15 + $0x760] sm:$0xff] }
 0x731   :  { %10274 = vtanh.f32 %v7207_v52  ;;  %v7492_v52 = vld [vmem:[#allocation15 + $0x738] sm:$0xff]  ;;  %v7511_v35 = vld [vmem:[#allocation15 + $0x7d0] sm:$0xff]  ;;  %v7498_v45 = vld [vmem:[#allocation15 + $0x768] sm:$0xff] }
 0x732   :  { %10276 = vtanh.f32 %v7206_v58  ;;  %v7477_v58 = vld [vmem:[#allocation15 + $0x6c0] sm:$0xff]  ;;  %v7512_v5 = vld [vmem:[#allocation15 + $0x7d8] sm:$0xff]  ;;  %v9545_v43 = vpack.c.bf16 %v7498_v45, %v7497_v50  ;;  %v7467_v54 = vld [vmem:[#allocation15 + $0x670] sm:$0xff] }
 0x733   :  { %10278 = vtanh.f32 %v7208_v60  ;;  %v7478_v60 = vld [vmem:[#allocation15 + $0x6c8] sm:$0xff]  ;;  %v7464_v16 = vld [vmem:[#allocation15 + $0x658] sm:$0xff]  ;;  %v7499_v26 = vld [vmem:[#allocation15 + $0x770] sm:$0xff] }
 0x734   :  { %v9503_v28 = vpack.c.bf16 %v7478_v60, %v7477_v58  ;;  %v9509_v34 = vpack.c.bf16 %v7464_v16, %v7463_v13  ;;  %v7484_v38 = vld [vmem:[#allocation15 + $0x6f8] sm:$0xff] }
 0x735   :  { %v9515_v44 = vpack.c.bf16 %v7484_v38, %v7483_v36  ;;  %v7500_v20 = vld [vmem:[#allocation15 + $0x778] sm:$0xff] }
 0x736   :  { %v9549_v51 = vpack.c.bf16 %v7500_v20, %v7499_v26 }
 0x73a   :  { %v10273_v23 = vpop.eup %10272 }
 0x73b   :  { %v10275_v17 = vpop.eup %10274  ;;  %v7237_v19 = vadd.f32 1.0, %v10273_v23  ;;  %v7509_v23 = vld [vmem:[#allocation15 + $0x7c0] sm:$0xff] }
 0x73c   :  { %v10277_v14 = vpop.eup %10276  ;;  %v7239_v0 = vadd.f32 1.0, %v10275_v17  ;;  %v7510_v17 = vld [vmem:[#allocation15 + $0x7c8] sm:$0xff] }
 0x73d   :  { %v10279_v32 = vpop.eup %10278  ;;  %v7238_v21 = vadd.f32 1.0, %v10277_v14  ;;  %v7253_v31 = vmul.f32 %v7237_v19, %v7125_v6  ;;  %v9501_v14 = vpack.c.bf16 %v7460_v56, %v7459_v63  ;;  %v9533_v19 = vpack.c.bf16 %v7492_v52, %v7491_v57 }
 0x73e   :  { %v7240_v11 = vadd.f32 1.0, %v10279_v32  ;;  %v7255_v59 = vmul.f32 %v7239_v0, %v7127_v27  ;;  %v7493_v32 = vld [vmem:[#allocation15 + $0x740] sm:$0xff]  ;;  %v7479_v0 = vld [vmem:[#allocation15 + $0x6d0] sm:$0xff]  ;;  %v9505_v6 = vpack.c.bf16 %v7462_v62, %v7461_v61  ;;  %v3884_v63 = vrot.slane %v10925_v24, %v3851_v10 }
 0x73f   :  { %v7254_v7 = vmul.f32 %v7238_v21, %v7126_v9  ;;  %v9535_v9 = vpack.c.bf16 %v7510_v17, %v7509_v23  ;;  %v7494_v21 = vld [vmem:[#allocation15 + $0x748] sm:$0xff]  ;;  %v7495_v27 = vld [vmem:[#allocation15 + $0x750] sm:$0xff] }
 0x740   :  { %v7256_v29 = vmul.f32 %v7240_v11, %v7128_v8  ;;  %v9537_v8 = vpack.c.bf16 %v7494_v21, %v7493_v32  ;;  %v9507_v11 = vpack.c.bf16 %v7480_v1, %v7479_v0 }
 0x741   :  { %7871 = vmatprep.mubr.f32.mxu0 %v7254_v7  ;;  %v9539_v7 = vpack.c.bf16 %v7512_v5, %v7511_v35 }
 0x742   :  { %7941 = vmatprep.mubr.f32.mxu1 %v7256_v29  ;;  %7872 = vmatmul.mubr.f32.vlgmr.msra.gmra.mrb[34].mxu0 %v7253_v31  ;;  %v7481_v29 = vld [vmem:[#allocation15 + $0x6e0] sm:$0xff]  ;;  %v7482_v31 = vld [vmem:[#allocation15 + $0x6e8] sm:$0xff] }
 0x743   :  { %7942 = vmatmul.mubr.f32.vlgmr.msra.gmra.mrb[34].mxu1 %v7255_v59  ;;  %9490 = vmatpush3.bf16.msra.mxu0 %v9489_v30  ;;  %v7496_v30 = vld [vmem:[#allocation15 + $0x758] sm:$0xff]  ;;  %v9511_v49 = vpack.c.bf16 %v7482_v31, %v7481_v29  ;;  %v7465_v59 = vld [vmem:[#allocation15 + $0x660] sm:$0xff] }
 0x744   :  { %9522 = vmatpush3.bf16.msra.mxu1 %v9521_v33  ;;  %9492 = vmatprep.subr.bf16.mxu0 %v9491_v22  ;;  %v7513_v33 = vld [vmem:[#allocation15 + $0x7e0] sm:$0xff]  ;;  %v7514_v22 = vld [vmem:[#allocation15 + $0x7e8] sm:$0xff]  ;;  %v9541_v37 = vpack.c.bf16 %v7496_v30, %v7495_v27 }
 0x745   :  { %9524 = vmatprep.subr.bf16.mxu1 %v9523_v39  ;;  %v7466_v39 = vld [vmem:[#allocation15 + $0x668] sm:$0xff]  ;;  %v9543_v40 = vpack.c.bf16 %v7514_v22, %v7513_v33 }
 0x747   :  { %9494 = vmatpush3.bf16.msra.mxu0 %v9493_v4  ;;  %v7515_v4 = vld [vmem:[#allocation15 + $0x7f0] sm:$0xff] }
 0x748   :  { %9526 = vmatpush3.bf16.msra.mxu1 %v9525_v41  ;;  %9496 = vmatprep.subr.bf16.mxu0 %v9495_v42  ;;  %v7516_v41 = vld [vmem:[#allocation15 + $0x7f8] sm:$0xff]  ;;  %v9513_v42 = vpack.c.bf16 %v7466_v39, %v7465_v59 }
 0x749   :  { %9528 = vmatprep.subr.bf16.mxu1 %v9527_v46  ;;  %v7468_v46 = vld [vmem:[#allocation15 + $0x678] sm:$0xff]  ;;  %v9547_v47 = vpack.c.bf16 %v7516_v41, %v7515_v4  ;;  %v7525_v41 = vpop.permute.xlu0 %7524 }
 0x74a   :  { %v9517_v48 = vpack.c.bf16 %v7468_v46, %v7467_v54 }
 0x74b   :  { %9498 = vmatpush3.bf16.msra.mxu0 %v9497_v12  ;;  %v3872_v12 = vrot.slane %v10925_v24, %v3839_v15 }
 0x74c   :  { %9530 = vmatpush3.bf16.msra.mxu1 %v9529_v53  ;;  %9500 = vmatprep.subr.bf16.mxu0 %v9499_v3  ;;  %v3880_v53 = vrot.slane %v10925_v24, %v3847_v25  ;;  %v3876_v3 = vrot.slane %v10925_v24, %v3843_v55 }
 0x74d   :  { %9532 = vmatprep.subr.bf16.mxu1 %v9531_v2 }
 0x74f   :  { %9502 = vmatpush3.bf16.msra.mxu0 %v9501_v14 }
 0x750   :  { %9534 = vmatpush3.bf16.msra.mxu1 %v9533_v19  ;;  %9504 = vmatprep.subr.bf16.mxu0 %v9503_v28 }
 0x751   :  { %9536 = vmatprep.subr.bf16.mxu1 %v9535_v9 }
 0x753   :  { %9506 = vmatpush3.bf16.msra.mxu0 %v9505_v6 }
 0x754   :  { %9538 = vmatpush3.bf16.msra.mxu1 %v9537_v8  ;;  %9508 = vmatprep.subr.bf16.mxu0 %v9507_v11 }
 0x755   :  { %9540 = vmatprep.subr.bf16.mxu1 %v9539_v7 }
 0x757   :  { %9510 = vmatpush3.bf16.msra.mxu0 %v9509_v34 }
 0x758   :  { %9542 = vmatpush3.bf16.msra.mxu1 %v9541_v37  ;;  %9512 = vmatprep.subr.bf16.mxu0 %v9511_v49 }
 0x759   :  { %9544 = vmatprep.subr.bf16.mxu1 %v9543_v40 }
 0x75b   :  { %9514 = vmatpush3.bf16.msra.mxu0 %v9513_v42 }
 0x75c   :  { %9546 = vmatpush3.bf16.msra.mxu1 %v9545_v43  ;;  %9516 = vmatprep.subr.bf16.mxu0 %v9515_v44 }
 0x75d   :  { %9548 = vmatprep.subr.bf16.mxu1 %v9547_v47 }
 0x75f   :  { %9518 = vmatpush3.bf16.msra.mxu0 %v9517_v48 }
 0x760   :  { %9550 = vmatpush3.bf16.msra.mxu1 %v9549_v51 }
 0x7a3   :  { %v7028_v56 = vpop.f32.mrb[28].mxu0 }
 0x7a4   :  { %v9575_v57 = vadd.f32 %v7028_v56, %v3872_v12  ;;  %v7110_v2 = vpop.f32.mrb[28].mxu1  ;;  %v7030_v52 = vpop.f32.mrb[29].mxu0 }
 0x7a5   :  { %v9577_v58 = vadd.f32 %v7110_v2, %v3880_v53  ;;  %v9576_v60 = vadd.f32 %v7030_v52, %v3876_v3  ;;  %v7112_v23 = vpop.f32.mrb[29].mxu1  ;;  %v7032_v15 = vpop.f32.mrb[30].mxu0 }
 0x7a6   :  { %v7145_v17 = vmul.f32 %v9575_v57, %v9575_v57  ;;  %v9578_v14 = vadd.f32 %v7112_v23, %v3884_v63  ;;  %v7114_v19 = vpop.f32.mrb[30].mxu1  ;;  %v7033_v25 = vpop.f32.mrb[31].mxu0  ;;  %v7129_v49 = vmul.f32 0.5, %v9575_v57 }
 0x7a7   :  { %v7147_v28 = vmul.f32 %v9577_v58, %v9577_v58  ;;  %v7146_v61 = vmul.f32 %v9576_v60, %v9576_v60  ;;  %v7115_v62 = vpop.f32.mrb[31].mxu1  ;;  %v7130_v22 = vmul.f32 0.5, %v9576_v60  ;;  %v7131_v50 = vmul.f32 0.5, %v9577_v58 }
 0x7a8   :  { %v7161_v55 = vmul.f32 %v9575_v57, %v7145_v17  ;;  %v7148_v32 = vmul.f32 %v9578_v14, %v9578_v14  ;;  %v7132_v59 = vmul.f32 0.5, %v9578_v14 }
 0x7a9   :  { %v7163_v18 = vmul.f32 %v9577_v58, %v7147_v28  ;;  %v7162_v9 = vmul.f32 %v9576_v60, %v7146_v61 }
 0x7aa   :  { %v7177_v10 = vmul.f32 0.044715, %v7161_v55  ;;  %v7164_v24 = vmul.f32 %v9578_v14, %v7148_v32 }
 0x7ab   :  { %v7179_v21 = vmul.f32 0.044715, %v7163_v18  ;;  %v7178_v0 = vmul.f32 0.044715, %v7162_v9 }
 0x7ac   :  { %v7193_v1 = vadd.f32 %v9575_v57, %v7177_v10  ;;  %v7180_v35 = vmul.f32 0.044715, %v7164_v24 }
 0x7ad   :  { %v7195_v5 = vadd.f32 %v9577_v58, %v7179_v21  ;;  %v7194_v6 = vadd.f32 %v9576_v60, %v7178_v0 }
 0x7ae   :  { %v7209_v8 = vmul.f32 0.7978846, %v7193_v1  ;;  %v7196_v11 = vadd.f32 %v9578_v14, %v7180_v35 }
 0x7af   :  { %v7211_v13 = vmul.f32 0.7978846, %v7195_v5  ;;  %v7210_v16 = vmul.f32 0.7978846, %v7194_v6 }
 0x7b0   :  { %10280 = vtanh.f32 %v7209_v8  ;;  %v7212_v27 = vmul.f32 0.7978846, %v7196_v11 }
 0x7b1   :  { %10282 = vtanh.f32 %v7211_v13 }
 0x7b2   :  { %10284 = vtanh.f32 %v7210_v16 }
 0x7b3   :  { %10286 = vtanh.f32 %v7212_v27 }
 0x7ba   :  { %v10281_v7 = vpop.eup %10280 }
 0x7bb   :  { %v10283_v30 = vpop.eup %10282  ;;  %v7241_v31 = vadd.f32 1.0, %v10281_v7 }
 0x7bc   :  { %v10285_v29 = vpop.eup %10284  ;;  %v7243_v37 = vadd.f32 1.0, %v10283_v30 }
 0x7bd   :  { %v10287_v33 = vpop.eup %10286  ;;  %v7242_v34 = vadd.f32 1.0, %v10285_v29  ;;  %v7257_v36 = vmul.f32 %v7241_v31, %v7129_v49 }
 0x7be   :  { %v7244_v39 = vadd.f32 1.0, %v10287_v33  ;;  %v7259_v38 = vmul.f32 %v7243_v37, %v7131_v50 }
 0x7bf   :  { %v7258_v40 = vmul.f32 %v7242_v34, %v7130_v22 }
 0x7c0   :  { %v7260_v45 = vmul.f32 %v7244_v39, %v7132_v59 }
 0x7c1   :  { %8011 = vmatprep.mubr.f32.mxu0 %v7258_v40 }
 0x7c2   :  { %8081 = vmatprep.mubr.f32.mxu1 %v7260_v45  ;;  %8012 = vmatmul.mubr.f32.vlgmr.msra.gmra.mrb[36].mxu0 %v7257_v36 }
 0x7c3   :  { %8082 = vmatmul.mubr.f32.vlgmr.msra.gmra.mrb[36].mxu1 %v7259_v38  ;;  %v9039_v4 = vpop.f32.mrb[2].mxu0 }
 0x7c4   :  { %v9074_v42 = vpop.f32.mrb[2].mxu1  ;;  %v9040_v43 = vpop.f32.mrb[3].mxu0 }
 0x7c5   :  { %v9041_v44 = vadd.f32 %v9040_v43, %v9039_v4  ;;  %v9075_v54 = vpop.f32.mrb[3].mxu1 }
 0x7c6   :  { %v9076_v46 = vadd.f32 %v9075_v54, %v9074_v42 }
 0x7c7   :  { %v7594_v47 = vadd.f32 %v9041_v44, %v7525_v41 }
 0x7c9   :  { %v7664_v26 = vadd.f32 %v9076_v46, %v7594_v47 }
 0x7e3   :  { %v9109_v20 = vpop.f32.mrb[32].mxu0 }
 0x7e4   :  { %v9144_v48 = vpop.f32.mrb[32].mxu1  ;;  %v9110_v51 = vpop.f32.mrb[33].mxu0 }
 0x7e5   :  { %v9111_v12 = vadd.f32 %v9110_v51, %v9109_v20  ;;  %v9145_v53 = vpop.f32.mrb[33].mxu1 }
 0x7e6   :  { %v9146_v3 = vadd.f32 %v9145_v53, %v9144_v48 }
 0x7e7   :  { %v7734_v63 = vadd.f32 %v9111_v12, %v7664_v26 }
 0x7e9   :  { %v7804_v56 = vadd.f32 %v9146_v3, %v7734_v63 }
 0x815   :  { %v9179_v57 = vpop.f32.mrb[34].mxu0 }
 0x816   :  { %v9214_v2 = vpop.f32.mrb[34].mxu1  ;;  %v9180_v52 = vpop.f32.mrb[35].mxu0 }
 0x817   :  { %v9181_v58 = vadd.f32 %v9180_v52, %v9179_v57  ;;  %v9215_v60 = vpop.f32.mrb[35].mxu1 }
 0x818   :  { %v9216_v23 = vadd.f32 %v9215_v60, %v9214_v2 }
 0x819   :  { %v7874_v15 = vadd.f32 %v9181_v58, %v7804_v56 }
 0x81b   :  { %v7944_v17 = vadd.f32 %v9216_v23, %v7874_v15 }
 0x895   :  { %v9249_v14 = vpop.f32.mrb[36].mxu0 }
 0x896   :  { %v9284_v19 = vpop.f32.mrb[36].mxu1  ;;  %v9250_v25 = vpop.f32.mrb[37].mxu0 }
 0x897   :  { %v9251_v28 = vadd.f32 %v9250_v25, %v9249_v14  ;;  %v9285_v61 = vpop.f32.mrb[37].mxu1 }
 0x898   :  { %v9286_v62 = vadd.f32 %v9285_v61, %v9284_v19 }
 0x899   :  { %v8014_v55 = vadd.f32 %v9251_v28, %v7944_v17 }
 0x89b   :  { %v8084_v32 = vadd.f32 %v9286_v62, %v8014_v55 }
 0x89d   :  { %8088 = vst.msk [vmem:[#allocation17] sm:$0x3] %vm8087_vm1, %v8084_v32 }
 0x89e   :  { %10475 = shalt.err (!%p10472_p12)
}
 0x89f   :  { %s10476_s17 = scalar_lea.hbm %s10996_s9, 32 }
 0x8a0   :  { %p10477_p13 = scmp.ne.s32.totalorder %s10996_s9, %s10476_s17  ;;  %p10480_p0 = scmp.lt.u32.totalorder %s10476_s17, %s10996_s9 }
 0x8a2   :  { %p10482_p1 = pnand %p10480_p0, %p10477_p13 }
 0x8a4   :  { %10485 = shalt.err (!%p10482_p1)
}
 0x8a5   :  { %8098 = dma.vmem_to_hbm [thread:$0]  %s8096_s2, 32, %s10996_s9, [#allocation5]  }
 0x8a6   :  { %10496 = dma.done.wait [#allocation5], 32  }
 0x8a7   :  { %10497 = vsyncadd [#allocation5], 4294967264 }
 0x8a8   :  { %8102 = vsyncpa [#allocation4], 1 }
 0x8a9   :  { %8103 = vsyncpa [#allocation7], 1 }
 0x8aa   :  { %8104 = vsyncpa [#allocation10], 1 }
 0x8ab   :  { %8105 = vsyncpa [#allocation13], 1 }
 0x8ac   :  { %8106 = vsyncpa [#allocation16], 1 }
 0x8ad   :  { %8107 = vsyncpa [#allocation5], 1 }

</bundles_post_ra>
